<compile_context>
chip_gen: v5e
topology: v5e:2x2
jax: 0.10.0
libtpu: 0.0.40
codegen_flags: <defaults>
</compile_context>

<pallas_src>
import functools
import math

import jax
import jax.numpy as jnp
from jax.experimental import pallas as pl
from jax.experimental.pallas import tpu as pltpu


# ----------------------------------------------------------------------------
# Pallas kernels
# ----------------------------------------------------------------------------

def _matmul_bn_kernel(a_ref, w_ref, s_ref, b_ref, o_ref, *, relu):
    # a: (TM, K) bf16, w: (K, TN) bf16, s/b: (1, TN) f32, o: (TM, TN) bf16.
    acc = jnp.dot(a_ref[...], w_ref[...], preferred_element_type=jnp.float32)
    out = acc * s_ref[...] + b_ref[...]
    if relu:
        out = jnp.maximum(out, 0.0)
    o_ref[...] = out.astype(o_ref.dtype)


def _matmul_bn_res_kernel(a_ref, w_ref, s_ref, b_ref, r_ref, o_ref, *, relu):
    acc = jnp.dot(a_ref[...], w_ref[...], preferred_element_type=jnp.float32)
    out = acc * s_ref[...] + b_ref[...] + r_ref[...].astype(jnp.float32)
    if relu:
        out = jnp.maximum(out, 0.0)
    o_ref[...] = out.astype(o_ref.dtype)


_MM_KERNEL = {
    (False, True): functools.partial(_matmul_bn_kernel, relu=True),
    (False, False): functools.partial(_matmul_bn_kernel, relu=False),
    (True, True): functools.partial(_matmul_bn_res_kernel, relu=True),
    (True, False): functools.partial(_matmul_bn_res_kernel, relu=False),
}


def _conv3x3_kernel(x_ref, w_ref, s_ref, b_ref, o_ref, *, H, W, relu):
    # x_ref: (1, (H+3)*(W+2), Cin) flattened zero-padded input (bf16), VMEM resident.
    # w_ref: (9, Cin, TN) filter taps (bf16); s/b: (1, TN) folded BN (f32).
    # o_ref: (1, H*(W+2), TN) "wide" output; columns W..W+1 of each row are junk and
    #        get sliced off outside the kernel.  The 9 im2col taps are plain
    #        sublane-offset slices of the flattened block -> no HBM im2col blow-up.
    L = H * (W + 2)
    cout = o_ref.shape[-1]
    acc = jnp.zeros((L, cout), jnp.float32)
    for di in range(3):
        for dj in range(3):
            start = di * (W + 2) + dj
            xs = x_ref[0, start:start + L, :]
            acc = acc + jnp.dot(xs, w_ref[di * 3 + dj],
                                preferred_element_type=jnp.float32)
    out = acc * s_ref[...] + b_ref[...]
    if relu:
        out = jnp.maximum(out, 0.0)
    o_ref[0] = out.astype(o_ref.dtype)


@functools.lru_cache(maxsize=None)
def _get_conv3x3_kernel(H, W, relu):
    return functools.partial(_conv3x3_kernel, H=H, W=W, relu=relu)


# ----------------------------------------------------------------------------
# pallas_call builders (cached per static shape, wrapped in jax.jit for reuse)
# ----------------------------------------------------------------------------

def _choose_tiles(M, Nc):
    # Large row tiles for the big stem convs; aim for >= 2 grid steps (megacore).
    tm = M
    if M >= 512:
        for cand in (2048, 1024, 512, 256, 128):
            if M % cand == 0 and M // cand >= 2:
                tm = cand
                break
    tn = Nc
    if (M // tm) == 1 and Nc >= 256 and Nc % 128 == 0:
        tn = Nc // 2        # split wide outputs so both v7x TensorCores get work
    return tm, tn


@functools.lru_cache(maxsize=None)
def _build_matmul_bn(M, K, Nc, has_res, relu):
    tm, tn = _choose_tiles(M, Nc)
    grid = (M // tm, Nc // tn)
    in_specs = [
        pl.BlockSpec((tm, K), lambda i, j: (i, 0)),
        pl.BlockSpec((K, tn), lambda i, j: (0, j)),
        pl.BlockSpec((1, tn), lambda i, j: (0, j)),
        pl.BlockSpec((1, tn), lambda i, j: (0, j)),
    ]
    if has_res:
        in_specs.append(pl.BlockSpec((tm, tn), lambda i, j: (i, j)))
    call = pl.pallas_call(
        _MM_KERNEL[(has_res, relu)],
        out_shape=jax.ShapeDtypeStruct((M, Nc), jnp.bfloat16),
        grid=grid,
        in_specs=in_specs,
        out_specs=pl.BlockSpec((tm, tn), lambda i, j: (i, j)),
        compiler_params=pltpu.CompilerParams(
            dimension_semantics=("parallel", "parallel")),
    )
    return jax.jit(call)


def fused_matmul_bn(a, w, scale, bias, res=None, relu=True):
    """out = [relu]((a @ w) * scale + bias [+ res]); bf16 operands, fp32 accumulate."""
    M, K = a.shape
    _, Nc = w.shape
    a = a.astype(jnp.bfloat16)
    call = _build_matmul_bn(M, K, Nc, res is not None, relu)
    if res is None:
        return call(a, w, scale, bias)
    return call(a, w, scale, bias, res.astype(jnp.bfloat16))


@functools.lru_cache(maxsize=None)
def _build_conv3x3(N, H, W, C, cout, relu):
    Lp = (H + 3) * (W + 2)
    Lw = H * (W + 2)
    # Split wide output-channel axes (128-lane multiples, so stores stay unmasked)
    # so small batches still give the pipeline / megacore >= 2*N grid steps and the
    # per-step weight block stays small.
    tn = cout
    if cout >= 256 and cout % 128 == 0:
        tn = 128
    grid = (N, cout // tn)
    call = pl.pallas_call(
        _get_conv3x3_kernel(H, W, relu),
        out_shape=jax.ShapeDtypeStruct((N, Lw, cout), jnp.bfloat16),
        grid=grid,
        in_specs=[
            pl.BlockSpec((1, Lp, C), lambda n, j: (n, 0, 0)),
            pl.BlockSpec((9, C, tn), lambda n, j: (0, 0, j)),
            pl.BlockSpec((1, tn), lambda n, j: (0, j)),
            pl.BlockSpec((1, tn), lambda n, j: (0, j)),
        ],
        out_specs=pl.BlockSpec((1, Lw, tn), lambda n, j: (n, 0, j)),
        compiler_params=pltpu.CompilerParams(
            dimension_semantics=("parallel", "parallel")),
    )
    return jax.jit(call)


def conv3x3_s1(x, layer, relu=True):
    """Fused 3x3 / stride-1 / pad-1 conv + BN [+ ReLU], im2col done in VMEM."""
    N, H, W, C = x.shape
    cout = layer["w_taps"].shape[-1]
    # pad: 1 row top, 2 rows bottom (extra row keeps the last tap's wide slice
    # in-bounds), 1 col each side; flatten spatial so the 9 taps become plain
    # offset slices inside the kernel.
    xp = jnp.pad(x.astype(jnp.bfloat16), ((0, 0), (1, 2), (1, 1), (0, 0)))
    x_flat = xp.reshape(N, (H + 3) * (W + 2), C)
    call = _build_conv3x3(N, H, W, C, cout, relu)
    out_wide = call(x_flat, layer["w_taps"], layer["scale"], layer["bias"])
    return out_wide.reshape(N, H, W + 2, cout)[:, :, :W, :]


# ----------------------------------------------------------------------------
# Glue: im2col (only for the 4 strided 3x3 stem convs), pooling, bilinear resize
# ----------------------------------------------------------------------------

def im2col(x, k, stride, pad):
    # x: (N, H, W, C) -> patches (N*Ho*Wo, k*k*C) in (kh, kw, c) order.
    N, H, W, C = x.shape
    xp = jnp.pad(x, ((0, 0), (pad, pad), (pad, pad), (0, 0)))
    Ho = (H + 2 * pad - k) // stride + 1
    Wo = (W + 2 * pad - k) // stride + 1
    cols = []
    for i in range(k):
        for j in range(k):
            cols.append(xp[:, i:i + Ho * stride:stride, j:j + Wo * stride:stride, :])
    patches = jnp.concatenate(cols, axis=-1)
    return patches.reshape(N * Ho * Wo, k * k * C), (N, Ho, Wo)


def conv_bn_forward(x, layer, relu=True, res=None):
    x = x.astype(jnp.bfloat16)
    k, stride = layer["k"], layer["stride"]
    if k == 1:
        if stride > 1:
            x = x[:, ::stride, ::stride, :]
        N, H, W, C = x.shape
        a = x.reshape(N * H * W, C)
        res_flat = None if res is None else res.reshape(N * H * W, -1)
        out = fused_matmul_bn(a, layer["w_mat"], layer["scale"], layer["bias"],
                              res=res_flat, relu=relu)
        return out.reshape(N, H, W, -1)
    if k == 3 and stride == 1 and res is None:
        return conv3x3_s1(x, layer, relu=relu)
    # strided 3x3 stem convs (small K, no residual): JAX im2col + fused matmul.
    patches, (N, Ho, Wo) = im2col(x, k, stride, layer["pad"])
    res_flat = None if res is None else res.reshape(N * Ho * Wo, -1)
    out = fused_matmul_bn(patches, layer["w_mat"], layer["scale"], layer["bias"],
                          res=res_flat, relu=relu)
    return out.reshape(N, Ho, Wo, -1)


def downsample_half(x):
    # Exact match of F.interpolate(scale_factor=0.5, mode='bilinear',
    # align_corners=False) for even H, W: 2x2 average.  Accumulate in fp32.
    N, H, W, C = x.shape
    x = x.astype(jnp.float32)
    return x.reshape(N, H // 2, 2, W // 2, 2, C).mean(axis=(2, 4))


def maxpool_3x3_s2_p1(x):
    return jax.lax.reduce_window(
        x, jnp.array(-jnp.inf, x.dtype), jax.lax.max,
        window_dimensions=(1, 3, 3, 1),
        window_strides=(1, 2, 2, 1),
        padding=((0, 0), (1, 1), (1, 1), (0, 0)))


def adaptive_avg_pool(x, s):
    N, H, W, C = x.shape
    rows = []
    for i in range(s):
        h0 = (i * H) // s
        h1 = ((i + 1) * H + s - 1) // s
        cols = []
        for j in range(s):
            w0 = (j * W) // s
            w1 = ((j + 1) * W + s - 1) // s
            cols.append(x[:, h0:h1, w0:w1, :].mean(axis=(1, 2), keepdims=True))
        rows.append(jnp.concatenate(cols, axis=2))
    return jnp.concatenate(rows, axis=1)


def bilinear_resize(x, Ho, Wo):
    # PyTorch-style bilinear, align_corners=False.
    N, H, W, C = x.shape

    def weights(out_size, in_size):
        dst = jnp.arange(out_size, dtype=jnp.float32)
        src = (dst + 0.5) * (in_size / out_size) - 0.5
        src = jnp.clip(src, 0.0, in_size - 1)
        i0 = jnp.clip(jnp.floor(src).astype(jnp.int32), 0, in_size - 1)
        i1 = jnp.clip(i0 + 1, 0, in_size - 1)
        w1 = src - i0.astype(jnp.float32)
        return i0, i1, 1.0 - w1, w1

    hi0, hi1, hw0, hw1 = weights(Ho, H)
    wi0, wi1, ww0, ww1 = weights(Wo, W)
    top = (x[:, hi0, :, :] * hw0[None, :, None, None]
           + x[:, hi1, :, :] * hw1[None, :, None, None])
    out = (top[:, :, wi0, :] * ww0[None, None, :, None]
           + top[:, :, wi1, :] * ww1[None, None, :, None])
    return out


def spatial_pyramid_pooling(x, scales):
    x = x.astype(jnp.float32)           # fp32 pooling / accumulation
    N, H, W, C = x.shape
    out = x
    for s in scales:
        pooled = adaptive_avg_pool(x, s)
        out = out + bilinear_resize(pooled, H, W)
    return out


# ----------------------------------------------------------------------------
# Deterministic parameter construction (mirrors the PyTorch __init__ shapes)
# ----------------------------------------------------------------------------

class ParamGen:
    def __init__(self, key):
        self.key = key

    def next(self):
        self.key, sub = jax.random.split(self.key)
        return sub


def make_conv_bn(pg, cin, cout, k, stride, pad):
    fan_in = cin * k * k
    w = jax.random.normal(pg.next(), (cout, cin, k, k), jnp.float32) * math.sqrt(2.0 / fan_in)
    # (Cout, Cin, kh, kw) -> (kh, kw, Cin, Cout); all kernel-side layouts built once here.
    w_hwio = jnp.transpose(w, (2, 3, 1, 0))
    # BatchNorm (eval-mode fold). Deterministic pseudo-random stats/affine.
    gamma = 1.0 + 0.1 * jax.random.normal(pg.next(), (cout,), jnp.float32)
    beta = 0.1 * jax.random.normal(pg.next(), (cout,), jnp.float32)
    r_mean = 0.1 * jax.random.normal(pg.next(), (cout,), jnp.float32)
    r_var = 0.5 + jax.random.uniform(pg.next(), (cout,), jnp.float32)
    eps = 1e-5
    scale = gamma / jnp.sqrt(r_var + eps)
    bias = beta - r_mean * scale
    layer = dict(
        k=k, stride=stride, pad=pad,
        scale=scale.reshape(1, cout),                       # f32, kernel-ready
        bias=bias.reshape(1, cout),                         # f32, kernel-ready
        w_mat=w_hwio.reshape(k * k * cin, cout).astype(jnp.bfloat16),
    )
    if k == 3 and stride == 1:
        layer["w_taps"] = w_hwio.reshape(9, cin, cout).astype(jnp.bfloat16)
    return layer


def make_convx3(pg, strides, channels=(3, 32, 32, 64)):
    return [make_conv_bn(pg, channels[i], channels[i + 1], 3, strides[i], 1) for i in range(3)]


def apply_convx3(layers, x):
    for layer in layers:
        x = conv_bn_forward(x, layer, relu=True)
    return x


def make_res_unit(pg, cin, cout, strides):
    skip = cin != cout
    unit = dict(
        skip=skip,
        c1=make_conv_bn(pg, cin, cout // 4, 1, strides[0], 0),
        c2=make_conv_bn(pg, cout // 4, cout // 4, 3, strides[1], 1),
        c3a=make_conv_bn(pg, cout // 4, cout, 1, strides[2], 0),
    )
    if skip:
        unit["c3b"] = make_conv_bn(pg, cin, cout, 1, strides[0], 0)
    return unit


def apply_res_unit(unit, x):
    y = conv_bn_forward(x, unit["c1"], relu=True)
    y = conv_bn_forward(y, unit["c2"], relu=True)
    if unit["skip"]:
        res = conv_bn_forward(x, unit["c3b"], relu=False)
    else:
        res = x
    # conv_3a + bn_3a + residual-add + relu fused in one Pallas kernel.
    return conv_bn_forward(y, unit["c3a"], relu=True, res=res)


def make_res_block(pg, cin, cout, repeat, strides=(1, 1, 1)):
    return [make_res_unit(pg, cin if i == 0 else cout, cout, strides) for i in range(repeat)]


def apply_res_block(units, x):
    for unit in units:
        x = apply_res_unit(unit, x)
    return x


def make_icpsp50(key):
    pg = ParamGen(key)
    return dict(
        convx3_1=make_convx3(pg, [2, 2, 2]),
        convx3_2=make_convx3(pg, [2, 1, 1]),
        res_b1=make_res_block(pg, 64, 128, 3),
        res_b2a=make_res_block(pg, 128, 256, 1, strides=(2, 1, 1)),
        res_b2b=make_res_block(pg, 256, 256, 3),
        res_b3=make_res_block(pg, 256, 512, 6),
        res_b4=make_res_block(pg, 512, 1024, 3),
    )


def icpsp50_forward(params, x_nchw):
    x = jnp.transpose(x_nchw, (0, 2, 3, 1))  # NCHW -> NHWC
    p1 = apply_convx3(params["convx3_1"], x)

    p2 = downsample_half(x)
    p2 = apply_convx3(params["convx3_2"], p2)
    p2 = maxpool_3x3_s2_p1(p2)
    p2 = apply_res_block(params["res_b1"], p2)
    p2 = apply_res_block(params["res_b2a"], p2)

    p3 = downsample_half(p2)
    p3 = apply_res_block(params["res_b2b"], p3)
    p3 = apply_res_block(params["res_b3"], p3)
    p3 = apply_res_block(params["res_b4"], p3)
    p3 = spatial_pyramid_pooling(p3, scales=[1, 2, 3, 6])

    # back to NCHW (and f32) like PyTorch
    return tuple(jnp.transpose(p.astype(jnp.float32), (0, 3, 1, 2)) for p in (p1, p2, p3))


if __name__ == "__main__":
    key = jax.random.PRNGKey(0)
    pkey, xkey = jax.random.split(key)
    params = make_icpsp50(pkey)

    # Small-but-valid input: batch=2, 3 channels (fixed by the first conv), 128x128.
    x = jax.random.normal(xkey, (2, 3, 128, 128), jnp.float32)

    p1, p2, p3 = icpsp50_forward(params, x)
    jax.block_until_ready((p1, p2, p3))

    assert p1.shape == (2, 64, 16, 16), p1.shape
    assert p2.shape == (2, 256, 8, 8), p2.shape
    assert p3.shape == (2, 1024, 4, 4), p3.shape
    print("KERNEL_OK")
</pallas_src>

<mosaic_0001>
module attributes {stable_mosaic.version = 11 : i64} {
  func.func @_matmul_bn_kernel(%arg0: i32, %arg1: i32, %arg2: memref<2048x27xbf16, #tpu.memory_space<vmem>>, %arg3: memref<27x32xbf16, #tpu.memory_space<vmem>>, %arg4: memref<1x32xf32, #tpu.memory_space<vmem>>, %arg5: memref<1x32xf32, #tpu.memory_space<vmem>>, %arg6: memref<2048x32xbf16, #tpu.memory_space<vmem>>) attributes {dimension_semantics = [#tpu.dimension_semantics<parallel>, #tpu.dimension_semantics<parallel>], iteration_bounds = array<i64: 4, 1>, scalar_prefetch = 0 : i64, scratch_operands = 0 : i64, tpu.core_type = #tpu.core_type<tc>, window_params = [{transform_indices = @transform_0, window_bounds = array<i64: 2048, 27>}, {transform_indices = @transform_1, window_bounds = array<i64: 27, 32>}, {transform_indices = @transform_2, window_bounds = array<i64: 1, 32>}, {transform_indices = @transform_3, window_bounds = array<i64: 1, 32>}, {transform_indices = @transform_4, window_bounds = array<i64: 2048, 32>}]} {
    %c0 = arith.constant 0 : index
    %c0_0 = arith.constant 0 : index
    %0 = vector.load %arg2[%c0, %c0_0] : memref<2048x27xbf16, #tpu.memory_space<vmem>>, vector<2048x27xbf16>
    %c0_1 = arith.constant 0 : index
    %c0_2 = arith.constant 0 : index
    %1 = vector.load %arg3[%c0_1, %c0_2] : memref<27x32xbf16, #tpu.memory_space<vmem>>, vector<27x32xbf16>
    %cst = arith.constant dense<0.000000e+00> : vector<2048x32xf32>
    %2 = tpu.matmul %0, %1, %cst {dimension_numbers = #tpu.dot_dimension_numbers<[1], [0], [0], [1], [0, 0, 1, 1], [], []>} : vector<2048x27xbf16>, vector<27x32xbf16>, vector<2048x32xf32> -> vector<2048x32xf32>
    %c0_3 = arith.constant 0 : index
    %c0_4 = arith.constant 0 : index
    %3 = vector.load %arg4[%c0_3, %c0_4] : memref<1x32xf32, #tpu.memory_space<vmem>>, vector<1x32xf32>
    %4 = vector.broadcast %3 : vector<1x32xf32> to vector<2048x32xf32>
    %5 = arith.mulf %2, %4 : vector<2048x32xf32>
    %c0_5 = arith.constant 0 : index
    %c0_6 = arith.constant 0 : index
    %6 = vector.load %arg5[%c0_5, %c0_6] : memref<1x32xf32, #tpu.memory_space<vmem>>, vector<1x32xf32>
    %7 = vector.broadcast %6 : vector<1x32xf32> to vector<2048x32xf32>
    %8 = arith.addf %5, %7 : vector<2048x32xf32>
    %cst_7 = arith.constant 0.000000e+00 : f32
    %9 = vector.broadcast %cst_7 : f32 to vector<2048x32xf32>
    %10 = arith.maximumf %8, %9 : vector<2048x32xf32>
    %11 = arith.truncf %10 : vector<2048x32xf32> to vector<2048x32xbf16>
    %c0_8 = arith.constant 0 : index
    %c0_9 = arith.constant 0 : index
    %12 = vector.load %arg6[%c0_8, %c0_9] : memref<2048x32xbf16, #tpu.memory_space<vmem>>, vector<2048x32xbf16>
    tpu.vector_store %arg6[%c0_8, %c0_9], %11 {strides = array<i32>} : memref<2048x32xbf16, #tpu.memory_space<vmem>>, vector<2048x32xbf16>,
    return
  }
  func.func @transform_0(%arg0: i32, %arg1: i32) -> (i32, i32) {
    %c0_i32 = arith.constant 0 : i32
    %c0_i32_0 = arith.constant 0 : i32
    return %arg0, %c0_i32 : i32, i32
  }
  func.func @transform_1(%arg0: i32, %arg1: i32) -> (i32, i32) {
    %c0_i32 = arith.constant 0 : i32
    %c0_i32_0 = arith.constant 0 : i32
    return %c0_i32, %arg1 : i32, i32
  }
  func.func @transform_2(%arg0: i32, %arg1: i32) -> (i32, i32) {
    %c0_i32 = arith.constant 0 : i32
    %c0_i32_0 = arith.constant 0 : i32
    return %c0_i32, %arg1 : i32, i32
  }
  func.func @transform_3(%arg0: i32, %arg1: i32) -> (i32, i32) {
    %c0_i32 = arith.constant 0 : i32
    %c0_i32_0 = arith.constant 0 : i32
    return %c0_i32, %arg1 : i32, i32
  }
  func.func @transform_4(%arg0: i32, %arg1: i32) -> (i32, i32) {
    %c0_i32 = arith.constant 0 : i32
    return %arg0, %arg1 : i32, i32
  }
}

</mosaic_0001>

<bundles_post_ra>
// kernel: tpu_custom_call.1
= control target key start
LH: loop header
LB: loop body
LE: loop exit
PB: predicated region body
PF: predicated region fallthrough
CT: control target
= control target key end

     0   :  { %s4503_s15 = smov 0   ;;  %s4505_s16 = smov 0   ;;  %s5876_s0 = inlined_call_operand.vmem [shape: bf16[8192,27], index: 0, kind: input, shape index: {}]   ;;  %s5877_s1 = inlined_call_operand.vmem [shape: bf16[27,32], index: 1, kind: input, shape index: {}]   ;;  %s5878_s2 = inlined_call_operand.vmem [shape: f32[1,32], index: 2, kind: input, shape index: {}]   ;;  %s5879_s3 = inlined_call_operand.vmem [shape: f32[1,32], index: 3, kind: input, shape index: {}]   ;;  %s5880_s4 = inlined_call_operand.vmem [shape: bf16[8192,32], index: 4, kind: output, shape index: {}]  }
   0x1   :  { %s4507_s17 = smov 0  }
   0x2 LB: > { %s26_s18 = sadd.s32 1, %s4471_s16  ;;  %p3629_p0 = scmp.ge.s32.totalorder %s4475_s17, 1  ;;  %s4475_s17 = sphi %s4507_s17, %s14_s17   ;;  %s4471_s16 = sphi %s4505_s16, %s5882_s16   ;;  %s4467_s15 = sphi %s4503_s15, %s5881_s15  }
   0x3   : > { %p28_p1 = scmp.ge.s32.totalorder %s26_s18, 4  ;;  %p202_p2 = scmp.lt.s32.totalorder %s4475_s17, 5 }
   0x5   : > { %s5884_s18 = smov (%p28_p1, %s26_s18), 0  ;;  %p203_p3 = pnand %p3629_p0, %p202_p2 }
   0x6   : > { %s3630_s23 = sshll.u32 (!%p203_p3), %s4467_s15, 8 }
   0x7   : > { %206 = sbr.rel (%p203_p3) target bundleno = 672 (0x2a0), region = 36  ;;  %p242_p4 = scmp.lt.s32.totalorder (!%p203_p3), %s3630_s23, 1023 }
   0xc   : > { %v4152_v0 = vld [vmem:[%s5877_s1 + $0x8] sm:$0xf]  ;;  %v4413_v1 = vld [vmem:[%s5877_s1 + $0x8] sm:$0x30]  ;;  %vm1563_vm0 = vcmask 1044480   ;;  %vm1564_vm1 = vcmask 1045504  }
   0xd   : > { %v4153_v2 = vor.u32 %v4413_v1, %v4152_v0  ;;  %v4477_v3 = vmov 65535   ;;  %s5886_s23 = smov (!%p242_p4, %s3630_s23), 1023  ;;  %v4412_v7 = vld [vmem:[%s5877_s1] sm:$0xff]  ;;  %vm1178_vm2 = vcmask 220160   ;;  %vm3251_vm3 = vcmask 257024  }
   0xe   : > { %v1565_v4 = vsel %vm1563_vm0, 4294967295, %v4477_v3  ;;  %s3631_s26 = sshll.u32 %s5886_s23, 2  ;;  %v4607_v40 = vld [vmem:[%s5878_s2] ss:$0 sm:$0xff] }
   0xf   : > { %v1566_v5 = vsel %vm1564_vm1, %v1565_v4, 0  ;;  %s4538_s29 = scalar_lea.vmem %s5876_s0, %s3631_s26  ;;  %v4612_v41 = vld [vmem:[%s5879_s3] ss:$0 sm:$0xff]  ;;  %s4631_s10 = scalar_lea.vmem %s5880_s4, %s3631_s26 }
  0x10   : > { %v1568_v6 = vand.u32 %v4153_v2, %v1566_v5  ;;  %v4284_v8 = vld [vmem:[%s4538_s29] sm:$0xff]  ;;  %v4285_v12 = vld [vmem:[%s4538_s29 + $0x8] sm:$0xff]  ;;  %v4286_v16 = vld [vmem:[%s4538_s29 + $0x10] sm:$0xff] }
  0x11   : > { %v4316_v9 = vld [vmem:[%s4538_s29 + $0x100] sm:$0xff]  ;;  %v4317_v13 = vld [vmem:[%s4538_s29 + $0x108] sm:$0xff]  ;;  %v4318_v17 = vld [vmem:[%s4538_s29 + $0x110] sm:$0xff] }
  0x12   : > { %1576 = vmatpush.bf16.msra.mxu0 %v1568_v6  ;;  %4414 = vmatpush.bf16.msra.mxu1 %v1568_v6  ;;  %v4348_v10 = vld [vmem:[%s4538_s29 + $0x200] sm:$0xff]  ;;  %v4349_v14 = vld [vmem:[%s4538_s29 + $0x208] sm:$0xff]  ;;  %v4350_v18 = vld [vmem:[%s4538_s29 + $0x210] sm:$0xff] }
  0x13   : > { %4415 = vmatpush.bf16.msra.mxu2 %v1568_v6  ;;  %4416 = vmatpush.bf16.msra.mxu3 %v1568_v6  ;;  %v4380_v11 = vld [vmem:[%s4538_s29 + $0x300] sm:$0xff]  ;;  %v4381_v15 = vld [vmem:[%s4538_s29 + $0x308] sm:$0xff]  ;;  %v4382_v19 = vld [vmem:[%s4538_s29 + $0x310] sm:$0xff] }
  0x14   : > { %v4287_v20 = vld [vmem:[%s4538_s29 + $0x18] sm:$0xff]  ;;  %v4288_v24 = vld [vmem:[%s4538_s29 + $0x20] sm:$0xff]  ;;  %v4289_v28 = vld [vmem:[%s4538_s29 + $0x28] sm:$0xff] }
  0x15   : > { %v4319_v21 = vld [vmem:[%s4538_s29 + $0x118] sm:$0xff]  ;;  %v4320_v25 = vld [vmem:[%s4538_s29 + $0x120] sm:$0xff]  ;;  %v4321_v29 = vld [vmem:[%s4538_s29 + $0x128] sm:$0xff] }
  0x16   : > { %1577 = vmatpush.bf16.msra.mxu0 %v4412_v7  ;;  %4417 = vmatpush.bf16.msra.mxu1 %v4412_v7  ;;  %v4351_v22 = vld [vmem:[%s4538_s29 + $0x218] sm:$0xff]  ;;  %v4352_v26 = vld [vmem:[%s4538_s29 + $0x220] sm:$0xff]  ;;  %v4353_v30 = vld [vmem:[%s4538_s29 + $0x228] sm:$0xff] }
  0x17   : > { %4418 = vmatpush.bf16.msra.mxu2 %v4412_v7  ;;  %4419 = vmatpush.bf16.msra.mxu3 %v4412_v7  ;;  %v4383_v23 = vld [vmem:[%s4538_s29 + $0x318] sm:$0xff]  ;;  %v4384_v27 = vld [vmem:[%s4538_s29 + $0x320] sm:$0xff]  ;;  %v4385_v31 = vld [vmem:[%s4538_s29 + $0x328] sm:$0xff] }
  0x18   : > { %v4290_v32 = vld [vmem:[%s4538_s29 + $0x30] sm:$0xff]  ;;  %v4291_v36 = vld [vmem:[%s4538_s29 + $0x38] sm:$0xff]  ;;  %v4292_v42 = vld [vmem:[%s4538_s29 + $0x40] sm:$0xff] }
  0x19   : > { %4154 = vmatmul.msk.bf16.vlgmr.msra.gmra.mxu0 %vm1178_vm2, %v4284_v8  ;;  %4186 = vmatmul.msk.bf16.vlgmr.msra.gmra.mxu1 %vm1178_vm2, %v4316_v9  ;;  %v4322_v33 = vld [vmem:[%s4538_s29 + $0x130] sm:$0xff]  ;;  %v4323_v37 = vld [vmem:[%s4538_s29 + $0x138] sm:$0xff]  ;;  %v4324_v43 = vld [vmem:[%s4538_s29 + $0x140] sm:$0xff] }
  0x1a   : > { %4218 = vmatmul.msk.bf16.vlgmr.msra.gmra.mxu2 %vm1178_vm2, %v4348_v10  ;;  %4250 = vmatmul.msk.bf16.vlgmr.msra.gmra.mxu3 %vm1178_vm2, %v4380_v11  ;;  %v4354_v34 = vld [vmem:[%s4538_s29 + $0x230] sm:$0xff]  ;;  %v4355_v38 = vld [vmem:[%s4538_s29 + $0x238] sm:$0xff]  ;;  %v4356_v46 = vld [vmem:[%s4538_s29 + $0x240] sm:$0xff] }
  0x1b   : > { %v4386_v35 = vld [vmem:[%s4538_s29 + $0x330] sm:$0xff]  ;;  %v4387_v39 = vld [vmem:[%s4538_s29 + $0x338] sm:$0xff]  ;;  %v4388_v47 = vld [vmem:[%s4538_s29 + $0x340] sm:$0xff] }
  0x29   : > { %4155 = vmatmul.msk.bf16.gmra.mxu0 %vm1178_vm2, %v4285_v12  ;;  %4187 = vmatmul.msk.bf16.gmra.mxu1 %vm1178_vm2, %v4317_v13 }
  0x2a   : > { %4219 = vmatmul.msk.bf16.gmra.mxu2 %vm1178_vm2, %v4349_v14  ;;  %4251 = vmatmul.msk.bf16.gmra.mxu3 %vm1178_vm2, %v4381_v15  ;;  %v4293_v14 = vld [vmem:[%s4538_s29 + $0x48] sm:$0xff] }
  0x2b   : > { %v4325_v15 = vld [vmem:[%s4538_s29 + $0x148] sm:$0xff] }
  0x39   : > { %4156 = vmatmul.msk.bf16.gmra.mxu0 %vm1178_vm2, %v4286_v16  ;;  %4188 = vmatmul.msk.bf16.gmra.mxu1 %vm1178_vm2, %v4318_v17 }
  0x3a   : > { %4220 = vmatmul.msk.bf16.gmra.mxu2 %vm1178_vm2, %v4350_v18  ;;  %4252 = vmatmul.msk.bf16.gmra.mxu3 %vm1178_vm2, %v4382_v19 }
  0x49   : > { %4157 = vmatmul.msk.bf16.gmra.mxu0 %vm1178_vm2, %v4287_v20  ;;  %4189 = vmatmul.msk.bf16.gmra.mxu1 %vm1178_vm2, %v4319_v21  ;;  %v4357_v20 = vld [vmem:[%s4538_s29 + $0x248] sm:$0xff] }
  0x4a   : > { %4221 = vmatmul.msk.bf16.gmra.mxu2 %vm1178_vm2, %v4351_v22  ;;  %4253 = vmatmul.msk.bf16.gmra.mxu3 %vm1178_vm2, %v4383_v23  ;;  %v4389_v21 = vld [vmem:[%s4538_s29 + $0x348] sm:$0xff] }
  0x59   : > { %4158 = vmatmul.msk.bf16.gmra.mxu0 %vm1178_vm2, %v4288_v24  ;;  %4190 = vmatmul.msk.bf16.gmra.mxu1 %vm1178_vm2, %v4320_v25 }
  0x5a   : > { %4222 = vmatmul.msk.bf16.gmra.mxu2 %vm1178_vm2, %v4352_v26  ;;  %4254 = vmatmul.msk.bf16.gmra.mxu3 %vm1178_vm2, %v4384_v27 }
  0x69   : > { %4159 = vmatmul.msk.bf16.gmra.mxu0 %vm1178_vm2, %v4289_v28  ;;  %4191 = vmatmul.msk.bf16.gmra.mxu1 %vm1178_vm2, %v4321_v29 }
  0x6a   : > { %4223 = vmatmul.msk.bf16.gmra.mxu2 %vm1178_vm2, %v4353_v30  ;;  %4255 = vmatmul.msk.bf16.gmra.mxu3 %vm1178_vm2, %v4385_v31 }
  0x79   : > { %4160 = vmatmul.msk.bf16.gmra.mxu0 %vm1178_vm2, %v4290_v32  ;;  %4192 = vmatmul.msk.bf16.gmra.mxu1 %vm1178_vm2, %v4322_v33 }
  0x7a   : > { %4224 = vmatmul.msk.bf16.gmra.mxu2 %vm1178_vm2, %v4354_v34  ;;  %4256 = vmatmul.msk.bf16.gmra.mxu3 %vm1178_vm2, %v4386_v35 }
  0x89   : > { %4161 = vmatmul.msk.bf16.gmra.mxu0 %vm1178_vm2, %v4291_v36  ;;  %4193 = vmatmul.msk.bf16.gmra.mxu1 %vm1178_vm2, %v4323_v37 }
  0x8a   : > { %4225 = vmatmul.msk.bf16.gmra.mxu2 %vm1178_vm2, %v4355_v38  ;;  %4257 = vmatmul.msk.bf16.gmra.mxu3 %vm1178_vm2, %v4387_v39 }
  0x96   : > { %v1579_v44 = vpop.f32.mrf.mxu0  ;;  %v1739_v45 = vpop.f32.mrf.mxu1 }
  0x97   : > { %v2223_v48 = vmul.f32 %v4607_v40, %v1579_v44  ;;  %v2287_v49 = vmul.f32 %v4607_v40, %v1739_v45 }
  0x99   : > { %v2483_v50 = vadd.f32 %v4612_v41, %v2223_v48  ;;  %v2547_v51 = vadd.f32 %v4612_v41, %v2287_v49  ;;  %4162 = vmatmul.msk.bf16.gmra.mxu0 %vm1178_vm2, %v4292_v42  ;;  %4194 = vmatmul.msk.bf16.gmra.mxu1 %vm1178_vm2, %v4324_v43 }
  0x9a   : > { %4226 = vmatmul.msk.bf16.gmra.mxu2 %vm1178_vm2, %v4356_v46  ;;  %4258 = vmatmul.msk.bf16.gmra.mxu3 %vm1178_vm2, %v4388_v47 }
  0x9b   : > { %v2739_v52 = vmax.f32 %v2483_v50, 0.0  ;;  %v2803_v53 = vmax.f32 %v2547_v51, 0.0 }
  0x9d   : > { %v2995_v54 = vpack.c.bf16 %v2739_v52, %v2739_v52  ;;  %v3059_v55 = vpack.c.bf16 %v2803_v53, %v2803_v53  ;;  %v1899_v56 = vpop.f32.mrf.mxu2  ;;  %v2059_v57 = vpop.f32.mrf.mxu3 }
  0x9e   : > { %v2351_v58 = vmul.f32 %v4607_v40, %v1899_v56  ;;  %v2415_v59 = vmul.f32 %v4607_v40, %v2059_v57  ;;  %v1581_v60 = vpop.f32.mrf.mxu0  ;;  %v1741_v61 = vpop.f32.mrf.mxu1 }
  0x9f   : > { %3252 = vst.msk [vmem:[%s4631_s10] sm:$0xf] %vm3251_vm3, %v2995_v54  ;;  %v2224_v62 = vmul.f32 %v4607_v40, %v1581_v60  ;;  %v2288_v63 = vmul.f32 %v4607_v40, %v1741_v61  ;;  %v4294_v60 = vld [vmem:[%s4538_s29 + $0x50] sm:$0xff] }
  0xa0   : > { %3316 = vst.msk [vmem:[%s4631_s10 + $0x100] sm:$0xf] %vm3251_vm3, %v3059_v55  ;;  %v2611_v0 = vadd.f32 %v4612_v41, %v2351_v58  ;;  %v2675_v1 = vadd.f32 %v4612_v41, %v2415_v59  ;;  %v4326_v61 = vld [vmem:[%s4538_s29 + $0x150] sm:$0xff] }
  0xa1   : > { %v2484_v2 = vadd.f32 %v4612_v41, %v2224_v62  ;;  %v2548_v3 = vadd.f32 %v4612_v41, %v2288_v63 }
  0xa2   : > { %v2867_v4 = vmax.f32 %v2611_v0, 0.0  ;;  %v2931_v5 = vmax.f32 %v2675_v1, 0.0 }
  0xa3   : > { %v2740_v6 = vmax.f32 %v2484_v2, 0.0  ;;  %v2804_v7 = vmax.f32 %v2548_v3, 0.0  ;;  %v4358_v2 = vld [vmem:[%s4538_s29 + $0x250] sm:$0xff] }
  0xa4   : > { %v3123_v8 = vpack.c.bf16 %v2867_v4, %v2867_v4  ;;  %v3187_v9 = vpack.c.bf16 %v2931_v5, %v2931_v5  ;;  %v4390_v3 = vld [vmem:[%s4538_s29 + $0x350] sm:$0xff] }
  0xa5   : > { %v2996_v10 = vpack.c.bf16 %v2740_v6, %v2740_v6  ;;  %v3060_v11 = vpack.c.bf16 %v2804_v7, %v2804_v7  ;;  %v1901_v12 = vpop.f32.mrf.mxu2  ;;  %v2061_v13 = vpop.f32.mrf.mxu3 }
  0xa6   : > { %3380 = vst.msk [vmem:[%s4631_s10 + $0x200] sm:$0xf] %vm3251_vm3, %v3123_v8  ;;  %v2352_v16 = vmul.f32 %v4607_v40, %v1901_v12  ;;  %v2416_v17 = vmul.f32 %v4607_v40, %v2061_v13  ;;  %v1584_v18 = vpop.f32.mrf.mxu0  ;;  %v1744_v19 = vpop.f32.mrf.mxu1 }
  0xa7   : > { %3444 = vst.msk [vmem:[%s4631_s10 + $0x300] sm:$0xf] %vm3251_vm3, %v3187_v9  ;;  %v2225_v22 = vmul.f32 %v4607_v40, %v1584_v18  ;;  %v2289_v23 = vmul.f32 %v4607_v40, %v1744_v19 }
  0xa8   : > { %3253 = vst.msk [vmem:[%s4631_s10 + $0x4] sm:$0xf] %vm3251_vm3, %v2996_v10  ;;  %v2612_v24 = vadd.f32 %v4612_v41, %v2352_v16  ;;  %v2676_v25 = vadd.f32 %v4612_v41, %v2416_v17 }
  0xa9   : > { %3317 = vst.msk [vmem:[%s4631_s10 + $0x104] sm:$0xf] %vm3251_vm3, %v3060_v11  ;;  %v2485_v26 = vadd.f32 %v4612_v41, %v2225_v22  ;;  %v2549_v27 = vadd.f32 %v4612_v41, %v2289_v23  ;;  %4163 = vmatmul.msk.bf16.gmra.mxu0 %vm1178_vm2, %v4293_v14  ;;  %4195 = vmatmul.msk.bf16.gmra.mxu1 %vm1178_vm2, %v4325_v15 }
  0xaa   : > { %v2868_v28 = vmax.f32 %v2612_v24, 0.0  ;;  %v2932_v29 = vmax.f32 %v2676_v25, 0.0  ;;  %4227 = vmatmul.msk.bf16.gmra.mxu2 %vm1178_vm2, %v4357_v20  ;;  %4259 = vmatmul.msk.bf16.gmra.mxu3 %vm1178_vm2, %v4389_v21 }
  0xab   : > { %v2741_v30 = vmax.f32 %v2485_v26, 0.0  ;;  %v2805_v31 = vmax.f32 %v2549_v27, 0.0 }
  0xac   : > { %v3124_v32 = vpack.c.bf16 %v2868_v28, %v2868_v28  ;;  %v3188_v33 = vpack.c.bf16 %v2932_v29, %v2932_v29 }
  0xad   : > { %v2997_v34 = vpack.c.bf16 %v2741_v30, %v2741_v30  ;;  %v3061_v35 = vpack.c.bf16 %v2805_v31, %v2805_v31  ;;  %v1904_v36 = vpop.f32.mrf.mxu2  ;;  %v2064_v37 = vpop.f32.mrf.mxu3 }
  0xae   : > { %3381 = vst.msk [vmem:[%s4631_s10 + $0x204] sm:$0xf] %vm3251_vm3, %v3124_v32  ;;  %v2353_v38 = vmul.f32 %v4607_v40, %v1904_v36  ;;  %v2417_v39 = vmul.f32 %v4607_v40, %v2064_v37  ;;  %v1586_v42 = vpop.f32.mrf.mxu0  ;;  %v1746_v43 = vpop.f32.mrf.mxu1 }
  0xaf   : > { %3445 = vst.msk [vmem:[%s4631_s10 + $0x304] sm:$0xf] %vm3251_vm3, %v3188_v33  ;;  %v2226_v44 = vmul.f32 %v4607_v40, %v1586_v42  ;;  %v2290_v45 = vmul.f32 %v4607_v40, %v1746_v43  ;;  %v4295_v42 = vld [vmem:[%s4538_s29 + $0x58] sm:$0xff] }
  0xb0   : > { %3254 = vst.msk [vmem:[%s4631_s10 + $0x8] sm:$0xf] %vm3251_vm3, %v2997_v34  ;;  %v2613_v46 = vadd.f32 %v4612_v41, %v2353_v38  ;;  %v2677_v47 = vadd.f32 %v4612_v41, %v2417_v39  ;;  %v4327_v43 = vld [vmem:[%s4538_s29 + $0x158] sm:$0xff] }
  0xb1   : > { %3318 = vst.msk [vmem:[%s4631_s10 + $0x108] sm:$0xf] %vm3251_vm3, %v3061_v35  ;;  %v2486_v48 = vadd.f32 %v4612_v41, %v2226_v44  ;;  %v2550_v49 = vadd.f32 %v4612_v41, %v2290_v45 }
  0xb2   : > { %v2869_v50 = vmax.f32 %v2613_v46, 0.0  ;;  %v2933_v51 = vmax.f32 %v2677_v47, 0.0 }
  0xb3   : > { %v2742_v52 = vmax.f32 %v2486_v48, 0.0  ;;  %v2806_v53 = vmax.f32 %v2550_v49, 0.0  ;;  %v4359_v48 = vld [vmem:[%s4538_s29 + $0x258] sm:$0xff] }
  0xb4   : > { %v3125_v54 = vpack.c.bf16 %v2869_v50, %v2869_v50  ;;  %v3189_v55 = vpack.c.bf16 %v2933_v51, %v2933_v51  ;;  %v4391_v49 = vld [vmem:[%s4538_s29 + $0x358] sm:$0xff] }
  0xb5   : > { %v2998_v56 = vpack.c.bf16 %v2742_v52, %v2742_v52  ;;  %v3062_v57 = vpack.c.bf16 %v2806_v53, %v2806_v53  ;;  %v1906_v58 = vpop.f32.mrf.mxu2  ;;  %v2066_v59 = vpop.f32.mrf.mxu3 }
  0xb6   : > { %3382 = vst.msk [vmem:[%s4631_s10 + $0x208] sm:$0xf] %vm3251_vm3, %v3125_v54  ;;  %v2354_v62 = vmul.f32 %v4607_v40, %v1906_v58  ;;  %v2418_v63 = vmul.f32 %v4607_v40, %v2066_v59  ;;  %v1589_v0 = vpop.f32.mrf.mxu0  ;;  %v1749_v1 = vpop.f32.mrf.mxu1 }
  0xb7   : > { %3446 = vst.msk [vmem:[%s4631_s10 + $0x308] sm:$0xf] %vm3251_vm3, %v3189_v55  ;;  %v2227_v4 = vmul.f32 %v4607_v40, %v1589_v0  ;;  %v2291_v5 = vmul.f32 %v4607_v40, %v1749_v1 }
  0xb8   : > { %3255 = vst.msk [vmem:[%s4631_s10 + $0xc] sm:$0xf] %vm3251_vm3, %v2998_v56  ;;  %v2614_v6 = vadd.f32 %v4612_v41, %v2354_v62  ;;  %v2678_v7 = vadd.f32 %v4612_v41, %v2418_v63 }
  0xb9   : > { %3319 = vst.msk [vmem:[%s4631_s10 + $0x10c] sm:$0xf] %vm3251_vm3, %v3062_v57  ;;  %v2487_v8 = vadd.f32 %v4612_v41, %v2227_v4  ;;  %v2551_v9 = vadd.f32 %v4612_v41, %v2291_v5  ;;  %4164 = vmatmul.msk.bf16.gmra.mxu0 %vm1178_vm2, %v4294_v60  ;;  %4196 = vmatmul.msk.bf16.gmra.mxu1 %vm1178_vm2, %v4326_v61 }
  0xba   : > { %v2870_v10 = vmax.f32 %v2614_v6, 0.0  ;;  %v2934_v11 = vmax.f32 %v2678_v7, 0.0  ;;  %4228 = vmatmul.msk.bf16.gmra.mxu2 %vm1178_vm2, %v4358_v2  ;;  %4260 = vmatmul.msk.bf16.gmra.mxu3 %vm1178_vm2, %v4390_v3 }
  0xbb   : > { %v2743_v12 = vmax.f32 %v2487_v8, 0.0  ;;  %v2807_v13 = vmax.f32 %v2551_v9, 0.0 }
  0xbc   : > { %v3126_v14 = vpack.c.bf16 %v2870_v10, %v2870_v10  ;;  %v3190_v15 = vpack.c.bf16 %v2934_v11, %v2934_v11 }
  0xbd   : > { %v2999_v16 = vpack.c.bf16 %v2743_v12, %v2743_v12  ;;  %v3063_v17 = vpack.c.bf16 %v2807_v13, %v2807_v13  ;;  %v1909_v18 = vpop.f32.mrf.mxu2  ;;  %v2069_v19 = vpop.f32.mrf.mxu3 }
  0xbe   : > { %3383 = vst.msk [vmem:[%s4631_s10 + $0x20c] sm:$0xf] %vm3251_vm3, %v3126_v14  ;;  %v2355_v20 = vmul.f32 %v4607_v40, %v1909_v18  ;;  %v2419_v21 = vmul.f32 %v4607_v40, %v2069_v19  ;;  %v1591_v22 = vpop.f32.mrf.mxu0  ;;  %v1751_v23 = vpop.f32.mrf.mxu1 }
  0xbf   : > { %3447 = vst.msk [vmem:[%s4631_s10 + $0x30c] sm:$0xf] %vm3251_vm3, %v3190_v15  ;;  %v2228_v24 = vmul.f32 %v4607_v40, %v1591_v22  ;;  %v2292_v25 = vmul.f32 %v4607_v40, %v1751_v23  ;;  %v4296_v22 = vld [vmem:[%s4538_s29 + $0x60] sm:$0xff] }
  0xc0   : > { %3256 = vst.msk [vmem:[%s4631_s10 + $0x10] sm:$0xf] %vm3251_vm3, %v2999_v16  ;;  %v2615_v26 = vadd.f32 %v4612_v41, %v2355_v20  ;;  %v2679_v27 = vadd.f32 %v4612_v41, %v2419_v21  ;;  %v4328_v23 = vld [vmem:[%s4538_s29 + $0x160] sm:$0xff] }
  0xc1   : > { %3320 = vst.msk [vmem:[%s4631_s10 + $0x110] sm:$0xf] %vm3251_vm3, %v3063_v17  ;;  %v2488_v28 = vadd.f32 %v4612_v41, %v2228_v24  ;;  %v2552_v29 = vadd.f32 %v4612_v41, %v2292_v25 }
  0xc2   : > { %v2871_v30 = vmax.f32 %v2615_v26, 0.0  ;;  %v2935_v31 = vmax.f32 %v2679_v27, 0.0 }
  0xc3   : > { %v2744_v32 = vmax.f32 %v2488_v28, 0.0  ;;  %v2808_v33 = vmax.f32 %v2552_v29, 0.0  ;;  %v4360_v28 = vld [vmem:[%s4538_s29 + $0x260] sm:$0xff] }
  0xc4   : > { %v3127_v34 = vpack.c.bf16 %v2871_v30, %v2871_v30  ;;  %v3191_v35 = vpack.c.bf16 %v2935_v31, %v2935_v31  ;;  %v4392_v29 = vld [vmem:[%s4538_s29 + $0x360] sm:$0xff] }
  0xc5   : > { %v3000_v36 = vpack.c.bf16 %v2744_v32, %v2744_v32  ;;  %v3064_v37 = vpack.c.bf16 %v2808_v33, %v2808_v33  ;;  %v1911_v38 = vpop.f32.mrf.mxu2  ;;  %v2071_v39 = vpop.f32.mrf.mxu3 }
  0xc6   : > { %3384 = vst.msk [vmem:[%s4631_s10 + $0x210] sm:$0xf] %vm3251_vm3, %v3127_v34  ;;  %v2356_v44 = vmul.f32 %v4607_v40, %v1911_v38  ;;  %v2420_v45 = vmul.f32 %v4607_v40, %v2071_v39  ;;  %v1594_v46 = vpop.f32.mrf.mxu0  ;;  %v1754_v47 = vpop.f32.mrf.mxu1 }
  0xc7   : > { %3448 = vst.msk [vmem:[%s4631_s10 + $0x310] sm:$0xf] %vm3251_vm3, %v3191_v35  ;;  %v2229_v50 = vmul.f32 %v4607_v40, %v1594_v46  ;;  %v2293_v51 = vmul.f32 %v4607_v40, %v1754_v47 }
  0xc8   : > { %3257 = vst.msk [vmem:[%s4631_s10 + $0x14] sm:$0xf] %vm3251_vm3, %v3000_v36  ;;  %v2616_v52 = vadd.f32 %v4612_v41, %v2356_v44  ;;  %v2680_v53 = vadd.f32 %v4612_v41, %v2420_v45 }
  0xc9   : > { %3321 = vst.msk [vmem:[%s4631_s10 + $0x114] sm:$0xf] %vm3251_vm3, %v3064_v37  ;;  %v2489_v54 = vadd.f32 %v4612_v41, %v2229_v50  ;;  %v2553_v55 = vadd.f32 %v4612_v41, %v2293_v51  ;;  %4165 = vmatmul.msk.bf16.gmra.mxu0 %vm1178_vm2, %v4295_v42  ;;  %4197 = vmatmul.msk.bf16.gmra.mxu1 %vm1178_vm2, %v4327_v43 }
  0xca   : > { %v2872_v56 = vmax.f32 %v2616_v52, 0.0  ;;  %v2936_v57 = vmax.f32 %v2680_v53, 0.0  ;;  %4229 = vmatmul.msk.bf16.gmra.mxu2 %vm1178_vm2, %v4359_v48  ;;  %4261 = vmatmul.msk.bf16.gmra.mxu3 %vm1178_vm2, %v4391_v49 }
  0xcb   : > { %v2745_v58 = vmax.f32 %v2489_v54, 0.0  ;;  %v2809_v59 = vmax.f32 %v2553_v55, 0.0 }
  0xcc   : > { %v3128_v60 = vpack.c.bf16 %v2872_v56, %v2872_v56  ;;  %v3192_v61 = vpack.c.bf16 %v2936_v57, %v2936_v57 }
  0xcd   : > { %v3001_v62 = vpack.c.bf16 %v2745_v58, %v2745_v58  ;;  %v3065_v63 = vpack.c.bf16 %v2809_v59, %v2809_v59  ;;  %v1914_v0 = vpop.f32.mrf.mxu2  ;;  %v2074_v1 = vpop.f32.mrf.mxu3 }
  0xce   : > { %3385 = vst.msk [vmem:[%s4631_s10 + $0x214] sm:$0xf] %vm3251_vm3, %v3128_v60  ;;  %v2357_v2 = vmul.f32 %v4607_v40, %v1914_v0  ;;  %v2421_v3 = vmul.f32 %v4607_v40, %v2074_v1  ;;  %v1596_v4 = vpop.f32.mrf.mxu0  ;;  %v1756_v5 = vpop.f32.mrf.mxu1 }
  0xcf   : > { %3449 = vst.msk [vmem:[%s4631_s10 + $0x314] sm:$0xf] %vm3251_vm3, %v3192_v61  ;;  %v2230_v6 = vmul.f32 %v4607_v40, %v1596_v4  ;;  %v2294_v7 = vmul.f32 %v4607_v40, %v1756_v5  ;;  %v4297_v4 = vld [vmem:[%s4538_s29 + $0x68] sm:$0xff] }
  0xd0   : > { %3258 = vst.msk [vmem:[%s4631_s10 + $0x18] sm:$0xf] %vm3251_vm3, %v3001_v62  ;;  %v2617_v8 = vadd.f32 %v4612_v41, %v2357_v2  ;;  %v2681_v9 = vadd.f32 %v4612_v41, %v2421_v3  ;;  %v4329_v5 = vld [vmem:[%s4538_s29 + $0x168] sm:$0xff] }
  0xd1   : > { %3322 = vst.msk [vmem:[%s4631_s10 + $0x118] sm:$0xf] %vm3251_vm3, %v3065_v63  ;;  %v2490_v10 = vadd.f32 %v4612_v41, %v2230_v6  ;;  %v2554_v11 = vadd.f32 %v4612_v41, %v2294_v7 }
  0xd2   : > { %v2873_v12 = vmax.f32 %v2617_v8, 0.0  ;;  %v2937_v13 = vmax.f32 %v2681_v9, 0.0 }
  0xd3   : > { %v2746_v14 = vmax.f32 %v2490_v10, 0.0  ;;  %v2810_v15 = vmax.f32 %v2554_v11, 0.0  ;;  %v4361_v10 = vld [vmem:[%s4538_s29 + $0x268] sm:$0xff] }
  0xd4   : > { %v3129_v16 = vpack.c.bf16 %v2873_v12, %v2873_v12  ;;  %v3193_v17 = vpack.c.bf16 %v2937_v13, %v2937_v13  ;;  %v4393_v11 = vld [vmem:[%s4538_s29 + $0x368] sm:$0xff] }
  0xd5   : > { %v3002_v18 = vpack.c.bf16 %v2746_v14, %v2746_v14  ;;  %v3066_v19 = vpack.c.bf16 %v2810_v15, %v2810_v15  ;;  %v1916_v20 = vpop.f32.mrf.mxu2  ;;  %v2076_v21 = vpop.f32.mrf.mxu3 }
  0xd6   : > { %3386 = vst.msk [vmem:[%s4631_s10 + $0x218] sm:$0xf] %vm3251_vm3, %v3129_v16  ;;  %v2358_v24 = vmul.f32 %v4607_v40, %v1916_v20  ;;  %v2422_v25 = vmul.f32 %v4607_v40, %v2076_v21  ;;  %v1599_v26 = vpop.f32.mrf.mxu0  ;;  %v1759_v27 = vpop.f32.mrf.mxu1 }
  0xd7   : > { %3450 = vst.msk [vmem:[%s4631_s10 + $0x318] sm:$0xf] %vm3251_vm3, %v3193_v17  ;;  %v2231_v30 = vmul.f32 %v4607_v40, %v1599_v26  ;;  %v2295_v31 = vmul.f32 %v4607_v40, %v1759_v27 }
  0xd8   : > { %3259 = vst.msk [vmem:[%s4631_s10 + $0x1c] sm:$0xf] %vm3251_vm3, %v3002_v18  ;;  %v2618_v32 = vadd.f32 %v4612_v41, %v2358_v24  ;;  %v2682_v33 = vadd.f32 %v4612_v41, %v2422_v25 }
  0xd9   : > { %3323 = vst.msk [vmem:[%s4631_s10 + $0x11c] sm:$0xf] %vm3251_vm3, %v3066_v19  ;;  %v2491_v34 = vadd.f32 %v4612_v41, %v2231_v30  ;;  %v2555_v35 = vadd.f32 %v4612_v41, %v2295_v31  ;;  %4166 = vmatmul.msk.bf16.gmra.mxu0 %vm1178_vm2, %v4296_v22  ;;  %4198 = vmatmul.msk.bf16.gmra.mxu1 %vm1178_vm2, %v4328_v23 }
  0xda   : > { %v2874_v36 = vmax.f32 %v2618_v32, 0.0  ;;  %v2938_v37 = vmax.f32 %v2682_v33, 0.0  ;;  %4230 = vmatmul.msk.bf16.gmra.mxu2 %vm1178_vm2, %v4360_v28  ;;  %4262 = vmatmul.msk.bf16.gmra.mxu3 %vm1178_vm2, %v4392_v29 }
  0xdb   : > { %v2747_v38 = vmax.f32 %v2491_v34, 0.0  ;;  %v2811_v39 = vmax.f32 %v2555_v35, 0.0 }
  0xdc   : > { %v3130_v42 = vpack.c.bf16 %v2874_v36, %v2874_v36  ;;  %v3194_v43 = vpack.c.bf16 %v2938_v37, %v2938_v37 }
  0xdd   : > { %v3003_v44 = vpack.c.bf16 %v2747_v38, %v2747_v38  ;;  %v3067_v45 = vpack.c.bf16 %v2811_v39, %v2811_v39  ;;  %v1919_v46 = vpop.f32.mrf.mxu2  ;;  %v2079_v47 = vpop.f32.mrf.mxu3 }
  0xde   : > { %3387 = vst.msk [vmem:[%s4631_s10 + $0x21c] sm:$0xf] %vm3251_vm3, %v3130_v42  ;;  %v2359_v48 = vmul.f32 %v4607_v40, %v1919_v46  ;;  %v2423_v49 = vmul.f32 %v4607_v40, %v2079_v47  ;;  %v1601_v50 = vpop.f32.mrf.mxu0  ;;  %v1761_v51 = vpop.f32.mrf.mxu1 }
  0xdf   : > { %3451 = vst.msk [vmem:[%s4631_s10 + $0x31c] sm:$0xf] %vm3251_vm3, %v3194_v43  ;;  %v2232_v52 = vmul.f32 %v4607_v40, %v1601_v50  ;;  %v2296_v53 = vmul.f32 %v4607_v40, %v1761_v51  ;;  %v4298_v50 = vld [vmem:[%s4538_s29 + $0x70] sm:$0xff] }
  0xe0   : > { %3260 = vst.msk [vmem:[%s4631_s10 + $0x20] sm:$0xf] %vm3251_vm3, %v3003_v44  ;;  %v2619_v54 = vadd.f32 %v4612_v41, %v2359_v48  ;;  %v2683_v55 = vadd.f32 %v4612_v41, %v2423_v49  ;;  %v4330_v51 = vld [vmem:[%s4538_s29 + $0x170] sm:$0xff] }
  0xe1   : > { %3324 = vst.msk [vmem:[%s4631_s10 + $0x120] sm:$0xf] %vm3251_vm3, %v3067_v45  ;;  %v2492_v56 = vadd.f32 %v4612_v41, %v2232_v52  ;;  %v2556_v57 = vadd.f32 %v4612_v41, %v2296_v53 }
  0xe2   : > { %v2875_v58 = vmax.f32 %v2619_v54, 0.0  ;;  %v2939_v59 = vmax.f32 %v2683_v55, 0.0 }
  0xe3   : > { %v2748_v60 = vmax.f32 %v2492_v56, 0.0  ;;  %v2812_v61 = vmax.f32 %v2556_v57, 0.0  ;;  %v4362_v56 = vld [vmem:[%s4538_s29 + $0x270] sm:$0xff] }
  0xe4   : > { %v3131_v62 = vpack.c.bf16 %v2875_v58, %v2875_v58  ;;  %v3195_v63 = vpack.c.bf16 %v2939_v59, %v2939_v59  ;;  %v4394_v57 = vld [vmem:[%s4538_s29 + $0x370] sm:$0xff] }
  0xe5   : > { %v3004_v0 = vpack.c.bf16 %v2748_v60, %v2748_v60  ;;  %v3068_v1 = vpack.c.bf16 %v2812_v61, %v2812_v61  ;;  %v1921_v2 = vpop.f32.mrf.mxu2  ;;  %v2081_v3 = vpop.f32.mrf.mxu3 }
  0xe6   : > { %3388 = vst.msk [vmem:[%s4631_s10 + $0x220] sm:$0xf] %vm3251_vm3, %v3131_v62  ;;  %v2360_v6 = vmul.f32 %v4607_v40, %v1921_v2  ;;  %v2424_v7 = vmul.f32 %v4607_v40, %v2081_v3  ;;  %v1604_v8 = vpop.f32.mrf.mxu0  ;;  %v1764_v9 = vpop.f32.mrf.mxu1 }
  0xe7   : > { %3452 = vst.msk [vmem:[%s4631_s10 + $0x320] sm:$0xf] %vm3251_vm3, %v3195_v63  ;;  %v2233_v12 = vmul.f32 %v4607_v40, %v1604_v8  ;;  %v2297_v13 = vmul.f32 %v4607_v40, %v1764_v9 }
  0xe8   : > { %3261 = vst.msk [vmem:[%s4631_s10 + $0x24] sm:$0xf] %vm3251_vm3, %v3004_v0  ;;  %v2620_v14 = vadd.f32 %v4612_v41, %v2360_v6  ;;  %v2684_v15 = vadd.f32 %v4612_v41, %v2424_v7 }
  0xe9   : > { %3325 = vst.msk [vmem:[%s4631_s10 + $0x124] sm:$0xf] %vm3251_vm3, %v3068_v1  ;;  %v2493_v16 = vadd.f32 %v4612_v41, %v2233_v12  ;;  %v2557_v17 = vadd.f32 %v4612_v41, %v2297_v13  ;;  %4167 = vmatmul.msk.bf16.gmra.mxu0 %vm1178_vm2, %v4297_v4  ;;  %4199 = vmatmul.msk.bf16.gmra.mxu1 %vm1178_vm2, %v4329_v5 }
  0xea   : > { %v2876_v18 = vmax.f32 %v2620_v14, 0.0  ;;  %v2940_v19 = vmax.f32 %v2684_v15, 0.0  ;;  %4231 = vmatmul.msk.bf16.gmra.mxu2 %vm1178_vm2, %v4361_v10  ;;  %4263 = vmatmul.msk.bf16.gmra.mxu3 %vm1178_vm2, %v4393_v11 }
  0xeb   : > { %v2749_v20 = vmax.f32 %v2493_v16, 0.0  ;;  %v2813_v21 = vmax.f32 %v2557_v17, 0.0 }
  0xec   : > { %v3132_v22 = vpack.c.bf16 %v2876_v18, %v2876_v18  ;;  %v3196_v23 = vpack.c.bf16 %v2940_v19, %v2940_v19 }
  0xed   : > { %v3005_v24 = vpack.c.bf16 %v2749_v20, %v2749_v20  ;;  %v3069_v25 = vpack.c.bf16 %v2813_v21, %v2813_v21  ;;  %v1924_v26 = vpop.f32.mrf.mxu2  ;;  %v2084_v27 = vpop.f32.mrf.mxu3 }
  0xee   : > { %3389 = vst.msk [vmem:[%s4631_s10 + $0x224] sm:$0xf] %vm3251_vm3, %v3132_v22  ;;  %v2361_v28 = vmul.f32 %v4607_v40, %v1924_v26  ;;  %v2425_v29 = vmul.f32 %v4607_v40, %v2084_v27  ;;  %v1606_v30 = vpop.f32.mrf.mxu0  ;;  %v1766_v31 = vpop.f32.mrf.mxu1 }
  0xef   : > { %3453 = vst.msk [vmem:[%s4631_s10 + $0x324] sm:$0xf] %vm3251_vm3, %v3196_v23  ;;  %v2234_v32 = vmul.f32 %v4607_v40, %v1606_v30  ;;  %v2298_v33 = vmul.f32 %v4607_v40, %v1766_v31  ;;  %v4299_v30 = vld [vmem:[%s4538_s29 + $0x78] sm:$0xff] }
  0xf0   : > { %3262 = vst.msk [vmem:[%s4631_s10 + $0x28] sm:$0xf] %vm3251_vm3, %v3005_v24  ;;  %v2621_v34 = vadd.f32 %v4612_v41, %v2361_v28  ;;  %v2685_v35 = vadd.f32 %v4612_v41, %v2425_v29  ;;  %v4331_v31 = vld [vmem:[%s4538_s29 + $0x178] sm:$0xff] }
  0xf1   : > { %3326 = vst.msk [vmem:[%s4631_s10 + $0x128] sm:$0xf] %vm3251_vm3, %v3069_v25  ;;  %v2494_v36 = vadd.f32 %v4612_v41, %v2234_v32  ;;  %v2558_v37 = vadd.f32 %v4612_v41, %v2298_v33 }
  0xf2   : > { %v2877_v38 = vmax.f32 %v2621_v34, 0.0  ;;  %v2941_v39 = vmax.f32 %v2685_v35, 0.0 }
  0xf3   : > { %v2750_v42 = vmax.f32 %v2494_v36, 0.0  ;;  %v2814_v43 = vmax.f32 %v2558_v37, 0.0  ;;  %v4363_v36 = vld [vmem:[%s4538_s29 + $0x278] sm:$0xff] }
  0xf4   : > { %v3133_v44 = vpack.c.bf16 %v2877_v38, %v2877_v38  ;;  %v3197_v45 = vpack.c.bf16 %v2941_v39, %v2941_v39  ;;  %v4395_v37 = vld [vmem:[%s4538_s29 + $0x378] sm:$0xff] }
  0xf5   : > { %v3006_v46 = vpack.c.bf16 %v2750_v42, %v2750_v42  ;;  %v3070_v47 = vpack.c.bf16 %v2814_v43, %v2814_v43  ;;  %v1926_v48 = vpop.f32.mrf.mxu2  ;;  %v2086_v49 = vpop.f32.mrf.mxu3 }
  0xf6   : > { %3390 = vst.msk [vmem:[%s4631_s10 + $0x228] sm:$0xf] %vm3251_vm3, %v3133_v44  ;;  %v2362_v52 = vmul.f32 %v4607_v40, %v1926_v48  ;;  %v2426_v53 = vmul.f32 %v4607_v40, %v2086_v49  ;;  %v1609_v54 = vpop.f32.mrf.mxu0  ;;  %v1769_v55 = vpop.f32.mrf.mxu1 }
  0xf7   : > { %3454 = vst.msk [vmem:[%s4631_s10 + $0x328] sm:$0xf] %vm3251_vm3, %v3197_v45  ;;  %v2235_v58 = vmul.f32 %v4607_v40, %v1609_v54  ;;  %v2299_v59 = vmul.f32 %v4607_v40, %v1769_v55 }
  0xf8   : > { %3263 = vst.msk [vmem:[%s4631_s10 + $0x2c] sm:$0xf] %vm3251_vm3, %v3006_v46  ;;  %v2622_v60 = vadd.f32 %v4612_v41, %v2362_v52  ;;  %v2686_v61 = vadd.f32 %v4612_v41, %v2426_v53 }
  0xf9   : > { %3327 = vst.msk [vmem:[%s4631_s10 + $0x12c] sm:$0xf] %vm3251_vm3, %v3070_v47  ;;  %v2495_v62 = vadd.f32 %v4612_v41, %v2235_v58  ;;  %v2559_v63 = vadd.f32 %v4612_v41, %v2299_v59  ;;  %4168 = vmatmul.msk.bf16.gmra.mxu0 %vm1178_vm2, %v4298_v50  ;;  %4200 = vmatmul.msk.bf16.gmra.mxu1 %vm1178_vm2, %v4330_v51 }
  0xfa   : > { %v2878_v0 = vmax.f32 %v2622_v60, 0.0  ;;  %v2942_v1 = vmax.f32 %v2686_v61, 0.0  ;;  %4232 = vmatmul.msk.bf16.gmra.mxu2 %vm1178_vm2, %v4362_v56  ;;  %4264 = vmatmul.msk.bf16.gmra.mxu3 %vm1178_vm2, %v4394_v57 }
  0xfb   : > { %v2751_v2 = vmax.f32 %v2495_v62, 0.0  ;;  %v2815_v3 = vmax.f32 %v2559_v63, 0.0 }
  0xfc   : > { %v3134_v4 = vpack.c.bf16 %v2878_v0, %v2878_v0  ;;  %v3198_v5 = vpack.c.bf16 %v2942_v1, %v2942_v1 }
  0xfd   : > { %v3007_v6 = vpack.c.bf16 %v2751_v2, %v2751_v2  ;;  %v3071_v7 = vpack.c.bf16 %v2815_v3, %v2815_v3  ;;  %v1929_v8 = vpop.f32.mrf.mxu2  ;;  %v2089_v9 = vpop.f32.mrf.mxu3 }
  0xfe   : > { %3391 = vst.msk [vmem:[%s4631_s10 + $0x22c] sm:$0xf] %vm3251_vm3, %v3134_v4  ;;  %v2363_v10 = vmul.f32 %v4607_v40, %v1929_v8  ;;  %v2427_v11 = vmul.f32 %v4607_v40, %v2089_v9  ;;  %v1611_v12 = vpop.f32.mrf.mxu0  ;;  %v1771_v13 = vpop.f32.mrf.mxu1 }
  0xff   : > { %3455 = vst.msk [vmem:[%s4631_s10 + $0x32c] sm:$0xf] %vm3251_vm3, %v3198_v5  ;;  %v2236_v14 = vmul.f32 %v4607_v40, %v1611_v12  ;;  %v2300_v15 = vmul.f32 %v4607_v40, %v1771_v13  ;;  %v4300_v12 = vld [vmem:[%s4538_s29 + $0x80] sm:$0xff] }
 0x100   : > { %3264 = vst.msk [vmem:[%s4631_s10 + $0x30] sm:$0xf] %vm3251_vm3, %v3007_v6  ;;  %v2623_v16 = vadd.f32 %v4612_v41, %v2363_v10  ;;  %v2687_v17 = vadd.f32 %v4612_v41, %v2427_v11  ;;  %v4332_v13 = vld [vmem:[%s4538_s29 + $0x180] sm:$0xff] }
 0x101   : > { %3328 = vst.msk [vmem:[%s4631_s10 + $0x130] sm:$0xf] %vm3251_vm3, %v3071_v7  ;;  %v2496_v18 = vadd.f32 %v4612_v41, %v2236_v14  ;;  %v2560_v19 = vadd.f32 %v4612_v41, %v2300_v15 }
 0x102   : > { %v2879_v20 = vmax.f32 %v2623_v16, 0.0  ;;  %v2943_v21 = vmax.f32 %v2687_v17, 0.0 }
 0x103   : > { %v2752_v22 = vmax.f32 %v2496_v18, 0.0  ;;  %v2816_v23 = vmax.f32 %v2560_v19, 0.0  ;;  %v4364_v18 = vld [vmem:[%s4538_s29 + $0x280] sm:$0xff] }
 0x104   : > { %v3135_v24 = vpack.c.bf16 %v2879_v20, %v2879_v20  ;;  %v3199_v25 = vpack.c.bf16 %v2943_v21, %v2943_v21  ;;  %v4396_v19 = vld [vmem:[%s4538_s29 + $0x380] sm:$0xff] }
 0x105   : > { %v3008_v26 = vpack.c.bf16 %v2752_v22, %v2752_v22  ;;  %v3072_v27 = vpack.c.bf16 %v2816_v23, %v2816_v23  ;;  %v1931_v28 = vpop.f32.mrf.mxu2  ;;  %v2091_v29 = vpop.f32.mrf.mxu3 }
 0x106   : > { %3392 = vst.msk [vmem:[%s4631_s10 + $0x230] sm:$0xf] %vm3251_vm3, %v3135_v24  ;;  %v2364_v32 = vmul.f32 %v4607_v40, %v1931_v28  ;;  %v2428_v33 = vmul.f32 %v4607_v40, %v2091_v29  ;;  %v1614_v34 = vpop.f32.mrf.mxu0  ;;  %v1774_v35 = vpop.f32.mrf.mxu1 }
 0x107   : > { %3456 = vst.msk [vmem:[%s4631_s10 + $0x330] sm:$0xf] %vm3251_vm3, %v3199_v25  ;;  %v2237_v38 = vmul.f32 %v4607_v40, %v1614_v34  ;;  %v2301_v39 = vmul.f32 %v4607_v40, %v1774_v35 }
 0x108   : > { %3265 = vst.msk [vmem:[%s4631_s10 + $0x34] sm:$0xf] %vm3251_vm3, %v3008_v26  ;;  %v2624_v42 = vadd.f32 %v4612_v41, %v2364_v32  ;;  %v2688_v43 = vadd.f32 %v4612_v41, %v2428_v33 }
 0x109   : > { %3329 = vst.msk [vmem:[%s4631_s10 + $0x134] sm:$0xf] %vm3251_vm3, %v3072_v27  ;;  %v2497_v44 = vadd.f32 %v4612_v41, %v2237_v38  ;;  %v2561_v45 = vadd.f32 %v4612_v41, %v2301_v39  ;;  %4169 = vmatmul.msk.bf16.gmra.mxu0 %vm1178_vm2, %v4299_v30  ;;  %4201 = vmatmul.msk.bf16.gmra.mxu1 %vm1178_vm2, %v4331_v31 }
 0x10a   : > { %v2880_v46 = vmax.f32 %v2624_v42, 0.0  ;;  %v2944_v47 = vmax.f32 %v2688_v43, 0.0  ;;  %4233 = vmatmul.msk.bf16.gmra.mxu2 %vm1178_vm2, %v4363_v36  ;;  %4265 = vmatmul.msk.bf16.gmra.mxu3 %vm1178_vm2, %v4395_v37 }
 0x10b   : > { %v2753_v48 = vmax.f32 %v2497_v44, 0.0  ;;  %v2817_v49 = vmax.f32 %v2561_v45, 0.0 }
 0x10c   : > { %v3136_v50 = vpack.c.bf16 %v2880_v46, %v2880_v46  ;;  %v3200_v51 = vpack.c.bf16 %v2944_v47, %v2944_v47 }
 0x10d   : > { %v3009_v52 = vpack.c.bf16 %v2753_v48, %v2753_v48  ;;  %v3073_v53 = vpack.c.bf16 %v2817_v49, %v2817_v49  ;;  %v1934_v54 = vpop.f32.mrf.mxu2  ;;  %v2094_v55 = vpop.f32.mrf.mxu3 }
 0x10e   : > { %3393 = vst.msk [vmem:[%s4631_s10 + $0x234] sm:$0xf] %vm3251_vm3, %v3136_v50  ;;  %v2365_v56 = vmul.f32 %v4607_v40, %v1934_v54  ;;  %v2429_v57 = vmul.f32 %v4607_v40, %v2094_v55  ;;  %v1616_v58 = vpop.f32.mrf.mxu0  ;;  %v1776_v59 = vpop.f32.mrf.mxu1 }
 0x10f   : > { %3457 = vst.msk [vmem:[%s4631_s10 + $0x334] sm:$0xf] %vm3251_vm3, %v3200_v51  ;;  %v2238_v60 = vmul.f32 %v4607_v40, %v1616_v58  ;;  %v2302_v61 = vmul.f32 %v4607_v40, %v1776_v59  ;;  %v4301_v58 = vld [vmem:[%s4538_s29 + $0x88] sm:$0xff] }
 0x110   : > { %3266 = vst.msk [vmem:[%s4631_s10 + $0x38] sm:$0xf] %vm3251_vm3, %v3009_v52  ;;  %v2625_v62 = vadd.f32 %v4612_v41, %v2365_v56  ;;  %v2689_v63 = vadd.f32 %v4612_v41, %v2429_v57  ;;  %v4333_v59 = vld [vmem:[%s4538_s29 + $0x188] sm:$0xff] }
 0x111   : > { %3330 = vst.msk [vmem:[%s4631_s10 + $0x138] sm:$0xf] %vm3251_vm3, %v3073_v53  ;;  %v2498_v0 = vadd.f32 %v4612_v41, %v2238_v60  ;;  %v2562_v1 = vadd.f32 %v4612_v41, %v2302_v61 }
 0x112   : > { %v2881_v2 = vmax.f32 %v2625_v62, 0.0  ;;  %v2945_v3 = vmax.f32 %v2689_v63, 0.0 }
 0x113   : > { %v2754_v4 = vmax.f32 %v2498_v0, 0.0  ;;  %v2818_v5 = vmax.f32 %v2562_v1, 0.0  ;;  %v4365_v0 = vld [vmem:[%s4538_s29 + $0x288] sm:$0xff] }
 0x114   : > { %v3137_v6 = vpack.c.bf16 %v2881_v2, %v2881_v2  ;;  %v3201_v7 = vpack.c.bf16 %v2945_v3, %v2945_v3  ;;  %v4397_v1 = vld [vmem:[%s4538_s29 + $0x388] sm:$0xff] }
 0x115   : > { %v3010_v8 = vpack.c.bf16 %v2754_v4, %v2754_v4  ;;  %v3074_v9 = vpack.c.bf16 %v2818_v5, %v2818_v5  ;;  %v1936_v10 = vpop.f32.mrf.mxu2  ;;  %v2096_v11 = vpop.f32.mrf.mxu3 }
 0x116   : > { %3394 = vst.msk [vmem:[%s4631_s10 + $0x238] sm:$0xf] %vm3251_vm3, %v3137_v6  ;;  %v2366_v14 = vmul.f32 %v4607_v40, %v1936_v10  ;;  %v2430_v15 = vmul.f32 %v4607_v40, %v2096_v11  ;;  %v1619_v16 = vpop.f32.mrf.mxu0  ;;  %v1779_v17 = vpop.f32.mrf.mxu1 }
 0x117   : > { %3458 = vst.msk [vmem:[%s4631_s10 + $0x338] sm:$0xf] %vm3251_vm3, %v3201_v7  ;;  %v2239_v20 = vmul.f32 %v4607_v40, %v1619_v16  ;;  %v2303_v21 = vmul.f32 %v4607_v40, %v1779_v17  ;;  %v4994_v16 = vld [vmem:[%s5878_s2] ss:$0 sm:$0xff] }
 0x118   : > { %3267 = vst.msk [vmem:[%s4631_s10 + $0x3c] sm:$0xf] %vm3251_vm3, %v3010_v8  ;;  %v2626_v22 = vadd.f32 %v4612_v41, %v2366_v14  ;;  %v2690_v23 = vadd.f32 %v4612_v41, %v2430_v15 }
 0x119   : > { %3331 = vst.msk [vmem:[%s4631_s10 + $0x13c] sm:$0xf] %vm3251_vm3, %v3074_v9  ;;  %v2499_v24 = vadd.f32 %v4612_v41, %v2239_v20  ;;  %v2563_v25 = vadd.f32 %v4612_v41, %v2303_v21  ;;  %4170 = vmatmul.msk.bf16.gmra.mxu0 %vm1178_vm2, %v4300_v12  ;;  %4202 = vmatmul.msk.bf16.gmra.mxu1 %vm1178_vm2, %v4332_v13 }
 0x11a   : > { %v2882_v26 = vmax.f32 %v2626_v22, 0.0  ;;  %v2946_v27 = vmax.f32 %v2690_v23, 0.0  ;;  %4234 = vmatmul.msk.bf16.gmra.mxu2 %vm1178_vm2, %v4364_v18  ;;  %4266 = vmatmul.msk.bf16.gmra.mxu3 %vm1178_vm2, %v4396_v19  ;;  %v5007_v23 = vld [vmem:[%s5879_s3] ss:$0 sm:$0xff] }
 0x11b   : > { %v2755_v28 = vmax.f32 %v2499_v24, 0.0  ;;  %v2819_v29 = vmax.f32 %v2563_v25, 0.0 }
 0x11c   : > { %v3138_v30 = vpack.c.bf16 %v2882_v26, %v2882_v26  ;;  %v3202_v31 = vpack.c.bf16 %v2946_v27, %v2946_v27 }
 0x11d   : > { %v3011_v32 = vpack.c.bf16 %v2755_v28, %v2755_v28  ;;  %v3075_v33 = vpack.c.bf16 %v2819_v29, %v2819_v29  ;;  %v1939_v34 = vpop.f32.mrf.mxu2  ;;  %v2099_v35 = vpop.f32.mrf.mxu3 }
 0x11e   : > { %3395 = vst.msk [vmem:[%s4631_s10 + $0x23c] sm:$0xf] %vm3251_vm3, %v3138_v30  ;;  %v2367_v36 = vmul.f32 %v4607_v40, %v1939_v34  ;;  %v2431_v37 = vmul.f32 %v4607_v40, %v2099_v35  ;;  %v1621_v38 = vpop.f32.mrf.mxu0  ;;  %v1781_v39 = vpop.f32.mrf.mxu1 }
 0x11f   : > { %3459 = vst.msk [vmem:[%s4631_s10 + $0x33c] sm:$0xf] %vm3251_vm3, %v3202_v31  ;;  %v2240_v42 = vmul.f32 %v4607_v40, %v1621_v38  ;;  %v2304_v43 = vmul.f32 %v4607_v40, %v1781_v39  ;;  %v4302_v38 = vld [vmem:[%s4538_s29 + $0x90] sm:$0xff] }
 0x120   : > { %3268 = vst.msk [vmem:[%s4631_s10 + $0x40] sm:$0xf] %vm3251_vm3, %v3011_v32  ;;  %v2627_v44 = vadd.f32 %v4612_v41, %v2367_v36  ;;  %v2691_v45 = vadd.f32 %v4612_v41, %v2431_v37  ;;  %v4334_v39 = vld [vmem:[%s4538_s29 + $0x190] sm:$0xff] }
 0x121   : > { %3332 = vst.msk [vmem:[%s4631_s10 + $0x140] sm:$0xf] %vm3251_vm3, %v3075_v33  ;;  %v2500_v46 = vadd.f32 %v4612_v41, %v2240_v42  ;;  %v2564_v47 = vadd.f32 %v4612_v41, %v2304_v43 }
 0x122   : > { %v2883_v48 = vmax.f32 %v2627_v44, 0.0  ;;  %v2947_v49 = vmax.f32 %v2691_v45, 0.0 }
 0x123   : > { %v2756_v50 = vmax.f32 %v2500_v46, 0.0  ;;  %v2820_v51 = vmax.f32 %v2564_v47, 0.0  ;;  %v4366_v46 = vld [vmem:[%s4538_s29 + $0x290] sm:$0xff] }
 0x124   : > { %v3139_v52 = vpack.c.bf16 %v2883_v48, %v2883_v48  ;;  %v3203_v53 = vpack.c.bf16 %v2947_v49, %v2947_v49  ;;  %v4398_v47 = vld [vmem:[%s4538_s29 + $0x390] sm:$0xff] }
 0x125   : > { %v3012_v54 = vpack.c.bf16 %v2756_v50, %v2756_v50  ;;  %v3076_v55 = vpack.c.bf16 %v2820_v51, %v2820_v51  ;;  %v1941_v56 = vpop.f32.mrf.mxu2  ;;  %v2101_v57 = vpop.f32.mrf.mxu3 }
 0x126   : > { %3396 = vst.msk [vmem:[%s4631_s10 + $0x240] sm:$0xf] %vm3251_vm3, %v3139_v52  ;;  %v2368_v60 = vmul.f32 %v4607_v40, %v1941_v56  ;;  %v2432_v61 = vmul.f32 %v4607_v40, %v2101_v57  ;;  %v1624_v62 = vpop.f32.mrf.mxu0  ;;  %v1784_v63 = vpop.f32.mrf.mxu1 }
 0x127   : > { %3460 = vst.msk [vmem:[%s4631_s10 + $0x340] sm:$0xf] %vm3251_vm3, %v3203_v53  ;;  %v2241_v2 = vmul.f32 %v4607_v40, %v1624_v62  ;;  %v2305_v3 = vmul.f32 %v4607_v40, %v1784_v63 }
 0x128   : > { %3269 = vst.msk [vmem:[%s4631_s10 + $0x44] sm:$0xf] %vm3251_vm3, %v3012_v54  ;;  %v2628_v4 = vadd.f32 %v4612_v41, %v2368_v60  ;;  %v2692_v5 = vadd.f32 %v4612_v41, %v2432_v61 }
 0x129   : > { %3333 = vst.msk [vmem:[%s4631_s10 + $0x144] sm:$0xf] %vm3251_vm3, %v3076_v55  ;;  %v2501_v6 = vadd.f32 %v4612_v41, %v2241_v2  ;;  %v2565_v7 = vadd.f32 %v4612_v41, %v2305_v3  ;;  %4171 = vmatmul.msk.bf16.gmra.mxu0 %vm1178_vm2, %v4301_v58  ;;  %4203 = vmatmul.msk.bf16.gmra.mxu1 %vm1178_vm2, %v4333_v59 }
 0x12a   : > { %v2884_v8 = vmax.f32 %v2628_v4, 0.0  ;;  %v2948_v9 = vmax.f32 %v2692_v5, 0.0  ;;  %4235 = vmatmul.msk.bf16.gmra.mxu2 %vm1178_vm2, %v4365_v0  ;;  %4267 = vmatmul.msk.bf16.gmra.mxu3 %vm1178_vm2, %v4397_v1 }
 0x12b   : > { %v2757_v40 = vmax.f32 %v2501_v6, 0.0  ;;  %v2821_v10 = vmax.f32 %v2565_v7, 0.0 }
 0x12c   : > { %v3140_v11 = vpack.c.bf16 %v2884_v8, %v2884_v8  ;;  %v3204_v12 = vpack.c.bf16 %v2948_v9, %v2948_v9 }
 0x12d   : > { %v3013_v13 = vpack.c.bf16 %v2757_v40, %v2757_v40  ;;  %v3077_v14 = vpack.c.bf16 %v2821_v10, %v2821_v10  ;;  %v1944_v41 = vpop.f32.mrf.mxu2  ;;  %v2104_v15 = vpop.f32.mrf.mxu3 }
 0x12e   : > { %3397 = vst.msk [vmem:[%s4631_s10 + $0x244] sm:$0xf] %vm3251_vm3, %v3140_v11  ;;  %v2369_v17 = vmul.f32 %v4994_v16, %v1944_v41  ;;  %v2433_v18 = vmul.f32 %v4994_v16, %v2104_v15  ;;  %v1626_v19 = vpop.f32.mrf.mxu0  ;;  %v1786_v20 = vpop.f32.mrf.mxu1 }
 0x12f   : > { %3461 = vst.msk [vmem:[%s4631_s10 + $0x344] sm:$0xf] %vm3251_vm3, %v3204_v12  ;;  %v2242_v21 = vmul.f32 %v4994_v16, %v1626_v19  ;;  %v2306_v22 = vmul.f32 %v4994_v16, %v1786_v20  ;;  %v4303_v19 = vld [vmem:[%s4538_s29 + $0x98] sm:$0xff] }
 0x130   : > { %3270 = vst.msk [vmem:[%s4631_s10 + $0x48] sm:$0xf] %vm3251_vm3, %v3013_v13  ;;  %v2629_v24 = vadd.f32 %v5007_v23, %v2369_v17  ;;  %v2693_v25 = vadd.f32 %v5007_v23, %v2433_v18  ;;  %v4335_v20 = vld [vmem:[%s4538_s29 + $0x198] sm:$0xff] }
 0x131   : > { %3334 = vst.msk [vmem:[%s4631_s10 + $0x148] sm:$0xf] %vm3251_vm3, %v3077_v14  ;;  %v2502_v26 = vadd.f32 %v5007_v23, %v2242_v21  ;;  %v2566_v27 = vadd.f32 %v5007_v23, %v2306_v22 }
 0x132   : > { %v2885_v28 = vmax.f32 %v2629_v24, 0.0  ;;  %v2949_v29 = vmax.f32 %v2693_v25, 0.0 }
 0x133   : > { %v2758_v30 = vmax.f32 %v2502_v26, 0.0  ;;  %v2822_v31 = vmax.f32 %v2566_v27, 0.0  ;;  %v4367_v26 = vld [vmem:[%s4538_s29 + $0x298] sm:$0xff] }
 0x134   : > { %v3141_v32 = vpack.c.bf16 %v2885_v28, %v2885_v28  ;;  %v3205_v33 = vpack.c.bf16 %v2949_v29, %v2949_v29  ;;  %v4399_v27 = vld [vmem:[%s4538_s29 + $0x398] sm:$0xff] }
 0x135   : > { %v3014_v34 = vpack.c.bf16 %v2758_v30, %v2758_v30  ;;  %v3078_v35 = vpack.c.bf16 %v2822_v31, %v2822_v31  ;;  %v1946_v36 = vpop.f32.mrf.mxu2  ;;  %v2106_v37 = vpop.f32.mrf.mxu3 }
 0x136   : > { %3398 = vst.msk [vmem:[%s4631_s10 + $0x248] sm:$0xf] %vm3251_vm3, %v3141_v32  ;;  %v2370_v42 = vmul.f32 %v4994_v16, %v1946_v36  ;;  %v2434_v43 = vmul.f32 %v4994_v16, %v2106_v37  ;;  %v1629_v44 = vpop.f32.mrf.mxu0  ;;  %v1789_v45 = vpop.f32.mrf.mxu1 }
 0x137   : > { %3462 = vst.msk [vmem:[%s4631_s10 + $0x348] sm:$0xf] %vm3251_vm3, %v3205_v33  ;;  %v2243_v48 = vmul.f32 %v4994_v16, %v1629_v44  ;;  %v2307_v49 = vmul.f32 %v4994_v16, %v1789_v45 }
 0x138   : > { %3271 = vst.msk [vmem:[%s4631_s10 + $0x4c] sm:$0xf] %vm3251_vm3, %v3014_v34  ;;  %v2630_v50 = vadd.f32 %v5007_v23, %v2370_v42  ;;  %v2694_v51 = vadd.f32 %v5007_v23, %v2434_v43 }
 0x139   : > { %3335 = vst.msk [vmem:[%s4631_s10 + $0x14c] sm:$0xf] %vm3251_vm3, %v3078_v35  ;;  %v2503_v52 = vadd.f32 %v5007_v23, %v2243_v48  ;;  %v2567_v53 = vadd.f32 %v5007_v23, %v2307_v49  ;;  %4172 = vmatmul.msk.bf16.gmra.mxu0 %vm1178_vm2, %v4302_v38  ;;  %4204 = vmatmul.msk.bf16.gmra.mxu1 %vm1178_vm2, %v4334_v39 }
 0x13a   : > { %v2886_v54 = vmax.f32 %v2630_v50, 0.0  ;;  %v2950_v55 = vmax.f32 %v2694_v51, 0.0  ;;  %4236 = vmatmul.msk.bf16.gmra.mxu2 %vm1178_vm2, %v4366_v46  ;;  %4268 = vmatmul.msk.bf16.gmra.mxu3 %vm1178_vm2, %v4398_v47 }
 0x13b   : > { %v2759_v56 = vmax.f32 %v2503_v52, 0.0  ;;  %v2823_v57 = vmax.f32 %v2567_v53, 0.0 }
 0x13c   : > { %v3142_v58 = vpack.c.bf16 %v2886_v54, %v2886_v54  ;;  %v3206_v59 = vpack.c.bf16 %v2950_v55, %v2950_v55 }
 0x13d   : > { %v3015_v60 = vpack.c.bf16 %v2759_v56, %v2759_v56  ;;  %v3079_v61 = vpack.c.bf16 %v2823_v57, %v2823_v57  ;;  %v1949_v62 = vpop.f32.mrf.mxu2  ;;  %v2109_v63 = vpop.f32.mrf.mxu3 }
 0x13e   : > { %3399 = vst.msk [vmem:[%s4631_s10 + $0x24c] sm:$0xf] %vm3251_vm3, %v3142_v58  ;;  %v2371_v0 = vmul.f32 %v4994_v16, %v1949_v62  ;;  %v2435_v1 = vmul.f32 %v4994_v16, %v2109_v63  ;;  %v1631_v2 = vpop.f32.mrf.mxu0  ;;  %v1791_v3 = vpop.f32.mrf.mxu1 }
 0x13f   : > { %3463 = vst.msk [vmem:[%s4631_s10 + $0x34c] sm:$0xf] %vm3251_vm3, %v3206_v59  ;;  %v2244_v4 = vmul.f32 %v4994_v16, %v1631_v2  ;;  %v2308_v5 = vmul.f32 %v4994_v16, %v1791_v3  ;;  %v4304_v2 = vld [vmem:[%s4538_s29 + $0xa0] sm:$0xff] }
 0x140   : > { %3272 = vst.msk [vmem:[%s4631_s10 + $0x50] sm:$0xf] %vm3251_vm3, %v3015_v60  ;;  %v2631_v6 = vadd.f32 %v5007_v23, %v2371_v0  ;;  %v2695_v7 = vadd.f32 %v5007_v23, %v2435_v1  ;;  %v4336_v3 = vld [vmem:[%s4538_s29 + $0x1a0] sm:$0xff] }
 0x141   : > { %3336 = vst.msk [vmem:[%s4631_s10 + $0x150] sm:$0xf] %vm3251_vm3, %v3079_v61  ;;  %v2504_v8 = vadd.f32 %v5007_v23, %v2244_v4  ;;  %v2568_v9 = vadd.f32 %v5007_v23, %v2308_v5 }
 0x142   : > { %v2887_v40 = vmax.f32 %v2631_v6, 0.0  ;;  %v2951_v10 = vmax.f32 %v2695_v7, 0.0 }
 0x143   : > { %v2760_v11 = vmax.f32 %v2504_v8, 0.0  ;;  %v2824_v12 = vmax.f32 %v2568_v9, 0.0  ;;  %v4368_v8 = vld [vmem:[%s4538_s29 + $0x2a0] sm:$0xff] }
 0x144   : > { %v3143_v13 = vpack.c.bf16 %v2887_v40, %v2887_v40  ;;  %v3207_v14 = vpack.c.bf16 %v2951_v10, %v2951_v10  ;;  %v4400_v9 = vld [vmem:[%s4538_s29 + $0x3a0] sm:$0xff] }
 0x145   : > { %v3016_v41 = vpack.c.bf16 %v2760_v11, %v2760_v11  ;;  %v3080_v15 = vpack.c.bf16 %v2824_v12, %v2824_v12  ;;  %v1951_v17 = vpop.f32.mrf.mxu2  ;;  %v2111_v18 = vpop.f32.mrf.mxu3 }
 0x146   : > { %3400 = vst.msk [vmem:[%s4631_s10 + $0x250] sm:$0xf] %vm3251_vm3, %v3143_v13  ;;  %v2372_v21 = vmul.f32 %v4994_v16, %v1951_v17  ;;  %v2436_v22 = vmul.f32 %v4994_v16, %v2111_v18  ;;  %v1634_v24 = vpop.f32.mrf.mxu0  ;;  %v1794_v25 = vpop.f32.mrf.mxu1 }
 0x147   : > { %3464 = vst.msk [vmem:[%s4631_s10 + $0x350] sm:$0xf] %vm3251_vm3, %v3207_v14  ;;  %v2245_v28 = vmul.f32 %v4994_v16, %v1634_v24  ;;  %v2309_v29 = vmul.f32 %v4994_v16, %v1794_v25 }
 0x148   : > { %3273 = vst.msk [vmem:[%s4631_s10 + $0x54] sm:$0xf] %vm3251_vm3, %v3016_v41  ;;  %v2632_v30 = vadd.f32 %v5007_v23, %v2372_v21  ;;  %v2696_v31 = vadd.f32 %v5007_v23, %v2436_v22 }
 0x149   : > { %3337 = vst.msk [vmem:[%s4631_s10 + $0x154] sm:$0xf] %vm3251_vm3, %v3080_v15  ;;  %v2505_v32 = vadd.f32 %v5007_v23, %v2245_v28  ;;  %v2569_v33 = vadd.f32 %v5007_v23, %v2309_v29  ;;  %4173 = vmatmul.msk.bf16.gmra.mxu0 %vm1178_vm2, %v4303_v19  ;;  %4205 = vmatmul.msk.bf16.gmra.mxu1 %vm1178_vm2, %v4335_v20 }
 0x14a   : > { %v2888_v34 = vmax.f32 %v2632_v30, 0.0  ;;  %v2952_v35 = vmax.f32 %v2696_v31, 0.0  ;;  %4237 = vmatmul.msk.bf16.gmra.mxu2 %vm1178_vm2, %v4367_v26  ;;  %4269 = vmatmul.msk.bf16.gmra.mxu3 %vm1178_vm2, %v4399_v27 }
 0x14b   : > { %v2761_v36 = vmax.f32 %v2505_v32, 0.0  ;;  %v2825_v37 = vmax.f32 %v2569_v33, 0.0 }
 0x14c   : > { %v3144_v38 = vpack.c.bf16 %v2888_v34, %v2888_v34  ;;  %v3208_v39 = vpack.c.bf16 %v2952_v35, %v2952_v35 }
 0x14d   : > { %v3017_v42 = vpack.c.bf16 %v2761_v36, %v2761_v36  ;;  %v3081_v43 = vpack.c.bf16 %v2825_v37, %v2825_v37  ;;  %v1954_v44 = vpop.f32.mrf.mxu2  ;;  %v2114_v45 = vpop.f32.mrf.mxu3 }
 0x14e   : > { %3401 = vst.msk [vmem:[%s4631_s10 + $0x254] sm:$0xf] %vm3251_vm3, %v3144_v38  ;;  %v2373_v46 = vmul.f32 %v4994_v16, %v1954_v44  ;;  %v2437_v47 = vmul.f32 %v4994_v16, %v2114_v45  ;;  %v1636_v48 = vpop.f32.mrf.mxu0  ;;  %v1796_v49 = vpop.f32.mrf.mxu1 }
 0x14f   : > { %3465 = vst.msk [vmem:[%s4631_s10 + $0x354] sm:$0xf] %vm3251_vm3, %v3208_v39  ;;  %v2246_v50 = vmul.f32 %v4994_v16, %v1636_v48  ;;  %v2310_v51 = vmul.f32 %v4994_v16, %v1796_v49  ;;  %v4305_v48 = vld [vmem:[%s4538_s29 + $0xa8] sm:$0xff] }
 0x150   : > { %3274 = vst.msk [vmem:[%s4631_s10 + $0x58] sm:$0xf] %vm3251_vm3, %v3017_v42  ;;  %v2633_v52 = vadd.f32 %v5007_v23, %v2373_v46  ;;  %v2697_v53 = vadd.f32 %v5007_v23, %v2437_v47  ;;  %v4337_v49 = vld [vmem:[%s4538_s29 + $0x1a8] sm:$0xff] }
 0x151   : > { %3338 = vst.msk [vmem:[%s4631_s10 + $0x158] sm:$0xf] %vm3251_vm3, %v3081_v43  ;;  %v2506_v54 = vadd.f32 %v5007_v23, %v2246_v50  ;;  %v2570_v55 = vadd.f32 %v5007_v23, %v2310_v51 }
 0x152   : > { %v2889_v56 = vmax.f32 %v2633_v52, 0.0  ;;  %v2953_v57 = vmax.f32 %v2697_v53, 0.0 }
 0x153   : > { %v2762_v58 = vmax.f32 %v2506_v54, 0.0  ;;  %v2826_v59 = vmax.f32 %v2570_v55, 0.0  ;;  %v4369_v54 = vld [vmem:[%s4538_s29 + $0x2a8] sm:$0xff] }
 0x154   : > { %v3145_v60 = vpack.c.bf16 %v2889_v56, %v2889_v56  ;;  %v3209_v61 = vpack.c.bf16 %v2953_v57, %v2953_v57  ;;  %v4401_v55 = vld [vmem:[%s4538_s29 + $0x3a8] sm:$0xff] }
 0x155   : > { %v3018_v62 = vpack.c.bf16 %v2762_v58, %v2762_v58  ;;  %v3082_v63 = vpack.c.bf16 %v2826_v59, %v2826_v59  ;;  %v1956_v0 = vpop.f32.mrf.mxu2  ;;  %v2116_v1 = vpop.f32.mrf.mxu3 }
 0x156   : > { %3402 = vst.msk [vmem:[%s4631_s10 + $0x258] sm:$0xf] %vm3251_vm3, %v3145_v60  ;;  %v2374_v4 = vmul.f32 %v4994_v16, %v1956_v0  ;;  %v2438_v5 = vmul.f32 %v4994_v16, %v2116_v1  ;;  %v1639_v6 = vpop.f32.mrf.mxu0  ;;  %v1799_v7 = vpop.f32.mrf.mxu1 }
 0x157   : > { %3466 = vst.msk [vmem:[%s4631_s10 + $0x358] sm:$0xf] %vm3251_vm3, %v3209_v61  ;;  %v2247_v40 = vmul.f32 %v4994_v16, %v1639_v6  ;;  %v2311_v10 = vmul.f32 %v4994_v16, %v1799_v7 }
 0x158   : > { %3275 = vst.msk [vmem:[%s4631_s10 + $0x5c] sm:$0xf] %vm3251_vm3, %v3018_v62  ;;  %v2634_v11 = vadd.f32 %v5007_v23, %v2374_v4  ;;  %v2698_v12 = vadd.f32 %v5007_v23, %v2438_v5 }
 0x159   : > { %3339 = vst.msk [vmem:[%s4631_s10 + $0x15c] sm:$0xf] %vm3251_vm3, %v3082_v63  ;;  %v2507_v13 = vadd.f32 %v5007_v23, %v2247_v40  ;;  %v2571_v14 = vadd.f32 %v5007_v23, %v2311_v10  ;;  %4174 = vmatmul.msk.bf16.gmra.mxu0 %vm1178_vm2, %v4304_v2  ;;  %4206 = vmatmul.msk.bf16.gmra.mxu1 %vm1178_vm2, %v4336_v3 }
 0x15a   : > { %v2890_v41 = vmax.f32 %v2634_v11, 0.0  ;;  %v2954_v15 = vmax.f32 %v2698_v12, 0.0  ;;  %4238 = vmatmul.msk.bf16.gmra.mxu2 %vm1178_vm2, %v4368_v8  ;;  %4270 = vmatmul.msk.bf16.gmra.mxu3 %vm1178_vm2, %v4400_v9 }
 0x15b   : > { %v2763_v17 = vmax.f32 %v2507_v13, 0.0  ;;  %v2827_v18 = vmax.f32 %v2571_v14, 0.0 }
 0x15c   : > { %v3146_v19 = vpack.c.bf16 %v2890_v41, %v2890_v41  ;;  %v3210_v20 = vpack.c.bf16 %v2954_v15, %v2954_v15 }
 0x15d   : > { %v3019_v21 = vpack.c.bf16 %v2763_v17, %v2763_v17  ;;  %v3083_v22 = vpack.c.bf16 %v2827_v18, %v2827_v18  ;;  %v1959_v24 = vpop.f32.mrf.mxu2  ;;  %v2119_v25 = vpop.f32.mrf.mxu3 }
 0x15e   : > { %3403 = vst.msk [vmem:[%s4631_s10 + $0x25c] sm:$0xf] %vm3251_vm3, %v3146_v19  ;;  %v2375_v26 = vmul.f32 %v4994_v16, %v1959_v24  ;;  %v2439_v27 = vmul.f32 %v4994_v16, %v2119_v25  ;;  %v1641_v28 = vpop.f32.mrf.mxu0  ;;  %v1801_v29 = vpop.f32.mrf.mxu1 }
 0x15f   : > { %3467 = vst.msk [vmem:[%s4631_s10 + $0x35c] sm:$0xf] %vm3251_vm3, %v3210_v20  ;;  %v2248_v30 = vmul.f32 %v4994_v16, %v1641_v28  ;;  %v2312_v31 = vmul.f32 %v4994_v16, %v1801_v29  ;;  %v4306_v28 = vld [vmem:[%s4538_s29 + $0xb0] sm:$0xff] }
 0x160   : > { %3276 = vst.msk [vmem:[%s4631_s10 + $0x60] sm:$0xf] %vm3251_vm3, %v3019_v21  ;;  %v2635_v32 = vadd.f32 %v5007_v23, %v2375_v26  ;;  %v2699_v33 = vadd.f32 %v5007_v23, %v2439_v27  ;;  %v4338_v29 = vld [vmem:[%s4538_s29 + $0x1b0] sm:$0xff] }
 0x161   : > { %3340 = vst.msk [vmem:[%s4631_s10 + $0x160] sm:$0xf] %vm3251_vm3, %v3083_v22  ;;  %v2508_v34 = vadd.f32 %v5007_v23, %v2248_v30  ;;  %v2572_v35 = vadd.f32 %v5007_v23, %v2312_v31 }
 0x162   : > { %v2891_v36 = vmax.f32 %v2635_v32, 0.0  ;;  %v2955_v37 = vmax.f32 %v2699_v33, 0.0 }
 0x163   : > { %v2764_v38 = vmax.f32 %v2508_v34, 0.0  ;;  %v2828_v39 = vmax.f32 %v2572_v35, 0.0  ;;  %v4370_v34 = vld [vmem:[%s4538_s29 + $0x2b0] sm:$0xff] }
 0x164   : > { %v3147_v42 = vpack.c.bf16 %v2891_v36, %v2891_v36  ;;  %v3211_v43 = vpack.c.bf16 %v2955_v37, %v2955_v37  ;;  %v4402_v35 = vld [vmem:[%s4538_s29 + $0x3b0] sm:$0xff] }
 0x165   : > { %v3020_v44 = vpack.c.bf16 %v2764_v38, %v2764_v38  ;;  %v3084_v45 = vpack.c.bf16 %v2828_v39, %v2828_v39  ;;  %v1961_v46 = vpop.f32.mrf.mxu2  ;;  %v2121_v47 = vpop.f32.mrf.mxu3 }
 0x166   : > { %3404 = vst.msk [vmem:[%s4631_s10 + $0x260] sm:$0xf] %vm3251_vm3, %v3147_v42  ;;  %v2376_v50 = vmul.f32 %v4994_v16, %v1961_v46  ;;  %v2440_v51 = vmul.f32 %v4994_v16, %v2121_v47  ;;  %v1644_v52 = vpop.f32.mrf.mxu0  ;;  %v1804_v53 = vpop.f32.mrf.mxu1 }
 0x167   : > { %3468 = vst.msk [vmem:[%s4631_s10 + $0x360] sm:$0xf] %vm3251_vm3, %v3211_v43  ;;  %v2249_v56 = vmul.f32 %v4994_v16, %v1644_v52  ;;  %v2313_v57 = vmul.f32 %v4994_v16, %v1804_v53 }
 0x168   : > { %3277 = vst.msk [vmem:[%s4631_s10 + $0x64] sm:$0xf] %vm3251_vm3, %v3020_v44  ;;  %v2636_v58 = vadd.f32 %v5007_v23, %v2376_v50  ;;  %v2700_v59 = vadd.f32 %v5007_v23, %v2440_v51 }
 0x169   : > { %3341 = vst.msk [vmem:[%s4631_s10 + $0x164] sm:$0xf] %vm3251_vm3, %v3084_v45  ;;  %v2509_v60 = vadd.f32 %v5007_v23, %v2249_v56  ;;  %v2573_v61 = vadd.f32 %v5007_v23, %v2313_v57  ;;  %4175 = vmatmul.msk.bf16.gmra.mxu0 %vm1178_vm2, %v4305_v48  ;;  %4207 = vmatmul.msk.bf16.gmra.mxu1 %vm1178_vm2, %v4337_v49 }
 0x16a   : > { %v2892_v62 = vmax.f32 %v2636_v58, 0.0  ;;  %v2956_v63 = vmax.f32 %v2700_v59, 0.0  ;;  %4239 = vmatmul.msk.bf16.gmra.mxu2 %vm1178_vm2, %v4369_v54  ;;  %4271 = vmatmul.msk.bf16.gmra.mxu3 %vm1178_vm2, %v4401_v55 }
 0x16b   : > { %v2765_v0 = vmax.f32 %v2509_v60, 0.0  ;;  %v2829_v1 = vmax.f32 %v2573_v61, 0.0 }
 0x16c   : > { %v3148_v2 = vpack.c.bf16 %v2892_v62, %v2892_v62  ;;  %v3212_v3 = vpack.c.bf16 %v2956_v63, %v2956_v63 }
 0x16d   : > { %v3021_v4 = vpack.c.bf16 %v2765_v0, %v2765_v0  ;;  %v3085_v5 = vpack.c.bf16 %v2829_v1, %v2829_v1  ;;  %v1964_v6 = vpop.f32.mrf.mxu2  ;;  %v2124_v7 = vpop.f32.mrf.mxu3 }
 0x16e   : > { %3405 = vst.msk [vmem:[%s4631_s10 + $0x264] sm:$0xf] %vm3251_vm3, %v3148_v2  ;;  %v2377_v8 = vmul.f32 %v4994_v16, %v1964_v6  ;;  %v2441_v9 = vmul.f32 %v4994_v16, %v2124_v7  ;;  %v1646_v40 = vpop.f32.mrf.mxu0  ;;  %v1806_v10 = vpop.f32.mrf.mxu1 }
 0x16f   : > { %3469 = vst.msk [vmem:[%s4631_s10 + $0x364] sm:$0xf] %vm3251_vm3, %v3212_v3  ;;  %v2250_v11 = vmul.f32 %v4994_v16, %v1646_v40  ;;  %v2314_v12 = vmul.f32 %v4994_v16, %v1806_v10  ;;  %v4307_v40 = vld [vmem:[%s4538_s29 + $0xb8] sm:$0xff] }
 0x170   : > { %3278 = vst.msk [vmem:[%s4631_s10 + $0x68] sm:$0xf] %vm3251_vm3, %v3021_v4  ;;  %v2637_v13 = vadd.f32 %v5007_v23, %v2377_v8  ;;  %v2701_v14 = vadd.f32 %v5007_v23, %v2441_v9  ;;  %v4339_v10 = vld [vmem:[%s4538_s29 + $0x1b8] sm:$0xff] }
 0x171   : > { %3342 = vst.msk [vmem:[%s4631_s10 + $0x168] sm:$0xf] %vm3251_vm3, %v3085_v5  ;;  %v2510_v41 = vadd.f32 %v5007_v23, %v2250_v11  ;;  %v2574_v15 = vadd.f32 %v5007_v23, %v2314_v12 }
 0x172   : > { %v2893_v17 = vmax.f32 %v2637_v13, 0.0  ;;  %v2957_v18 = vmax.f32 %v2701_v14, 0.0 }
 0x173   : > { %v2766_v19 = vmax.f32 %v2510_v41, 0.0  ;;  %v2830_v20 = vmax.f32 %v2574_v15, 0.0  ;;  %v4371_v41 = vld [vmem:[%s4538_s29 + $0x2b8] sm:$0xff] }
 0x174   : > { %v3149_v21 = vpack.c.bf16 %v2893_v17, %v2893_v17  ;;  %v3213_v22 = vpack.c.bf16 %v2957_v18, %v2957_v18  ;;  %v4403_v15 = vld [vmem:[%s4538_s29 + $0x3b8] sm:$0xff] }
 0x175   : > { %v3022_v24 = vpack.c.bf16 %v2766_v19, %v2766_v19  ;;  %v3086_v25 = vpack.c.bf16 %v2830_v20, %v2830_v20  ;;  %v1966_v26 = vpop.f32.mrf.mxu2  ;;  %v2126_v27 = vpop.f32.mrf.mxu3 }
 0x176   : > { %3406 = vst.msk [vmem:[%s4631_s10 + $0x268] sm:$0xf] %vm3251_vm3, %v3149_v21  ;;  %v2378_v30 = vmul.f32 %v4994_v16, %v1966_v26  ;;  %v2442_v31 = vmul.f32 %v4994_v16, %v2126_v27  ;;  %v1649_v32 = vpop.f32.mrf.mxu0  ;;  %v1809_v33 = vpop.f32.mrf.mxu1 }
 0x177   : > { %3470 = vst.msk [vmem:[%s4631_s10 + $0x368] sm:$0xf] %vm3251_vm3, %v3213_v22  ;;  %v2251_v36 = vmul.f32 %v4994_v16, %v1649_v32  ;;  %v2315_v37 = vmul.f32 %v4994_v16, %v1809_v33 }
 0x178   : > { %3279 = vst.msk [vmem:[%s4631_s10 + $0x6c] sm:$0xf] %vm3251_vm3, %v3022_v24  ;;  %v2638_v38 = vadd.f32 %v5007_v23, %v2378_v30  ;;  %v2702_v39 = vadd.f32 %v5007_v23, %v2442_v31 }
 0x179   : > { %3343 = vst.msk [vmem:[%s4631_s10 + $0x16c] sm:$0xf] %vm3251_vm3, %v3086_v25  ;;  %v2511_v42 = vadd.f32 %v5007_v23, %v2251_v36  ;;  %v2575_v43 = vadd.f32 %v5007_v23, %v2315_v37  ;;  %4176 = vmatmul.msk.bf16.gmra.mxu0 %vm1178_vm2, %v4306_v28  ;;  %4208 = vmatmul.msk.bf16.gmra.mxu1 %vm1178_vm2, %v4338_v29 }
 0x17a   : > { %v2894_v44 = vmax.f32 %v2638_v38, 0.0  ;;  %v2958_v45 = vmax.f32 %v2702_v39, 0.0  ;;  %4240 = vmatmul.msk.bf16.gmra.mxu2 %vm1178_vm2, %v4370_v34  ;;  %4272 = vmatmul.msk.bf16.gmra.mxu3 %vm1178_vm2, %v4402_v35 }
 0x17b   : > { %v2767_v46 = vmax.f32 %v2511_v42, 0.0  ;;  %v2831_v47 = vmax.f32 %v2575_v43, 0.0 }
 0x17c   : > { %v3150_v48 = vpack.c.bf16 %v2894_v44, %v2894_v44  ;;  %v3214_v49 = vpack.c.bf16 %v2958_v45, %v2958_v45 }
 0x17d   : > { %v3023_v50 = vpack.c.bf16 %v2767_v46, %v2767_v46  ;;  %v3087_v51 = vpack.c.bf16 %v2831_v47, %v2831_v47  ;;  %v1969_v52 = vpop.f32.mrf.mxu2  ;;  %v2129_v53 = vpop.f32.mrf.mxu3 }
 0x17e   : > { %3407 = vst.msk [vmem:[%s4631_s10 + $0x26c] sm:$0xf] %vm3251_vm3, %v3150_v48  ;;  %v2379_v54 = vmul.f32 %v4994_v16, %v1969_v52  ;;  %v2443_v55 = vmul.f32 %v4994_v16, %v2129_v53  ;;  %v1651_v56 = vpop.f32.mrf.mxu0  ;;  %v1811_v57 = vpop.f32.mrf.mxu1 }
 0x17f   : > { %3471 = vst.msk [vmem:[%s4631_s10 + $0x36c] sm:$0xf] %vm3251_vm3, %v3214_v49  ;;  %v2252_v58 = vmul.f32 %v4994_v16, %v1651_v56  ;;  %v2316_v59 = vmul.f32 %v4994_v16, %v1811_v57  ;;  %v4308_v56 = vld [vmem:[%s4538_s29 + $0xc0] sm:$0xff] }
 0x180   : > { %3280 = vst.msk [vmem:[%s4631_s10 + $0x70] sm:$0xf] %vm3251_vm3, %v3023_v50  ;;  %v2639_v60 = vadd.f32 %v5007_v23, %v2379_v54  ;;  %v2703_v61 = vadd.f32 %v5007_v23, %v2443_v55  ;;  %v4340_v57 = vld [vmem:[%s4538_s29 + $0x1c0] sm:$0xff] }
 0x181   : > { %3344 = vst.msk [vmem:[%s4631_s10 + $0x170] sm:$0xf] %vm3251_vm3, %v3087_v51  ;;  %v2512_v62 = vadd.f32 %v5007_v23, %v2252_v58  ;;  %v2576_v63 = vadd.f32 %v5007_v23, %v2316_v59 }
 0x182   : > { %v2895_v0 = vmax.f32 %v2639_v60, 0.0  ;;  %v2959_v1 = vmax.f32 %v2703_v61, 0.0 }
 0x183   : > { %v2768_v2 = vmax.f32 %v2512_v62, 0.0  ;;  %v2832_v3 = vmax.f32 %v2576_v63, 0.0  ;;  %v4372_v62 = vld [vmem:[%s4538_s29 + $0x2c0] sm:$0xff] }
 0x184   : > { %v3151_v4 = vpack.c.bf16 %v2895_v0, %v2895_v0  ;;  %v3215_v5 = vpack.c.bf16 %v2959_v1, %v2959_v1  ;;  %v4404_v63 = vld [vmem:[%s4538_s29 + $0x3c0] sm:$0xff] }
 0x185   : > { %v3024_v6 = vpack.c.bf16 %v2768_v2, %v2768_v2  ;;  %v3088_v7 = vpack.c.bf16 %v2832_v3, %v2832_v3  ;;  %v1971_v8 = vpop.f32.mrf.mxu2  ;;  %v2131_v9 = vpop.f32.mrf.mxu3 }
 0x186   : > { %3408 = vst.msk [vmem:[%s4631_s10 + $0x270] sm:$0xf] %vm3251_vm3, %v3151_v4  ;;  %v2380_v11 = vmul.f32 %v4994_v16, %v1971_v8  ;;  %v2444_v12 = vmul.f32 %v4994_v16, %v2131_v9  ;;  %v1654_v13 = vpop.f32.mrf.mxu0  ;;  %v1814_v14 = vpop.f32.mrf.mxu1 }
 0x187   : > { %3472 = vst.msk [vmem:[%s4631_s10 + $0x370] sm:$0xf] %vm3251_vm3, %v3215_v5  ;;  %v2253_v17 = vmul.f32 %v4994_v16, %v1654_v13  ;;  %v2317_v18 = vmul.f32 %v4994_v16, %v1814_v14 }
 0x188   : > { %3281 = vst.msk [vmem:[%s4631_s10 + $0x74] sm:$0xf] %vm3251_vm3, %v3024_v6  ;;  %v2640_v19 = vadd.f32 %v5007_v23, %v2380_v11  ;;  %v2704_v20 = vadd.f32 %v5007_v23, %v2444_v12 }
 0x189   : > { %3345 = vst.msk [vmem:[%s4631_s10 + $0x174] sm:$0xf] %vm3251_vm3, %v3088_v7  ;;  %v2513_v21 = vadd.f32 %v5007_v23, %v2253_v17  ;;  %v2577_v22 = vadd.f32 %v5007_v23, %v2317_v18  ;;  %4177 = vmatmul.msk.bf16.gmra.mxu0 %vm1178_vm2, %v4307_v40  ;;  %4209 = vmatmul.msk.bf16.gmra.mxu1 %vm1178_vm2, %v4339_v10 }
 0x18a   : > { %v2896_v24 = vmax.f32 %v2640_v19, 0.0  ;;  %v2960_v25 = vmax.f32 %v2704_v20, 0.0  ;;  %4241 = vmatmul.msk.bf16.gmra.mxu2 %vm1178_vm2, %v4371_v41  ;;  %4273 = vmatmul.msk.bf16.gmra.mxu3 %vm1178_vm2, %v4403_v15 }
 0x18b   : > { %v2769_v26 = vmax.f32 %v2513_v21, 0.0  ;;  %v2833_v27 = vmax.f32 %v2577_v22, 0.0 }
 0x18c   : > { %v3152_v28 = vpack.c.bf16 %v2896_v24, %v2896_v24  ;;  %v3216_v29 = vpack.c.bf16 %v2960_v25, %v2960_v25 }
 0x18d   : > { %v3025_v30 = vpack.c.bf16 %v2769_v26, %v2769_v26  ;;  %v3089_v31 = vpack.c.bf16 %v2833_v27, %v2833_v27  ;;  %v1974_v32 = vpop.f32.mrf.mxu2  ;;  %v2134_v33 = vpop.f32.mrf.mxu3 }
 0x18e   : > { %3409 = vst.msk [vmem:[%s4631_s10 + $0x274] sm:$0xf] %vm3251_vm3, %v3152_v28  ;;  %v2381_v34 = vmul.f32 %v4994_v16, %v1974_v32  ;;  %v2445_v35 = vmul.f32 %v4994_v16, %v2134_v33  ;;  %v1656_v36 = vpop.f32.mrf.mxu0  ;;  %v1816_v37 = vpop.f32.mrf.mxu1 }
 0x18f   : > { %3473 = vst.msk [vmem:[%s4631_s10 + $0x374] sm:$0xf] %vm3251_vm3, %v3216_v29  ;;  %v2254_v38 = vmul.f32 %v4994_v16, %v1656_v36  ;;  %v2318_v39 = vmul.f32 %v4994_v16, %v1816_v37  ;;  %v4309_v36 = vld [vmem:[%s4538_s29 + $0xc8] sm:$0xff] }
 0x190   : > { %3282 = vst.msk [vmem:[%s4631_s10 + $0x78] sm:$0xf] %vm3251_vm3, %v3025_v30  ;;  %v2641_v42 = vadd.f32 %v5007_v23, %v2381_v34  ;;  %v2705_v43 = vadd.f32 %v5007_v23, %v2445_v35  ;;  %v4341_v37 = vld [vmem:[%s4538_s29 + $0x1c8] sm:$0xff] }
 0x191   : > { %3346 = vst.msk [vmem:[%s4631_s10 + $0x178] sm:$0xf] %vm3251_vm3, %v3089_v31  ;;  %v2514_v44 = vadd.f32 %v5007_v23, %v2254_v38  ;;  %v2578_v45 = vadd.f32 %v5007_v23, %v2318_v39 }
 0x192   : > { %v2897_v46 = vmax.f32 %v2641_v42, 0.0  ;;  %v2961_v47 = vmax.f32 %v2705_v43, 0.0 }
 0x193   : > { %v2770_v48 = vmax.f32 %v2514_v44, 0.0  ;;  %v2834_v49 = vmax.f32 %v2578_v45, 0.0  ;;  %v4373_v44 = vld [vmem:[%s4538_s29 + $0x2c8] sm:$0xff] }
 0x194   : > { %v3153_v50 = vpack.c.bf16 %v2897_v46, %v2897_v46  ;;  %v3217_v51 = vpack.c.bf16 %v2961_v47, %v2961_v47  ;;  %v4405_v45 = vld [vmem:[%s4538_s29 + $0x3c8] sm:$0xff] }
 0x195   : > { %v3026_v52 = vpack.c.bf16 %v2770_v48, %v2770_v48  ;;  %v3090_v53 = vpack.c.bf16 %v2834_v49, %v2834_v49  ;;  %v1976_v54 = vpop.f32.mrf.mxu2  ;;  %v2136_v55 = vpop.f32.mrf.mxu3 }
 0x196   : > { %3410 = vst.msk [vmem:[%s4631_s10 + $0x278] sm:$0xf] %vm3251_vm3, %v3153_v50  ;;  %v2382_v58 = vmul.f32 %v4994_v16, %v1976_v54  ;;  %v2446_v59 = vmul.f32 %v4994_v16, %v2136_v55  ;;  %v1659_v60 = vpop.f32.mrf.mxu0  ;;  %v1819_v61 = vpop.f32.mrf.mxu1 }
 0x197   : > { %3474 = vst.msk [vmem:[%s4631_s10 + $0x378] sm:$0xf] %vm3251_vm3, %v3217_v51  ;;  %v2255_v0 = vmul.f32 %v4994_v16, %v1659_v60  ;;  %v2319_v1 = vmul.f32 %v4994_v16, %v1819_v61 }
 0x198   : > { %3283 = vst.msk [vmem:[%s4631_s10 + $0x7c] sm:$0xf] %vm3251_vm3, %v3026_v52  ;;  %v2642_v2 = vadd.f32 %v5007_v23, %v2382_v58  ;;  %v2706_v3 = vadd.f32 %v5007_v23, %v2446_v59 }
 0x199   : > { %3347 = vst.msk [vmem:[%s4631_s10 + $0x17c] sm:$0xf] %vm3251_vm3, %v3090_v53  ;;  %v2515_v4 = vadd.f32 %v5007_v23, %v2255_v0  ;;  %v2579_v5 = vadd.f32 %v5007_v23, %v2319_v1  ;;  %4178 = vmatmul.msk.bf16.gmra.mxu0 %vm1178_vm2, %v4308_v56  ;;  %4210 = vmatmul.msk.bf16.gmra.mxu1 %vm1178_vm2, %v4340_v57 }
 0x19a   : > { %v2898_v6 = vmax.f32 %v2642_v2, 0.0  ;;  %v2962_v7 = vmax.f32 %v2706_v3, 0.0  ;;  %4242 = vmatmul.msk.bf16.gmra.mxu2 %vm1178_vm2, %v4372_v62  ;;  %4274 = vmatmul.msk.bf16.gmra.mxu3 %vm1178_vm2, %v4404_v63 }
 0x19b   : > { %v2771_v8 = vmax.f32 %v2515_v4, 0.0  ;;  %v2835_v9 = vmax.f32 %v2579_v5, 0.0 }
 0x19c   : > { %v3154_v40 = vpack.c.bf16 %v2898_v6, %v2898_v6  ;;  %v3218_v10 = vpack.c.bf16 %v2962_v7, %v2962_v7 }
 0x19d   : > { %v3027_v11 = vpack.c.bf16 %v2771_v8, %v2771_v8  ;;  %v3091_v12 = vpack.c.bf16 %v2835_v9, %v2835_v9  ;;  %v1979_v13 = vpop.f32.mrf.mxu2  ;;  %v2139_v14 = vpop.f32.mrf.mxu3 }
 0x19e   : > { %3411 = vst.msk [vmem:[%s4631_s10 + $0x27c] sm:$0xf] %vm3251_vm3, %v3154_v40  ;;  %v2383_v41 = vmul.f32 %v4994_v16, %v1979_v13  ;;  %v2447_v15 = vmul.f32 %v4994_v16, %v2139_v14  ;;  %v1661_v17 = vpop.f32.mrf.mxu0  ;;  %v1821_v18 = vpop.f32.mrf.mxu1 }
 0x19f   : > { %3475 = vst.msk [vmem:[%s4631_s10 + $0x37c] sm:$0xf] %vm3251_vm3, %v3218_v10  ;;  %v2256_v19 = vmul.f32 %v4994_v16, %v1661_v17  ;;  %v2320_v20 = vmul.f32 %v4994_v16, %v1821_v18  ;;  %v4310_v17 = vld [vmem:[%s4538_s29 + $0xd0] sm:$0xff] }
 0x1a0   : > { %3284 = vst.msk [vmem:[%s4631_s10 + $0x80] sm:$0xf] %vm3251_vm3, %v3027_v11  ;;  %v2643_v21 = vadd.f32 %v5007_v23, %v2383_v41  ;;  %v2707_v22 = vadd.f32 %v5007_v23, %v2447_v15  ;;  %v4342_v18 = vld [vmem:[%s4538_s29 + $0x1d0] sm:$0xff] }
 0x1a1   : > { %3348 = vst.msk [vmem:[%s4631_s10 + $0x180] sm:$0xf] %vm3251_vm3, %v3091_v12  ;;  %v2516_v24 = vadd.f32 %v5007_v23, %v2256_v19  ;;  %v2580_v25 = vadd.f32 %v5007_v23, %v2320_v20 }
 0x1a2   : > { %v2899_v26 = vmax.f32 %v2643_v21, 0.0  ;;  %v2963_v27 = vmax.f32 %v2707_v22, 0.0 }
 0x1a3   : > { %v2772_v28 = vmax.f32 %v2516_v24, 0.0  ;;  %v2836_v29 = vmax.f32 %v2580_v25, 0.0  ;;  %v4374_v24 = vld [vmem:[%s4538_s29 + $0x2d0] sm:$0xff] }
 0x1a4   : > { %v3155_v30 = vpack.c.bf16 %v2899_v26, %v2899_v26  ;;  %v3219_v31 = vpack.c.bf16 %v2963_v27, %v2963_v27  ;;  %v4406_v25 = vld [vmem:[%s4538_s29 + $0x3d0] sm:$0xff] }
 0x1a5   : > { %v3028_v32 = vpack.c.bf16 %v2772_v28, %v2772_v28  ;;  %v3092_v33 = vpack.c.bf16 %v2836_v29, %v2836_v29  ;;  %v1981_v34 = vpop.f32.mrf.mxu2  ;;  %v2141_v35 = vpop.f32.mrf.mxu3 }
 0x1a6   : > { %3412 = vst.msk [vmem:[%s4631_s10 + $0x280] sm:$0xf] %vm3251_vm3, %v3155_v30  ;;  %v2384_v38 = vmul.f32 %v4994_v16, %v1981_v34  ;;  %v2448_v39 = vmul.f32 %v4994_v16, %v2141_v35  ;;  %v1664_v42 = vpop.f32.mrf.mxu0  ;;  %v1824_v43 = vpop.f32.mrf.mxu1 }
 0x1a7   : > { %3476 = vst.msk [vmem:[%s4631_s10 + $0x380] sm:$0xf] %vm3251_vm3, %v3219_v31  ;;  %v2257_v46 = vmul.f32 %v4994_v16, %v1664_v42  ;;  %v2321_v47 = vmul.f32 %v4994_v16, %v1824_v43 }
 0x1a8   : > { %3285 = vst.msk [vmem:[%s4631_s10 + $0x84] sm:$0xf] %vm3251_vm3, %v3028_v32  ;;  %v2644_v48 = vadd.f32 %v5007_v23, %v2384_v38  ;;  %v2708_v49 = vadd.f32 %v5007_v23, %v2448_v39 }
 0x1a9   : > { %3349 = vst.msk [vmem:[%s4631_s10 + $0x184] sm:$0xf] %vm3251_vm3, %v3092_v33  ;;  %v2517_v50 = vadd.f32 %v5007_v23, %v2257_v46  ;;  %v2581_v51 = vadd.f32 %v5007_v23, %v2321_v47  ;;  %4179 = vmatmul.msk.bf16.gmra.mxu0 %vm1178_vm2, %v4309_v36  ;;  %4211 = vmatmul.msk.bf16.gmra.mxu1 %vm1178_vm2, %v4341_v37 }
 0x1aa   : > { %v2900_v52 = vmax.f32 %v2644_v48, 0.0  ;;  %v2964_v53 = vmax.f32 %v2708_v49, 0.0  ;;  %4243 = vmatmul.msk.bf16.gmra.mxu2 %vm1178_vm2, %v4373_v44  ;;  %4275 = vmatmul.msk.bf16.gmra.mxu3 %vm1178_vm2, %v4405_v45 }
 0x1ab   : > { %v2773_v54 = vmax.f32 %v2517_v50, 0.0  ;;  %v2837_v55 = vmax.f32 %v2581_v51, 0.0 }
 0x1ac   : > { %v3156_v56 = vpack.c.bf16 %v2900_v52, %v2900_v52  ;;  %v3220_v57 = vpack.c.bf16 %v2964_v53, %v2964_v53 }
 0x1ad   : > { %v3029_v58 = vpack.c.bf16 %v2773_v54, %v2773_v54  ;;  %v3093_v59 = vpack.c.bf16 %v2837_v55, %v2837_v55  ;;  %v1984_v60 = vpop.f32.mrf.mxu2  ;;  %v2144_v61 = vpop.f32.mrf.mxu3 }
 0x1ae   : > { %3413 = vst.msk [vmem:[%s4631_s10 + $0x284] sm:$0xf] %vm3251_vm3, %v3156_v56  ;;  %v2385_v62 = vmul.f32 %v4994_v16, %v1984_v60  ;;  %v2449_v63 = vmul.f32 %v4994_v16, %v2144_v61  ;;  %v1666_v0 = vpop.f32.mrf.mxu0  ;;  %v1826_v1 = vpop.f32.mrf.mxu1 }
 0x1af   : > { %3477 = vst.msk [vmem:[%s4631_s10 + $0x384] sm:$0xf] %vm3251_vm3, %v3220_v57  ;;  %v2258_v2 = vmul.f32 %v4994_v16, %v1666_v0  ;;  %v2322_v3 = vmul.f32 %v4994_v16, %v1826_v1  ;;  %v4343_v0 = vld [vmem:[%s4538_s29 + $0x1d8] sm:$0xff] }
 0x1b0   : > { %3286 = vst.msk [vmem:[%s4631_s10 + $0x88] sm:$0xf] %vm3251_vm3, %v3029_v58  ;;  %v2645_v4 = vadd.f32 %v5007_v23, %v2385_v62  ;;  %v2709_v5 = vadd.f32 %v5007_v23, %v2449_v63  ;;  %v4311_v63 = vld [vmem:[%s4538_s29 + $0xd8] sm:$0xff] }
 0x1b1   : > { %3350 = vst.msk [vmem:[%s4631_s10 + $0x188] sm:$0xf] %vm3251_vm3, %v3093_v59  ;;  %v2518_v6 = vadd.f32 %v5007_v23, %v2258_v2  ;;  %v2582_v7 = vadd.f32 %v5007_v23, %v2322_v3 }
 0x1b2   : > { %v2901_v8 = vmax.f32 %v2645_v4, 0.0  ;;  %v2965_v9 = vmax.f32 %v2709_v5, 0.0  ;;  %v4375_v5 = vld [vmem:[%s4538_s29 + $0x2d8] sm:$0xff] }
 0x1b3   : > { %v2774_v40 = vmax.f32 %v2518_v6, 0.0  ;;  %v2838_v10 = vmax.f32 %v2582_v7, 0.0  ;;  %v4407_v6 = vld [vmem:[%s4538_s29 + $0x3d8] sm:$0xff] }
 0x1b4   : > { %v3157_v11 = vpack.c.bf16 %v2901_v8, %v2901_v8  ;;  %v3221_v12 = vpack.c.bf16 %v2965_v9, %v2965_v9  ;;  %v5397_v9 = vld [vmem:[%s5879_s3] ss:$0 sm:$0xff] }
 0x1b5   : > { %v3030_v13 = vpack.c.bf16 %v2774_v40, %v2774_v40  ;;  %v3094_v14 = vpack.c.bf16 %v2838_v10, %v2838_v10  ;;  %v1986_v41 = vpop.f32.mrf.mxu2  ;;  %v2146_v15 = vpop.f32.mrf.mxu3 }
 0x1b6   : > { %3414 = vst.msk [vmem:[%s4631_s10 + $0x288] sm:$0xf] %vm3251_vm3, %v3157_v11  ;;  %v2386_v19 = vmul.f32 %v4994_v16, %v1986_v41  ;;  %v2450_v20 = vmul.f32 %v4994_v16, %v2146_v15  ;;  %v1669_v21 = vpop.f32.mrf.mxu0  ;;  %v1829_v22 = vpop.f32.mrf.mxu1 }
 0x1b7   : > { %3478 = vst.msk [vmem:[%s4631_s10 + $0x388] sm:$0xf] %vm3251_vm3, %v3221_v12  ;;  %v2259_v26 = vmul.f32 %v4994_v16, %v1669_v21  ;;  %v2323_v27 = vmul.f32 %v4994_v16, %v1829_v22 }
 0x1b8   : > { %3287 = vst.msk [vmem:[%s4631_s10 + $0x8c] sm:$0xf] %vm3251_vm3, %v3030_v13  ;;  %v2646_v28 = vadd.f32 %v5007_v23, %v2386_v19  ;;  %v2710_v29 = vadd.f32 %v5007_v23, %v2450_v20 }
 0x1b9   : > { %3351 = vst.msk [vmem:[%s4631_s10 + $0x18c] sm:$0xf] %vm3251_vm3, %v3094_v14  ;;  %v2519_v30 = vadd.f32 %v5007_v23, %v2259_v26  ;;  %v2583_v31 = vadd.f32 %v5007_v23, %v2323_v27  ;;  %4180 = vmatmul.msk.bf16.gmra.mxu0 %vm1178_vm2, %v4310_v17  ;;  %4212 = vmatmul.msk.bf16.gmra.mxu1 %vm1178_vm2, %v4342_v18 }
 0x1ba   : > { %v2902_v32 = vmax.f32 %v2646_v28, 0.0  ;;  %v2966_v33 = vmax.f32 %v2710_v29, 0.0  ;;  %4244 = vmatmul.msk.bf16.gmra.mxu2 %vm1178_vm2, %v4374_v24  ;;  %4276 = vmatmul.msk.bf16.gmra.mxu3 %vm1178_vm2, %v4406_v25 }
 0x1bb   : > { %v2775_v34 = vmax.f32 %v2519_v30, 0.0  ;;  %v2839_v35 = vmax.f32 %v2583_v31, 0.0 }
 0x1bc   : > { %v3158_v36 = vpack.c.bf16 %v2902_v32, %v2902_v32  ;;  %v3222_v37 = vpack.c.bf16 %v2966_v33, %v2966_v33 }
 0x1bd   : > { %v3031_v38 = vpack.c.bf16 %v2775_v34, %v2775_v34  ;;  %v3095_v39 = vpack.c.bf16 %v2839_v35, %v2839_v35  ;;  %v1989_v42 = vpop.f32.mrf.mxu2  ;;  %v2149_v43 = vpop.f32.mrf.mxu3 }
 0x1be   : > { %3415 = vst.msk [vmem:[%s4631_s10 + $0x28c] sm:$0xf] %vm3251_vm3, %v3158_v36  ;;  %v2387_v44 = vmul.f32 %v4994_v16, %v1989_v42  ;;  %v2451_v45 = vmul.f32 %v4994_v16, %v2149_v43  ;;  %v1671_v46 = vpop.f32.mrf.mxu0  ;;  %v1831_v47 = vpop.f32.mrf.mxu1 }
 0x1bf   : > { %3479 = vst.msk [vmem:[%s4631_s10 + $0x38c] sm:$0xf] %vm3251_vm3, %v3222_v37  ;;  %v2260_v48 = vmul.f32 %v4994_v16, %v1671_v46  ;;  %v2324_v49 = vmul.f32 %v4994_v16, %v1831_v47  ;;  %v4312_v46 = vld [vmem:[%s4538_s29 + $0xe0] sm:$0xff] }
 0x1c0   : > { %3288 = vst.msk [vmem:[%s4631_s10 + $0x90] sm:$0xf] %vm3251_vm3, %v3031_v38  ;;  %v2647_v50 = vadd.f32 %v5007_v23, %v2387_v44  ;;  %v2711_v51 = vadd.f32 %v5007_v23, %v2451_v45  ;;  %v4344_v47 = vld [vmem:[%s4538_s29 + $0x1e0] sm:$0xff] }
 0x1c1   : > { %3352 = vst.msk [vmem:[%s4631_s10 + $0x190] sm:$0xf] %vm3251_vm3, %v3095_v39  ;;  %v2520_v52 = vadd.f32 %v5007_v23, %v2260_v48  ;;  %v2584_v53 = vadd.f32 %v5007_v23, %v2324_v49  ;;  %v5382_v23 = vld [vmem:[%s5878_s2] ss:$0 sm:$0xff] }
 0x1c2   : > { %v2903_v54 = vmax.f32 %v2647_v50, 0.0  ;;  %v2967_v55 = vmax.f32 %v2711_v51, 0.0 }
 0x1c3   : > { %v2776_v56 = vmax.f32 %v2520_v52, 0.0  ;;  %v2840_v16 = vmax.f32 %v2584_v53, 0.0  ;;  %v4376_v52 = vld [vmem:[%s4538_s29 + $0x2e0] sm:$0xff] }
 0x1c4   : > { %v3159_v57 = vpack.c.bf16 %v2903_v54, %v2903_v54  ;;  %v3223_v58 = vpack.c.bf16 %v2967_v55, %v2967_v55  ;;  %v4408_v53 = vld [vmem:[%s4538_s29 + $0x3e0] sm:$0xff] }
 0x1c5   : > { %v3032_v59 = vpack.c.bf16 %v2776_v56, %v2776_v56  ;;  %v3096_v60 = vpack.c.bf16 %v2840_v16, %v2840_v16  ;;  %v1991_v61 = vpop.f32.mrf.mxu2  ;;  %v2151_v62 = vpop.f32.mrf.mxu3 }
 0x1c6   : > { %3416 = vst.msk [vmem:[%s4631_s10 + $0x290] sm:$0xf] %vm3251_vm3, %v3159_v57  ;;  %v2388_v1 = vmul.f32 %v5382_v23, %v1991_v61  ;;  %v2452_v2 = vmul.f32 %v5382_v23, %v2151_v62  ;;  %v1674_v3 = vpop.f32.mrf.mxu0  ;;  %v1834_v4 = vpop.f32.mrf.mxu1 }
 0x1c7   : > { %3480 = vst.msk [vmem:[%s4631_s10 + $0x390] sm:$0xf] %vm3251_vm3, %v3223_v58  ;;  %v2261_v7 = vmul.f32 %v5382_v23, %v1674_v3  ;;  %v2325_v8 = vmul.f32 %v5382_v23, %v1834_v4 }
 0x1c8   : > { %3289 = vst.msk [vmem:[%s4631_s10 + $0x94] sm:$0xf] %vm3251_vm3, %v3032_v59  ;;  %v2648_v40 = vadd.f32 %v5397_v9, %v2388_v1  ;;  %v2712_v10 = vadd.f32 %v5397_v9, %v2452_v2 }
 0x1c9   : > { %3353 = vst.msk [vmem:[%s4631_s10 + $0x194] sm:$0xf] %vm3251_vm3, %v3096_v60  ;;  %v2521_v11 = vadd.f32 %v5397_v9, %v2261_v7  ;;  %v2585_v12 = vadd.f32 %v5397_v9, %v2325_v8  ;;  %4181 = vmatmul.msk.bf16.gmra.mxu0 %vm1178_vm2, %v4311_v63  ;;  %4213 = vmatmul.msk.bf16.gmra.mxu1 %vm1178_vm2, %v4343_v0 }
 0x1ca   : > { %v2904_v13 = vmax.f32 %v2648_v40, 0.0  ;;  %v2968_v14 = vmax.f32 %v2712_v10, 0.0  ;;  %4245 = vmatmul.msk.bf16.gmra.mxu2 %vm1178_vm2, %v4375_v5  ;;  %4277 = vmatmul.msk.bf16.gmra.mxu3 %vm1178_vm2, %v4407_v6 }
 0x1cb   : > { %v2777_v41 = vmax.f32 %v2521_v11, 0.0  ;;  %v2841_v15 = vmax.f32 %v2585_v12, 0.0 }
 0x1cc   : > { %v3160_v17 = vpack.c.bf16 %v2904_v13, %v2904_v13  ;;  %v3224_v18 = vpack.c.bf16 %v2968_v14, %v2968_v14 }
 0x1cd   : > { %v3033_v19 = vpack.c.bf16 %v2777_v41, %v2777_v41  ;;  %v3097_v20 = vpack.c.bf16 %v2841_v15, %v2841_v15  ;;  %v1994_v21 = vpop.f32.mrf.mxu2  ;;  %v2154_v22 = vpop.f32.mrf.mxu3 }
 0x1ce   : > { %3417 = vst.msk [vmem:[%s4631_s10 + $0x294] sm:$0xf] %vm3251_vm3, %v3160_v17  ;;  %v2389_v24 = vmul.f32 %v5382_v23, %v1994_v21  ;;  %v2453_v25 = vmul.f32 %v5382_v23, %v2154_v22  ;;  %v1676_v26 = vpop.f32.mrf.mxu0  ;;  %v1836_v27 = vpop.f32.mrf.mxu1 }
 0x1cf   : > { %3481 = vst.msk [vmem:[%s4631_s10 + $0x394] sm:$0xf] %vm3251_vm3, %v3224_v18  ;;  %v2262_v28 = vmul.f32 %v5382_v23, %v1676_v26  ;;  %v2326_v29 = vmul.f32 %v5382_v23, %v1836_v27  ;;  %v4313_v26 = vld [vmem:[%s4538_s29 + $0xe8] sm:$0xff] }
 0x1d0   : > { %3290 = vst.msk [vmem:[%s4631_s10 + $0x98] sm:$0xf] %vm3251_vm3, %v3033_v19  ;;  %v2649_v30 = vadd.f32 %v5397_v9, %v2389_v24  ;;  %v2713_v31 = vadd.f32 %v5397_v9, %v2453_v25  ;;  %v4345_v27 = vld [vmem:[%s4538_s29 + $0x1e8] sm:$0xff] }
 0x1d1   : > { %3354 = vst.msk [vmem:[%s4631_s10 + $0x198] sm:$0xf] %vm3251_vm3, %v3097_v20  ;;  %v2522_v32 = vadd.f32 %v5397_v9, %v2262_v28  ;;  %v2586_v33 = vadd.f32 %v5397_v9, %v2326_v29 }
 0x1d2   : > { %v2905_v34 = vmax.f32 %v2649_v30, 0.0  ;;  %v2969_v35 = vmax.f32 %v2713_v31, 0.0 }
 0x1d3   : > { %v2778_v36 = vmax.f32 %v2522_v32, 0.0  ;;  %v2842_v37 = vmax.f32 %v2586_v33, 0.0  ;;  %v4377_v32 = vld [vmem:[%s4538_s29 + $0x2e8] sm:$0xff] }
 0x1d4   : > { %v3161_v38 = vpack.c.bf16 %v2905_v34, %v2905_v34  ;;  %v3225_v39 = vpack.c.bf16 %v2969_v35, %v2969_v35  ;;  %v4409_v33 = vld [vmem:[%s4538_s29 + $0x3e8] sm:$0xff] }
 0x1d5   : > { %v3034_v42 = vpack.c.bf16 %v2778_v36, %v2778_v36  ;;  %v3098_v43 = vpack.c.bf16 %v2842_v37, %v2842_v37  ;;  %v1996_v44 = vpop.f32.mrf.mxu2  ;;  %v2156_v45 = vpop.f32.mrf.mxu3 }
 0x1d6   : > { %3418 = vst.msk [vmem:[%s4631_s10 + $0x298] sm:$0xf] %vm3251_vm3, %v3161_v38  ;;  %v2390_v48 = vmul.f32 %v5382_v23, %v1996_v44  ;;  %v2454_v49 = vmul.f32 %v5382_v23, %v2156_v45  ;;  %v1679_v50 = vpop.f32.mrf.mxu0  ;;  %v1839_v51 = vpop.f32.mrf.mxu1 }
 0x1d7   : > { %3482 = vst.msk [vmem:[%s4631_s10 + $0x398] sm:$0xf] %vm3251_vm3, %v3225_v39  ;;  %v2263_v54 = vmul.f32 %v5382_v23, %v1679_v50  ;;  %v2327_v55 = vmul.f32 %v5382_v23, %v1839_v51 }
 0x1d8   : > { %3291 = vst.msk [vmem:[%s4631_s10 + $0x9c] sm:$0xf] %vm3251_vm3, %v3034_v42  ;;  %v2650_v56 = vadd.f32 %v5397_v9, %v2390_v48  ;;  %v2714_v16 = vadd.f32 %v5397_v9, %v2454_v49 }
 0x1d9   : > { %3355 = vst.msk [vmem:[%s4631_s10 + $0x19c] sm:$0xf] %vm3251_vm3, %v3098_v43  ;;  %v2523_v57 = vadd.f32 %v5397_v9, %v2263_v54  ;;  %v2587_v58 = vadd.f32 %v5397_v9, %v2327_v55  ;;  %4182 = vmatmul.msk.bf16.gmra.mxu0 %vm1178_vm2, %v4312_v46  ;;  %4214 = vmatmul.msk.bf16.gmra.mxu1 %vm1178_vm2, %v4344_v47 }
 0x1da   : > { %v2906_v59 = vmax.f32 %v2650_v56, 0.0  ;;  %v2970_v60 = vmax.f32 %v2714_v16, 0.0  ;;  %4246 = vmatmul.msk.bf16.gmra.mxu2 %vm1178_vm2, %v4376_v52  ;;  %4278 = vmatmul.msk.bf16.gmra.mxu3 %vm1178_vm2, %v4408_v53 }
 0x1db   : > { %v2779_v61 = vmax.f32 %v2523_v57, 0.0  ;;  %v2843_v62 = vmax.f32 %v2587_v58, 0.0 }
 0x1dc   : > { %v3162_v63 = vpack.c.bf16 %v2906_v59, %v2906_v59  ;;  %v3226_v0 = vpack.c.bf16 %v2970_v60, %v2970_v60 }
 0x1dd   : > { %v3035_v1 = vpack.c.bf16 %v2779_v61, %v2779_v61  ;;  %v3099_v2 = vpack.c.bf16 %v2843_v62, %v2843_v62  ;;  %v1999_v3 = vpop.f32.mrf.mxu2  ;;  %v2159_v4 = vpop.f32.mrf.mxu3 }
 0x1de   : > { %3419 = vst.msk [vmem:[%s4631_s10 + $0x29c] sm:$0xf] %vm3251_vm3, %v3162_v63  ;;  %v2391_v5 = vmul.f32 %v5382_v23, %v1999_v3  ;;  %v2455_v6 = vmul.f32 %v5382_v23, %v2159_v4  ;;  %v1681_v7 = vpop.f32.mrf.mxu0  ;;  %v1841_v8 = vpop.f32.mrf.mxu1 }
 0x1df   : > { %3483 = vst.msk [vmem:[%s4631_s10 + $0x39c] sm:$0xf] %vm3251_vm3, %v3226_v0  ;;  %v2264_v40 = vmul.f32 %v5382_v23, %v1681_v7  ;;  %v2328_v10 = vmul.f32 %v5382_v23, %v1841_v8  ;;  %v4314_v7 = vld [vmem:[%s4538_s29 + $0xf0] sm:$0xff] }
 0x1e0   : > { %3292 = vst.msk [vmem:[%s4631_s10 + $0xa0] sm:$0xf] %vm3251_vm3, %v3035_v1  ;;  %v2651_v11 = vadd.f32 %v5397_v9, %v2391_v5  ;;  %v2715_v12 = vadd.f32 %v5397_v9, %v2455_v6  ;;  %v4346_v8 = vld [vmem:[%s4538_s29 + $0x1f0] sm:$0xff] }
 0x1e1   : > { %3356 = vst.msk [vmem:[%s4631_s10 + $0x1a0] sm:$0xf] %vm3251_vm3, %v3099_v2  ;;  %v2524_v13 = vadd.f32 %v5397_v9, %v2264_v40  ;;  %v2588_v14 = vadd.f32 %v5397_v9, %v2328_v10 }
 0x1e2   : > { %v2907_v41 = vmax.f32 %v2651_v11, 0.0  ;;  %v2971_v15 = vmax.f32 %v2715_v12, 0.0 }
 0x1e3   : > { %v2780_v17 = vmax.f32 %v2524_v13, 0.0  ;;  %v2844_v18 = vmax.f32 %v2588_v14, 0.0  ;;  %v4378_v13 = vld [vmem:[%s4538_s29 + $0x2f0] sm:$0xff] }
 0x1e4   : > { %v3163_v19 = vpack.c.bf16 %v2907_v41, %v2907_v41  ;;  %v3227_v20 = vpack.c.bf16 %v2971_v15, %v2971_v15  ;;  %v4410_v14 = vld [vmem:[%s4538_s29 + $0x3f0] sm:$0xff] }
 0x1e5   : > { %v3036_v21 = vpack.c.bf16 %v2780_v17, %v2780_v17  ;;  %v3100_v22 = vpack.c.bf16 %v2844_v18, %v2844_v18  ;;  %v2001_v24 = vpop.f32.mrf.mxu2  ;;  %v2161_v25 = vpop.f32.mrf.mxu3 }
 0x1e6   : > { %3420 = vst.msk [vmem:[%s4631_s10 + $0x2a0] sm:$0xf] %vm3251_vm3, %v3163_v19  ;;  %v2392_v28 = vmul.f32 %v5382_v23, %v2001_v24  ;;  %v2456_v29 = vmul.f32 %v5382_v23, %v2161_v25  ;;  %v1684_v30 = vpop.f32.mrf.mxu0  ;;  %v1844_v31 = vpop.f32.mrf.mxu1 }
 0x1e7   : > { %3484 = vst.msk [vmem:[%s4631_s10 + $0x3a0] sm:$0xf] %vm3251_vm3, %v3227_v20  ;;  %v2265_v34 = vmul.f32 %v5382_v23, %v1684_v30  ;;  %v2329_v35 = vmul.f32 %v5382_v23, %v1844_v31 }
 0x1e8   : > { %3293 = vst.msk [vmem:[%s4631_s10 + $0xa4] sm:$0xf] %vm3251_vm3, %v3036_v21  ;;  %v2652_v36 = vadd.f32 %v5397_v9, %v2392_v28  ;;  %v2716_v37 = vadd.f32 %v5397_v9, %v2456_v29 }
 0x1e9   : > { %3357 = vst.msk [vmem:[%s4631_s10 + $0x1a4] sm:$0xf] %vm3251_vm3, %v3100_v22  ;;  %v2525_v38 = vadd.f32 %v5397_v9, %v2265_v34  ;;  %v2589_v39 = vadd.f32 %v5397_v9, %v2329_v35  ;;  %4183 = vmatmul.msk.bf16.gmra.mxu0 %vm1178_vm2, %v4313_v26  ;;  %4215 = vmatmul.msk.bf16.gmra.mxu1 %vm1178_vm2, %v4345_v27 }
 0x1ea   : > { %v2908_v42 = vmax.f32 %v2652_v36, 0.0  ;;  %v2972_v43 = vmax.f32 %v2716_v37, 0.0  ;;  %4247 = vmatmul.msk.bf16.gmra.mxu2 %vm1178_vm2, %v4377_v32  ;;  %4279 = vmatmul.msk.bf16.gmra.mxu3 %vm1178_vm2, %v4409_v33 }
 0x1eb   : > { %v2781_v44 = vmax.f32 %v2525_v38, 0.0  ;;  %v2845_v45 = vmax.f32 %v2589_v39, 0.0 }
 0x1ec   : > { %v3164_v46 = vpack.c.bf16 %v2908_v42, %v2908_v42  ;;  %v3228_v47 = vpack.c.bf16 %v2972_v43, %v2972_v43 }
 0x1ed   : > { %v3037_v48 = vpack.c.bf16 %v2781_v44, %v2781_v44  ;;  %v3101_v49 = vpack.c.bf16 %v2845_v45, %v2845_v45  ;;  %v2004_v50 = vpop.f32.mrf.mxu2  ;;  %v2164_v51 = vpop.f32.mrf.mxu3 }
 0x1ee   : > { %3421 = vst.msk [vmem:[%s4631_s10 + $0x2a4] sm:$0xf] %vm3251_vm3, %v3164_v46  ;;  %v2393_v52 = vmul.f32 %v5382_v23, %v2004_v50  ;;  %v2457_v53 = vmul.f32 %v5382_v23, %v2164_v51  ;;  %v1686_v54 = vpop.f32.mrf.mxu0  ;;  %v1846_v55 = vpop.f32.mrf.mxu1 }
 0x1ef   : > { %3485 = vst.msk [vmem:[%s4631_s10 + $0x3a4] sm:$0xf] %vm3251_vm3, %v3228_v47  ;;  %v2266_v56 = vmul.f32 %v5382_v23, %v1686_v54  ;;  %v2330_v16 = vmul.f32 %v5382_v23, %v1846_v55  ;;  %v4315_v54 = vld [vmem:[%s4538_s29 + $0xf8] sm:$0xff] }
 0x1f0   : > { %3294 = vst.msk [vmem:[%s4631_s10 + $0xa8] sm:$0xf] %vm3251_vm3, %v3037_v48  ;;  %v2653_v57 = vadd.f32 %v5397_v9, %v2393_v52  ;;  %v2717_v58 = vadd.f32 %v5397_v9, %v2457_v53  ;;  %v4347_v55 = vld [vmem:[%s4538_s29 + $0x1f8] sm:$0xff] }
 0x1f1   : > { %3358 = vst.msk [vmem:[%s4631_s10 + $0x1a8] sm:$0xf] %vm3251_vm3, %v3101_v49  ;;  %v2526_v59 = vadd.f32 %v5397_v9, %v2266_v56  ;;  %v2590_v60 = vadd.f32 %v5397_v9, %v2330_v16 }
 0x1f2   : > { %v2909_v61 = vmax.f32 %v2653_v57, 0.0  ;;  %v2973_v62 = vmax.f32 %v2717_v58, 0.0 }
 0x1f3   : > { %v2782_v63 = vmax.f32 %v2526_v59, 0.0  ;;  %v2846_v0 = vmax.f32 %v2590_v60, 0.0  ;;  %v4379_v59 = vld [vmem:[%s4538_s29 + $0x2f8] sm:$0xff] }
 0x1f4   : > { %v3165_v1 = vpack.c.bf16 %v2909_v61, %v2909_v61  ;;  %v3229_v2 = vpack.c.bf16 %v2973_v62, %v2973_v62  ;;  %v4411_v60 = vld [vmem:[%s4538_s29 + $0x3f8] sm:$0xff] }
 0x1f5   : > { %v3038_v3 = vpack.c.bf16 %v2782_v63, %v2782_v63  ;;  %v3102_v4 = vpack.c.bf16 %v2846_v0, %v2846_v0  ;;  %v2006_v5 = vpop.f32.mrf.mxu2  ;;  %v2166_v6 = vpop.f32.mrf.mxu3 }
 0x1f6   : > { %3422 = vst.msk [vmem:[%s4631_s10 + $0x2a8] sm:$0xf] %vm3251_vm3, %v3165_v1  ;;  %v2394_v40 = vmul.f32 %v5382_v23, %v2006_v5  ;;  %v2458_v10 = vmul.f32 %v5382_v23, %v2166_v6  ;;  %v1689_v11 = vpop.f32.mrf.mxu0  ;;  %v1849_v12 = vpop.f32.mrf.mxu1 }
 0x1f7   : > { %3486 = vst.msk [vmem:[%s4631_s10 + $0x3a8] sm:$0xf] %vm3251_vm3, %v3229_v2  ;;  %v2267_v41 = vmul.f32 %v5382_v23, %v1689_v11  ;;  %v2331_v15 = vmul.f32 %v5382_v23, %v1849_v12 }
 0x1f8   : > { %3295 = vst.msk [vmem:[%s4631_s10 + $0xac] sm:$0xf] %vm3251_vm3, %v3038_v3  ;;  %v2654_v17 = vadd.f32 %v5397_v9, %v2394_v40  ;;  %v2718_v18 = vadd.f32 %v5397_v9, %v2458_v10 }
 0x1f9   : > { %3359 = vst.msk [vmem:[%s4631_s10 + $0x1ac] sm:$0xf] %vm3251_vm3, %v3102_v4  ;;  %v2527_v19 = vadd.f32 %v5397_v9, %v2267_v41  ;;  %v2591_v20 = vadd.f32 %v5397_v9, %v2331_v15  ;;  %4184 = vmatmul.msk.bf16.gmra.mxu0 %vm1178_vm2, %v4314_v7  ;;  %4216 = vmatmul.msk.bf16.gmra.mxu1 %vm1178_vm2, %v4346_v8 }
 0x1fa   : > { %v2910_v21 = vmax.f32 %v2654_v17, 0.0  ;;  %v2974_v22 = vmax.f32 %v2718_v18, 0.0  ;;  %4248 = vmatmul.msk.bf16.gmra.mxu2 %vm1178_vm2, %v4378_v13  ;;  %4280 = vmatmul.msk.bf16.gmra.mxu3 %vm1178_vm2, %v4410_v14 }
 0x1fb   : > { %v2783_v24 = vmax.f32 %v2527_v19, 0.0  ;;  %v2847_v25 = vmax.f32 %v2591_v20, 0.0 }
 0x1fc   : > { %v3166_v26 = vpack.c.bf16 %v2910_v21, %v2910_v21  ;;  %v3230_v27 = vpack.c.bf16 %v2974_v22, %v2974_v22 }
 0x1fd   : > { %v3039_v28 = vpack.c.bf16 %v2783_v24, %v2783_v24  ;;  %v3103_v29 = vpack.c.bf16 %v2847_v25, %v2847_v25  ;;  %v2009_v30 = vpop.f32.mrf.mxu2  ;;  %v2169_v31 = vpop.f32.mrf.mxu3 }
 0x1fe   : > { %3423 = vst.msk [vmem:[%s4631_s10 + $0x2ac] sm:$0xf] %vm3251_vm3, %v3166_v26  ;;  %v2395_v32 = vmul.f32 %v5382_v23, %v2009_v30  ;;  %v2459_v33 = vmul.f32 %v5382_v23, %v2169_v31  ;;  %v1691_v34 = vpop.f32.mrf.mxu0  ;;  %v1851_v35 = vpop.f32.mrf.mxu1 }
 0x1ff   : > { %3487 = vst.msk [vmem:[%s4631_s10 + $0x3ac] sm:$0xf] %vm3251_vm3, %v3230_v27  ;;  %v2268_v36 = vmul.f32 %v5382_v23, %v1691_v34  ;;  %v2332_v37 = vmul.f32 %v5382_v23, %v1851_v35 }
 0x200   : > { %3296 = vst.msk [vmem:[%s4631_s10 + $0xb0] sm:$0xf] %vm3251_vm3, %v3039_v28  ;;  %v2655_v38 = vadd.f32 %v5397_v9, %v2395_v32  ;;  %v2719_v39 = vadd.f32 %v5397_v9, %v2459_v33 }
 0x201   : > { %3360 = vst.msk [vmem:[%s4631_s10 + $0x1b0] sm:$0xf] %vm3251_vm3, %v3103_v29  ;;  %v2528_v42 = vadd.f32 %v5397_v9, %v2268_v36  ;;  %v2592_v43 = vadd.f32 %v5397_v9, %v2332_v37 }
 0x202   : > { %v2911_v44 = vmax.f32 %v2655_v38, 0.0  ;;  %v2975_v45 = vmax.f32 %v2719_v39, 0.0 }
 0x203   : > { %v2784_v46 = vmax.f32 %v2528_v42, 0.0  ;;  %v2848_v47 = vmax.f32 %v2592_v43, 0.0 }
 0x204   : > { %v3167_v48 = vpack.c.bf16 %v2911_v44, %v2911_v44  ;;  %v3231_v49 = vpack.c.bf16 %v2975_v45, %v2975_v45 }
 0x205   : > { %v3040_v50 = vpack.c.bf16 %v2784_v46, %v2784_v46  ;;  %v3104_v51 = vpack.c.bf16 %v2848_v47, %v2848_v47  ;;  %v2011_v52 = vpop.f32.mrf.mxu2  ;;  %v2171_v53 = vpop.f32.mrf.mxu3 }
 0x206   : > { %3424 = vst.msk [vmem:[%s4631_s10 + $0x2b0] sm:$0xf] %vm3251_vm3, %v3167_v48  ;;  %v2396_v56 = vmul.f32 %v5382_v23, %v2011_v52  ;;  %v2460_v16 = vmul.f32 %v5382_v23, %v2171_v53  ;;  %v1694_v57 = vpop.f32.mrf.mxu0  ;;  %v1854_v58 = vpop.f32.mrf.mxu1 }
 0x207   : > { %3488 = vst.msk [vmem:[%s4631_s10 + $0x3b0] sm:$0xf] %vm3251_vm3, %v3231_v49  ;;  %v2269_v61 = vmul.f32 %v5382_v23, %v1694_v57  ;;  %v2333_v62 = vmul.f32 %v5382_v23, %v1854_v58 }
 0x208   : > { %3297 = vst.msk [vmem:[%s4631_s10 + $0xb4] sm:$0xf] %vm3251_vm3, %v3040_v50  ;;  %v2656_v63 = vadd.f32 %v5397_v9, %v2396_v56  ;;  %v2720_v0 = vadd.f32 %v5397_v9, %v2460_v16 }
 0x209   : > { %3361 = vst.msk [vmem:[%s4631_s10 + $0x1b4] sm:$0xf] %vm3251_vm3, %v3104_v51  ;;  %v2529_v1 = vadd.f32 %v5397_v9, %v2269_v61  ;;  %v2593_v2 = vadd.f32 %v5397_v9, %v2333_v62  ;;  %4185 = vmatmul.msk.bf16.gmra.mxu0 %vm1178_vm2, %v4315_v54  ;;  %4217 = vmatmul.msk.bf16.gmra.mxu1 %vm1178_vm2, %v4347_v55 }
 0x20a   : > { %v2912_v3 = vmax.f32 %v2656_v63, 0.0  ;;  %v2976_v4 = vmax.f32 %v2720_v0, 0.0  ;;  %4249 = vmatmul.msk.bf16.gmra.mxu2 %vm1178_vm2, %v4379_v59  ;;  %4281 = vmatmul.msk.bf16.gmra.mxu3 %vm1178_vm2, %v4411_v60 }
 0x20b   : > { %v2785_v5 = vmax.f32 %v2529_v1, 0.0  ;;  %v2849_v6 = vmax.f32 %v2593_v2, 0.0 }
 0x20c   : > { %v3168_v7 = vpack.c.bf16 %v2912_v3, %v2912_v3  ;;  %v3232_v8 = vpack.c.bf16 %v2976_v4, %v2976_v4 }
 0x20d   : > { %v3041_v40 = vpack.c.bf16 %v2785_v5, %v2785_v5  ;;  %v3105_v10 = vpack.c.bf16 %v2849_v6, %v2849_v6  ;;  %v2014_v11 = vpop.f32.mrf.mxu2  ;;  %v2174_v12 = vpop.f32.mrf.mxu3 }
 0x20e   : > { %3425 = vst.msk [vmem:[%s4631_s10 + $0x2b4] sm:$0xf] %vm3251_vm3, %v3168_v7  ;;  %v2397_v13 = vmul.f32 %v5382_v23, %v2014_v11  ;;  %v2461_v14 = vmul.f32 %v5382_v23, %v2174_v12  ;;  %v1696_v41 = vpop.f32.mrf.mxu0  ;;  %v1856_v15 = vpop.f32.mrf.mxu1 }
 0x20f   : > { %3489 = vst.msk [vmem:[%s4631_s10 + $0x3b4] sm:$0xf] %vm3251_vm3, %v3232_v8  ;;  %v2270_v17 = vmul.f32 %v5382_v23, %v1696_v41  ;;  %v2334_v18 = vmul.f32 %v5382_v23, %v1856_v15 }
 0x210   : > { %3298 = vst.msk [vmem:[%s4631_s10 + $0xb8] sm:$0xf] %vm3251_vm3, %v3041_v40  ;;  %v2657_v19 = vadd.f32 %v5397_v9, %v2397_v13  ;;  %v2721_v20 = vadd.f32 %v5397_v9, %v2461_v14 }
 0x211   : > { %3362 = vst.msk [vmem:[%s4631_s10 + $0x1b8] sm:$0xf] %vm3251_vm3, %v3105_v10  ;;  %v2530_v21 = vadd.f32 %v5397_v9, %v2270_v17  ;;  %v2594_v22 = vadd.f32 %v5397_v9, %v2334_v18 }
 0x212   : > { %v2913_v24 = vmax.f32 %v2657_v19, 0.0  ;;  %v2977_v25 = vmax.f32 %v2721_v20, 0.0 }
 0x213   : > { %v2786_v26 = vmax.f32 %v2530_v21, 0.0  ;;  %v2850_v27 = vmax.f32 %v2594_v22, 0.0 }
 0x214   : > { %v3169_v28 = vpack.c.bf16 %v2913_v24, %v2913_v24  ;;  %v3233_v29 = vpack.c.bf16 %v2977_v25, %v2977_v25 }
 0x215   : > { %v3042_v30 = vpack.c.bf16 %v2786_v26, %v2786_v26  ;;  %v3106_v31 = vpack.c.bf16 %v2850_v27, %v2850_v27  ;;  %v2016_v32 = vpop.f32.mrf.mxu2  ;;  %v2176_v33 = vpop.f32.mrf.mxu3 }
 0x216   : > { %3426 = vst.msk [vmem:[%s4631_s10 + $0x2b8] sm:$0xf] %vm3251_vm3, %v3169_v28  ;;  %v2398_v34 = vmul.f32 %v5382_v23, %v2016_v32  ;;  %v2462_v35 = vmul.f32 %v5382_v23, %v2176_v33  ;;  %v1699_v36 = vpop.f32.mrf.mxu0  ;;  %v1859_v37 = vpop.f32.mrf.mxu1 }
 0x217   : > { %3490 = vst.msk [vmem:[%s4631_s10 + $0x3b8] sm:$0xf] %vm3251_vm3, %v3233_v29  ;;  %v2271_v38 = vmul.f32 %v5382_v23, %v1699_v36  ;;  %v2335_v39 = vmul.f32 %v5382_v23, %v1859_v37 }
 0x218   : > { %3299 = vst.msk [vmem:[%s4631_s10 + $0xbc] sm:$0xf] %vm3251_vm3, %v3042_v30  ;;  %v2658_v42 = vadd.f32 %v5397_v9, %v2398_v34  ;;  %v2722_v43 = vadd.f32 %v5397_v9, %v2462_v35 }
 0x219   : > { %3363 = vst.msk [vmem:[%s4631_s10 + $0x1bc] sm:$0xf] %vm3251_vm3, %v3106_v31  ;;  %v2531_v44 = vadd.f32 %v5397_v9, %v2271_v38  ;;  %v2595_v45 = vadd.f32 %v5397_v9, %v2335_v39 }
 0x21a   : > { %v2914_v46 = vmax.f32 %v2658_v42, 0.0  ;;  %v2978_v47 = vmax.f32 %v2722_v43, 0.0 }
 0x21b   : > { %v2787_v48 = vmax.f32 %v2531_v44, 0.0  ;;  %v2851_v49 = vmax.f32 %v2595_v45, 0.0 }
 0x21c   : > { %v3170_v50 = vpack.c.bf16 %v2914_v46, %v2914_v46  ;;  %v3234_v51 = vpack.c.bf16 %v2978_v47, %v2978_v47 }
 0x21d   : > { %v3043_v52 = vpack.c.bf16 %v2787_v48, %v2787_v48  ;;  %v3107_v53 = vpack.c.bf16 %v2851_v49, %v2851_v49  ;;  %v2019_v54 = vpop.f32.mrf.mxu2  ;;  %v2179_v55 = vpop.f32.mrf.mxu3 }
 0x21e   : > { %3427 = vst.msk [vmem:[%s4631_s10 + $0x2bc] sm:$0xf] %vm3251_vm3, %v3170_v50  ;;  %v2399_v56 = vmul.f32 %v5382_v23, %v2019_v54  ;;  %v2463_v16 = vmul.f32 %v5382_v23, %v2179_v55  ;;  %v1701_v57 = vpop.f32.mrf.mxu0  ;;  %v1861_v58 = vpop.f32.mrf.mxu1 }
 0x21f   : > { %3491 = vst.msk [vmem:[%s4631_s10 + $0x3bc] sm:$0xf] %vm3251_vm3, %v3234_v51  ;;  %v2272_v59 = vmul.f32 %v5382_v23, %v1701_v57  ;;  %v2336_v60 = vmul.f32 %v5382_v23, %v1861_v58 }
 0x220   : > { %3300 = vst.msk [vmem:[%s4631_s10 + $0xc0] sm:$0xf] %vm3251_vm3, %v3043_v52  ;;  %v2659_v61 = vadd.f32 %v5397_v9, %v2399_v56  ;;  %v2723_v62 = vadd.f32 %v5397_v9, %v2463_v16 }
 0x221   : > { %3364 = vst.msk [vmem:[%s4631_s10 + $0x1c0] sm:$0xf] %vm3251_vm3, %v3107_v53  ;;  %v2532_v63 = vadd.f32 %v5397_v9, %v2272_v59  ;;  %v2596_v0 = vadd.f32 %v5397_v9, %v2336_v60 }
 0x222   : > { %v2915_v1 = vmax.f32 %v2659_v61, 0.0  ;;  %v2979_v2 = vmax.f32 %v2723_v62, 0.0 }
 0x223   : > { %v2788_v3 = vmax.f32 %v2532_v63, 0.0  ;;  %v2852_v4 = vmax.f32 %v2596_v0, 0.0 }
 0x224   : > { %v3171_v5 = vpack.c.bf16 %v2915_v1, %v2915_v1  ;;  %v3235_v6 = vpack.c.bf16 %v2979_v2, %v2979_v2 }
 0x225   : > { %v3044_v7 = vpack.c.bf16 %v2788_v3, %v2788_v3  ;;  %v3108_v8 = vpack.c.bf16 %v2852_v4, %v2852_v4  ;;  %v2021_v40 = vpop.f32.mrf.mxu2  ;;  %v2181_v10 = vpop.f32.mrf.mxu3 }
 0x226   : > { %3428 = vst.msk [vmem:[%s4631_s10 + $0x2c0] sm:$0xf] %vm3251_vm3, %v3171_v5  ;;  %v2400_v11 = vmul.f32 %v5382_v23, %v2021_v40  ;;  %v2464_v12 = vmul.f32 %v5382_v23, %v2181_v10  ;;  %v1704_v13 = vpop.f32.mrf.mxu0  ;;  %v1864_v14 = vpop.f32.mrf.mxu1 }
 0x227   : > { %3492 = vst.msk [vmem:[%s4631_s10 + $0x3c0] sm:$0xf] %vm3251_vm3, %v3235_v6  ;;  %v2273_v41 = vmul.f32 %v5382_v23, %v1704_v13  ;;  %v2337_v15 = vmul.f32 %v5382_v23, %v1864_v14 }
 0x228   : > { %3301 = vst.msk [vmem:[%s4631_s10 + $0xc4] sm:$0xf] %vm3251_vm3, %v3044_v7  ;;  %v2660_v17 = vadd.f32 %v5397_v9, %v2400_v11  ;;  %v2724_v18 = vadd.f32 %v5397_v9, %v2464_v12 }
 0x229   : > { %3365 = vst.msk [vmem:[%s4631_s10 + $0x1c4] sm:$0xf] %vm3251_vm3, %v3108_v8  ;;  %v2533_v19 = vadd.f32 %v5397_v9, %v2273_v41  ;;  %v2597_v20 = vadd.f32 %v5397_v9, %v2337_v15 }
 0x22a   : > { %v2916_v21 = vmax.f32 %v2660_v17, 0.0  ;;  %v2980_v22 = vmax.f32 %v2724_v18, 0.0 }
 0x22b   : > { %v2789_v24 = vmax.f32 %v2533_v19, 0.0  ;;  %v2853_v25 = vmax.f32 %v2597_v20, 0.0 }
 0x22c   : > { %v3172_v26 = vpack.c.bf16 %v2916_v21, %v2916_v21  ;;  %v3236_v27 = vpack.c.bf16 %v2980_v22, %v2980_v22 }
 0x22d   : > { %v3045_v28 = vpack.c.bf16 %v2789_v24, %v2789_v24  ;;  %v3109_v29 = vpack.c.bf16 %v2853_v25, %v2853_v25  ;;  %v2024_v30 = vpop.f32.mrf.mxu2  ;;  %v2184_v31 = vpop.f32.mrf.mxu3 }
 0x22e   : > { %3429 = vst.msk [vmem:[%s4631_s10 + $0x2c4] sm:$0xf] %vm3251_vm3, %v3172_v26  ;;  %v2401_v32 = vmul.f32 %v5382_v23, %v2024_v30  ;;  %v2465_v33 = vmul.f32 %v5382_v23, %v2184_v31  ;;  %v1706_v34 = vpop.f32.mrf.mxu0  ;;  %v1866_v35 = vpop.f32.mrf.mxu1 }
 0x22f   : > { %3493 = vst.msk [vmem:[%s4631_s10 + $0x3c4] sm:$0xf] %vm3251_vm3, %v3236_v27  ;;  %v2274_v36 = vmul.f32 %v5382_v23, %v1706_v34  ;;  %v2338_v37 = vmul.f32 %v5382_v23, %v1866_v35 }
 0x230   : > { %3302 = vst.msk [vmem:[%s4631_s10 + $0xc8] sm:$0xf] %vm3251_vm3, %v3045_v28  ;;  %v2661_v38 = vadd.f32 %v5397_v9, %v2401_v32  ;;  %v2725_v39 = vadd.f32 %v5397_v9, %v2465_v33 }
 0x231   : > { %3366 = vst.msk [vmem:[%s4631_s10 + $0x1c8] sm:$0xf] %vm3251_vm3, %v3109_v29  ;;  %v2534_v42 = vadd.f32 %v5397_v9, %v2274_v36  ;;  %v2598_v43 = vadd.f32 %v5397_v9, %v2338_v37 }
 0x232   : > { %v2917_v44 = vmax.f32 %v2661_v38, 0.0  ;;  %v2981_v45 = vmax.f32 %v2725_v39, 0.0 }
 0x233   : > { %v2790_v46 = vmax.f32 %v2534_v42, 0.0  ;;  %v2854_v47 = vmax.f32 %v2598_v43, 0.0 }
 0x234   : > { %v3173_v48 = vpack.c.bf16 %v2917_v44, %v2917_v44  ;;  %v3237_v49 = vpack.c.bf16 %v2981_v45, %v2981_v45 }
 0x235   : > { %v3046_v50 = vpack.c.bf16 %v2790_v46, %v2790_v46  ;;  %v3110_v51 = vpack.c.bf16 %v2854_v47, %v2854_v47  ;;  %v2026_v52 = vpop.f32.mrf.mxu2  ;;  %v2186_v53 = vpop.f32.mrf.mxu3 }
 0x236   : > { %3430 = vst.msk [vmem:[%s4631_s10 + $0x2c8] sm:$0xf] %vm3251_vm3, %v3173_v48  ;;  %v2402_v54 = vmul.f32 %v5382_v23, %v2026_v52  ;;  %v2466_v55 = vmul.f32 %v5382_v23, %v2186_v53  ;;  %v1709_v56 = vpop.f32.mrf.mxu0  ;;  %v1869_v16 = vpop.f32.mrf.mxu1 }
 0x237   : > { %3494 = vst.msk [vmem:[%s4631_s10 + $0x3c8] sm:$0xf] %vm3251_vm3, %v3237_v49  ;;  %v2275_v57 = vmul.f32 %v5382_v23, %v1709_v56  ;;  %v2339_v58 = vmul.f32 %v5382_v23, %v1869_v16 }
 0x238   : > { %3303 = vst.msk [vmem:[%s4631_s10 + $0xcc] sm:$0xf] %vm3251_vm3, %v3046_v50  ;;  %v2662_v59 = vadd.f32 %v5397_v9, %v2402_v54  ;;  %v2726_v60 = vadd.f32 %v5397_v9, %v2466_v55 }
 0x239   : > { %3367 = vst.msk [vmem:[%s4631_s10 + $0x1cc] sm:$0xf] %vm3251_vm3, %v3110_v51  ;;  %v2535_v61 = vadd.f32 %v5397_v9, %v2275_v57  ;;  %v2599_v62 = vadd.f32 %v5397_v9, %v2339_v58 }
 0x23a   : > { %v2918_v63 = vmax.f32 %v2662_v59, 0.0  ;;  %v2982_v0 = vmax.f32 %v2726_v60, 0.0 }
 0x23b   : > { %v2791_v1 = vmax.f32 %v2535_v61, 0.0  ;;  %v2855_v2 = vmax.f32 %v2599_v62, 0.0 }
 0x23c   : > { %v3174_v3 = vpack.c.bf16 %v2918_v63, %v2918_v63  ;;  %v3238_v4 = vpack.c.bf16 %v2982_v0, %v2982_v0 }
 0x23d   : > { %v3047_v5 = vpack.c.bf16 %v2791_v1, %v2791_v1  ;;  %v3111_v6 = vpack.c.bf16 %v2855_v2, %v2855_v2  ;;  %v2029_v7 = vpop.f32.mrf.mxu2  ;;  %v2189_v8 = vpop.f32.mrf.mxu3 }
 0x23e   : > { %3431 = vst.msk [vmem:[%s4631_s10 + $0x2cc] sm:$0xf] %vm3251_vm3, %v3174_v3  ;;  %v2403_v40 = vmul.f32 %v5382_v23, %v2029_v7  ;;  %v2467_v10 = vmul.f32 %v5382_v23, %v2189_v8  ;;  %v1711_v11 = vpop.f32.mrf.mxu0  ;;  %v1871_v12 = vpop.f32.mrf.mxu1 }
 0x23f   : > { %3495 = vst.msk [vmem:[%s4631_s10 + $0x3cc] sm:$0xf] %vm3251_vm3, %v3238_v4  ;;  %v2276_v13 = vmul.f32 %v5382_v23, %v1711_v11  ;;  %v2340_v14 = vmul.f32 %v5382_v23, %v1871_v12 }
 0x240   : > { %3304 = vst.msk [vmem:[%s4631_s10 + $0xd0] sm:$0xf] %vm3251_vm3, %v3047_v5  ;;  %v2663_v41 = vadd.f32 %v5397_v9, %v2403_v40  ;;  %v2727_v15 = vadd.f32 %v5397_v9, %v2467_v10 }
 0x241   : > { %3368 = vst.msk [vmem:[%s4631_s10 + $0x1d0] sm:$0xf] %vm3251_vm3, %v3111_v6  ;;  %v2536_v17 = vadd.f32 %v5397_v9, %v2276_v13  ;;  %v2600_v18 = vadd.f32 %v5397_v9, %v2340_v14 }
 0x242   : > { %v2919_v19 = vmax.f32 %v2663_v41, 0.0  ;;  %v2983_v20 = vmax.f32 %v2727_v15, 0.0 }
 0x243   : > { %v2792_v21 = vmax.f32 %v2536_v17, 0.0  ;;  %v2856_v22 = vmax.f32 %v2600_v18, 0.0 }
 0x244   : > { %v3175_v24 = vpack.c.bf16 %v2919_v19, %v2919_v19  ;;  %v3239_v25 = vpack.c.bf16 %v2983_v20, %v2983_v20 }
 0x245   : > { %v3048_v26 = vpack.c.bf16 %v2792_v21, %v2792_v21  ;;  %v3112_v27 = vpack.c.bf16 %v2856_v22, %v2856_v22  ;;  %v2031_v28 = vpop.f32.mrf.mxu2  ;;  %v2191_v29 = vpop.f32.mrf.mxu3 }
 0x246   : > { %3432 = vst.msk [vmem:[%s4631_s10 + $0x2d0] sm:$0xf] %vm3251_vm3, %v3175_v24  ;;  %v2404_v30 = vmul.f32 %v5382_v23, %v2031_v28  ;;  %v2468_v31 = vmul.f32 %v5382_v23, %v2191_v29  ;;  %v1714_v32 = vpop.f32.mrf.mxu0  ;;  %v1874_v33 = vpop.f32.mrf.mxu1 }
 0x247   : > { %3496 = vst.msk [vmem:[%s4631_s10 + $0x3d0] sm:$0xf] %vm3251_vm3, %v3239_v25  ;;  %v2277_v34 = vmul.f32 %v5382_v23, %v1714_v32  ;;  %v2341_v35 = vmul.f32 %v5382_v23, %v1874_v33 }
 0x248   : > { %3305 = vst.msk [vmem:[%s4631_s10 + $0xd4] sm:$0xf] %vm3251_vm3, %v3048_v26  ;;  %v2664_v36 = vadd.f32 %v5397_v9, %v2404_v30  ;;  %v2728_v37 = vadd.f32 %v5397_v9, %v2468_v31 }
 0x249   : > { %3369 = vst.msk [vmem:[%s4631_s10 + $0x1d4] sm:$0xf] %vm3251_vm3, %v3112_v27  ;;  %v2537_v38 = vadd.f32 %v5397_v9, %v2277_v34  ;;  %v2601_v39 = vadd.f32 %v5397_v9, %v2341_v35 }
 0x24a   : > { %v2920_v42 = vmax.f32 %v2664_v36, 0.0  ;;  %v2984_v43 = vmax.f32 %v2728_v37, 0.0 }
 0x24b   : > { %v2793_v44 = vmax.f32 %v2537_v38, 0.0  ;;  %v2857_v45 = vmax.f32 %v2601_v39, 0.0 }
 0x24c   : > { %v3176_v46 = vpack.c.bf16 %v2920_v42, %v2920_v42  ;;  %v3240_v47 = vpack.c.bf16 %v2984_v43, %v2984_v43 }
 0x24d   : > { %v3049_v48 = vpack.c.bf16 %v2793_v44, %v2793_v44  ;;  %v3113_v49 = vpack.c.bf16 %v2857_v45, %v2857_v45  ;;  %v2034_v50 = vpop.f32.mrf.mxu2  ;;  %v2194_v51 = vpop.f32.mrf.mxu3 }
 0x24e   : > { %3433 = vst.msk [vmem:[%s4631_s10 + $0x2d4] sm:$0xf] %vm3251_vm3, %v3176_v46  ;;  %v2405_v52 = vmul.f32 %v5382_v23, %v2034_v50  ;;  %v2469_v53 = vmul.f32 %v5382_v23, %v2194_v51  ;;  %v1716_v54 = vpop.f32.mrf.mxu0  ;;  %v1876_v55 = vpop.f32.mrf.mxu1 }
 0x24f   : > { %3497 = vst.msk [vmem:[%s4631_s10 + $0x3d4] sm:$0xf] %vm3251_vm3, %v3240_v47  ;;  %v2278_v56 = vmul.f32 %v5382_v23, %v1716_v54  ;;  %v2342_v16 = vmul.f32 %v5382_v23, %v1876_v55  ;;  %v5763_v55 = vld [vmem:[%s5879_s3] ss:$0 sm:$0xff] }
 0x250   : > { %3306 = vst.msk [vmem:[%s4631_s10 + $0xd8] sm:$0xf] %vm3251_vm3, %v3049_v48  ;;  %v2665_v57 = vadd.f32 %v5397_v9, %v2405_v52  ;;  %v2729_v58 = vadd.f32 %v5397_v9, %v2469_v53 }
 0x251   : > { %3370 = vst.msk [vmem:[%s4631_s10 + $0x1d8] sm:$0xf] %vm3251_vm3, %v3113_v49  ;;  %v2538_v59 = vadd.f32 %v5397_v9, %v2278_v56  ;;  %v2602_v60 = vadd.f32 %v5397_v9, %v2342_v16  ;;  %v5750_v49 = vld [vmem:[%s5878_s2] ss:$0 sm:$0xff] }
 0x252   : > { %v2921_v61 = vmax.f32 %v2665_v57, 0.0  ;;  %v2985_v62 = vmax.f32 %v2729_v58, 0.0 }
 0x253   : > { %v2794_v63 = vmax.f32 %v2538_v59, 0.0  ;;  %v2858_v0 = vmax.f32 %v2602_v60, 0.0 }
 0x254   : > { %v3177_v1 = vpack.c.bf16 %v2921_v61, %v2921_v61  ;;  %v3241_v2 = vpack.c.bf16 %v2985_v62, %v2985_v62 }
 0x255   : > { %v3050_v3 = vpack.c.bf16 %v2794_v63, %v2794_v63  ;;  %v3114_v4 = vpack.c.bf16 %v2858_v0, %v2858_v0  ;;  %v2036_v5 = vpop.f32.mrf.mxu2  ;;  %v2196_v6 = vpop.f32.mrf.mxu3 }
 0x256   : > { %3434 = vst.msk [vmem:[%s4631_s10 + $0x2d8] sm:$0xf] %vm3251_vm3, %v3177_v1  ;;  %v2406_v7 = vmul.f32 %v5382_v23, %v2036_v5  ;;  %v2470_v8 = vmul.f32 %v5382_v23, %v2196_v6  ;;  %v1719_v40 = vpop.f32.mrf.mxu0  ;;  %v1879_v10 = vpop.f32.mrf.mxu1 }
 0x257   : > { %3498 = vst.msk [vmem:[%s4631_s10 + $0x3d8] sm:$0xf] %vm3251_vm3, %v3241_v2  ;;  %v2279_v11 = vmul.f32 %v5382_v23, %v1719_v40  ;;  %v2343_v12 = vmul.f32 %v5382_v23, %v1879_v10 }
 0x258   : > { %3307 = vst.msk [vmem:[%s4631_s10 + $0xdc] sm:$0xf] %vm3251_vm3, %v3050_v3  ;;  %v2666_v13 = vadd.f32 %v5397_v9, %v2406_v7  ;;  %v2730_v14 = vadd.f32 %v5397_v9, %v2470_v8 }
 0x259   : > { %3371 = vst.msk [vmem:[%s4631_s10 + $0x1dc] sm:$0xf] %vm3251_vm3, %v3114_v4  ;;  %v2539_v41 = vadd.f32 %v5397_v9, %v2279_v11  ;;  %v2603_v15 = vadd.f32 %v5397_v9, %v2343_v12 }
 0x25a   : > { %v2922_v17 = vmax.f32 %v2666_v13, 0.0  ;;  %v2986_v18 = vmax.f32 %v2730_v14, 0.0 }
 0x25b   : > { %v2795_v19 = vmax.f32 %v2539_v41, 0.0  ;;  %v2859_v20 = vmax.f32 %v2603_v15, 0.0 }
 0x25c   : > { %v3178_v21 = vpack.c.bf16 %v2922_v17, %v2922_v17  ;;  %v3242_v22 = vpack.c.bf16 %v2986_v18, %v2986_v18 }
 0x25d   : > { %v3051_v24 = vpack.c.bf16 %v2795_v19, %v2795_v19  ;;  %v3115_v25 = vpack.c.bf16 %v2859_v20, %v2859_v20  ;;  %v2039_v26 = vpop.f32.mrf.mxu2  ;;  %v2199_v27 = vpop.f32.mrf.mxu3 }
 0x25e   : > { %3435 = vst.msk [vmem:[%s4631_s10 + $0x2dc] sm:$0xf] %vm3251_vm3, %v3178_v21  ;;  %v2407_v28 = vmul.f32 %v5382_v23, %v2039_v26  ;;  %v2471_v29 = vmul.f32 %v5382_v23, %v2199_v27  ;;  %v1721_v30 = vpop.f32.mrf.mxu0  ;;  %v1881_v31 = vpop.f32.mrf.mxu1 }
 0x25f   : > { %3499 = vst.msk [vmem:[%s4631_s10 + $0x3dc] sm:$0xf] %vm3251_vm3, %v3242_v22  ;;  %v2280_v32 = vmul.f32 %v5382_v23, %v1721_v30  ;;  %v2344_v33 = vmul.f32 %v5382_v23, %v1881_v31 }
 0x260   : > { %3308 = vst.msk [vmem:[%s4631_s10 + $0xe0] sm:$0xf] %vm3251_vm3, %v3051_v24  ;;  %v2667_v34 = vadd.f32 %v5397_v9, %v2407_v28  ;;  %v2731_v35 = vadd.f32 %v5397_v9, %v2471_v29 }
 0x261   : > { %3372 = vst.msk [vmem:[%s4631_s10 + $0x1e0] sm:$0xf] %vm3251_vm3, %v3115_v25  ;;  %v2540_v36 = vadd.f32 %v5397_v9, %v2280_v32  ;;  %v2604_v37 = vadd.f32 %v5397_v9, %v2344_v33 }
 0x262   : > { %v2923_v38 = vmax.f32 %v2667_v34, 0.0  ;;  %v2987_v39 = vmax.f32 %v2731_v35, 0.0 }
 0x263   : > { %v2796_v42 = vmax.f32 %v2540_v36, 0.0  ;;  %v2860_v43 = vmax.f32 %v2604_v37, 0.0 }
 0x264   : > { %v3179_v23 = vpack.c.bf16 %v2923_v38, %v2923_v38  ;;  %v3243_v44 = vpack.c.bf16 %v2987_v39, %v2987_v39 }
 0x265   : > { %v3052_v45 = vpack.c.bf16 %v2796_v42, %v2796_v42  ;;  %v3116_v46 = vpack.c.bf16 %v2860_v43, %v2860_v43  ;;  %v2041_v47 = vpop.f32.mrf.mxu2  ;;  %v2201_v48 = vpop.f32.mrf.mxu3 }
 0x266   : > { %3436 = vst.msk [vmem:[%s4631_s10 + $0x2e0] sm:$0xf] %vm3251_vm3, %v3179_v23  ;;  %v2408_v9 = vmul.f32 %v5750_v49, %v2041_v47  ;;  %v2472_v50 = vmul.f32 %v5750_v49, %v2201_v48  ;;  %v1724_v51 = vpop.f32.mrf.mxu0  ;;  %v1884_v52 = vpop.f32.mrf.mxu1 }
 0x267   : > { %3500 = vst.msk [vmem:[%s4631_s10 + $0x3e0] sm:$0xf] %vm3251_vm3, %v3243_v44  ;;  %v2281_v53 = vmul.f32 %v5750_v49, %v1724_v51  ;;  %v2345_v54 = vmul.f32 %v5750_v49, %v1884_v52 }
 0x268   : > { %3309 = vst.msk [vmem:[%s4631_s10 + $0xe4] sm:$0xf] %vm3251_vm3, %v3052_v45  ;;  %v2668_v56 = vadd.f32 %v5763_v55, %v2408_v9  ;;  %v2732_v16 = vadd.f32 %v5763_v55, %v2472_v50 }
 0x269   : > { %3373 = vst.msk [vmem:[%s4631_s10 + $0x1e4] sm:$0xf] %vm3251_vm3, %v3116_v46  ;;  %v2541_v57 = vadd.f32 %v5763_v55, %v2281_v53  ;;  %v2605_v58 = vadd.f32 %v5763_v55, %v2345_v54 }
 0x26a   : > { %v2924_v59 = vmax.f32 %v2668_v56, 0.0  ;;  %v2988_v60 = vmax.f32 %v2732_v16, 0.0 }
 0x26b   : > { %v2797_v61 = vmax.f32 %v2541_v57, 0.0  ;;  %v2861_v62 = vmax.f32 %v2605_v58, 0.0 }
 0x26c   : > { %v3180_v63 = vpack.c.bf16 %v2924_v59, %v2924_v59  ;;  %v3244_v0 = vpack.c.bf16 %v2988_v60, %v2988_v60 }
 0x26d   : > { %v3053_v1 = vpack.c.bf16 %v2797_v61, %v2797_v61  ;;  %v3117_v2 = vpack.c.bf16 %v2861_v62, %v2861_v62  ;;  %v2044_v3 = vpop.f32.mrf.mxu2  ;;  %v2204_v4 = vpop.f32.mrf.mxu3 }
 0x26e   : > { %3437 = vst.msk [vmem:[%s4631_s10 + $0x2e4] sm:$0xf] %vm3251_vm3, %v3180_v63  ;;  %v2409_v5 = vmul.f32 %v5750_v49, %v2044_v3  ;;  %v2473_v6 = vmul.f32 %v5750_v49, %v2204_v4  ;;  %v1726_v7 = vpop.f32.mrf.mxu0  ;;  %v1886_v8 = vpop.f32.mrf.mxu1 }
 0x26f   : > { %3501 = vst.msk [vmem:[%s4631_s10 + $0x3e4] sm:$0xf] %vm3251_vm3, %v3244_v0  ;;  %v2282_v40 = vmul.f32 %v5750_v49, %v1726_v7  ;;  %v2346_v10 = vmul.f32 %v5750_v49, %v1886_v8 }
 0x270   : > { %3310 = vst.msk [vmem:[%s4631_s10 + $0xe8] sm:$0xf] %vm3251_vm3, %v3053_v1  ;;  %v2669_v11 = vadd.f32 %v5763_v55, %v2409_v5  ;;  %v2733_v12 = vadd.f32 %v5763_v55, %v2473_v6 }
 0x271   : > { %3374 = vst.msk [vmem:[%s4631_s10 + $0x1e8] sm:$0xf] %vm3251_vm3, %v3117_v2  ;;  %v2542_v13 = vadd.f32 %v5763_v55, %v2282_v40  ;;  %v2606_v14 = vadd.f32 %v5763_v55, %v2346_v10 }
 0x272   : > { %v2925_v41 = vmax.f32 %v2669_v11, 0.0  ;;  %v2989_v15 = vmax.f32 %v2733_v12, 0.0 }
 0x273   : > { %v2798_v17 = vmax.f32 %v2542_v13, 0.0  ;;  %v2862_v18 = vmax.f32 %v2606_v14, 0.0 }
 0x274   : > { %v3181_v19 = vpack.c.bf16 %v2925_v41, %v2925_v41  ;;  %v3245_v20 = vpack.c.bf16 %v2989_v15, %v2989_v15 }
 0x275   : > { %v3054_v21 = vpack.c.bf16 %v2798_v17, %v2798_v17  ;;  %v3118_v22 = vpack.c.bf16 %v2862_v18, %v2862_v18  ;;  %v2046_v24 = vpop.f32.mrf.mxu2  ;;  %v2206_v25 = vpop.f32.mrf.mxu3 }
 0x276   : > { %3438 = vst.msk [vmem:[%s4631_s10 + $0x2e8] sm:$0xf] %vm3251_vm3, %v3181_v19  ;;  %v2410_v26 = vmul.f32 %v5750_v49, %v2046_v24  ;;  %v2474_v27 = vmul.f32 %v5750_v49, %v2206_v25  ;;  %v1729_v28 = vpop.f32.mrf.mxu0  ;;  %v1889_v29 = vpop.f32.mrf.mxu1 }
 0x277   : > { %3502 = vst.msk [vmem:[%s4631_s10 + $0x3e8] sm:$0xf] %vm3251_vm3, %v3245_v20  ;;  %v2283_v30 = vmul.f32 %v5750_v49, %v1729_v28  ;;  %v2347_v31 = vmul.f32 %v5750_v49, %v1889_v29 }
 0x278   : > { %3311 = vst.msk [vmem:[%s4631_s10 + $0xec] sm:$0xf] %vm3251_vm3, %v3054_v21  ;;  %v2670_v32 = vadd.f32 %v5763_v55, %v2410_v26  ;;  %v2734_v33 = vadd.f32 %v5763_v55, %v2474_v27 }
 0x279   : > { %3375 = vst.msk [vmem:[%s4631_s10 + $0x1ec] sm:$0xf] %vm3251_vm3, %v3118_v22  ;;  %v2543_v34 = vadd.f32 %v5763_v55, %v2283_v30  ;;  %v2607_v35 = vadd.f32 %v5763_v55, %v2347_v31 }
 0x27a   : > { %v2926_v36 = vmax.f32 %v2670_v32, 0.0  ;;  %v2990_v37 = vmax.f32 %v2734_v33, 0.0 }
 0x27b   : > { %v2799_v38 = vmax.f32 %v2543_v34, 0.0  ;;  %v2863_v39 = vmax.f32 %v2607_v35, 0.0 }
 0x27c   : > { %v3182_v42 = vpack.c.bf16 %v2926_v36, %v2926_v36  ;;  %v3246_v43 = vpack.c.bf16 %v2990_v37, %v2990_v37 }
 0x27d   : > { %v3055_v23 = vpack.c.bf16 %v2799_v38, %v2799_v38  ;;  %v3119_v44 = vpack.c.bf16 %v2863_v39, %v2863_v39  ;;  %v2049_v45 = vpop.f32.mrf.mxu2  ;;  %v2209_v46 = vpop.f32.mrf.mxu3 }
 0x27e   : > { %3439 = vst.msk [vmem:[%s4631_s10 + $0x2ec] sm:$0xf] %vm3251_vm3, %v3182_v42  ;;  %v2411_v47 = vmul.f32 %v5750_v49, %v2049_v45  ;;  %v2475_v48 = vmul.f32 %v5750_v49, %v2209_v46  ;;  %v1731_v9 = vpop.f32.mrf.mxu0  ;;  %v1891_v50 = vpop.f32.mrf.mxu1 }
 0x27f   : > { %3503 = vst.msk [vmem:[%s4631_s10 + $0x3ec] sm:$0xf] %vm3251_vm3, %v3246_v43  ;;  %v2284_v51 = vmul.f32 %v5750_v49, %v1731_v9  ;;  %v2348_v52 = vmul.f32 %v5750_v49, %v1891_v50 }
 0x280   : > { %3312 = vst.msk [vmem:[%s4631_s10 + $0xf0] sm:$0xf] %vm3251_vm3, %v3055_v23  ;;  %v2671_v53 = vadd.f32 %v5763_v55, %v2411_v47  ;;  %v2735_v54 = vadd.f32 %v5763_v55, %v2475_v48 }
 0x281   : > { %3376 = vst.msk [vmem:[%s4631_s10 + $0x1f0] sm:$0xf] %vm3251_vm3, %v3119_v44  ;;  %v2544_v56 = vadd.f32 %v5763_v55, %v2284_v51  ;;  %v2608_v16 = vadd.f32 %v5763_v55, %v2348_v52 }
 0x282   : > { %v2927_v57 = vmax.f32 %v2671_v53, 0.0  ;;  %v2991_v58 = vmax.f32 %v2735_v54, 0.0 }
 0x283   : > { %v2800_v59 = vmax.f32 %v2544_v56, 0.0  ;;  %v2864_v60 = vmax.f32 %v2608_v16, 0.0 }
 0x284   : > { %v3183_v61 = vpack.c.bf16 %v2927_v57, %v2927_v57  ;;  %v3247_v62 = vpack.c.bf16 %v2991_v58, %v2991_v58 }
 0x285   : > { %v3056_v63 = vpack.c.bf16 %v2800_v59, %v2800_v59  ;;  %v3120_v0 = vpack.c.bf16 %v2864_v60, %v2864_v60  ;;  %v2051_v1 = vpop.f32.mrf.mxu2  ;;  %v2211_v2 = vpop.f32.mrf.mxu3 }
 0x286   : > { %3440 = vst.msk [vmem:[%s4631_s10 + $0x2f0] sm:$0xf] %vm3251_vm3, %v3183_v61  ;;  %v2412_v3 = vmul.f32 %v5750_v49, %v2051_v1  ;;  %v2476_v4 = vmul.f32 %v5750_v49, %v2211_v2  ;;  %v1734_v5 = vpop.f32.mrf.mxu0  ;;  %v1894_v6 = vpop.f32.mrf.mxu1 }
 0x287   : > { %3504 = vst.msk [vmem:[%s4631_s10 + $0x3f0] sm:$0xf] %vm3251_vm3, %v3247_v62  ;;  %v2285_v7 = vmul.f32 %v5750_v49, %v1734_v5  ;;  %v2349_v8 = vmul.f32 %v5750_v49, %v1894_v6 }
 0x288   : > { %3313 = vst.msk [vmem:[%s4631_s10 + $0xf4] sm:$0xf] %vm3251_vm3, %v3056_v63  ;;  %v2672_v40 = vadd.f32 %v5763_v55, %v2412_v3  ;;  %v2736_v10 = vadd.f32 %v5763_v55, %v2476_v4 }
 0x289   : > { %3377 = vst.msk [vmem:[%s4631_s10 + $0x1f4] sm:$0xf] %vm3251_vm3, %v3120_v0  ;;  %v2545_v11 = vadd.f32 %v5763_v55, %v2285_v7  ;;  %v2609_v12 = vadd.f32 %v5763_v55, %v2349_v8 }
 0x28a   : > { %v2928_v13 = vmax.f32 %v2672_v40, 0.0  ;;  %v2992_v14 = vmax.f32 %v2736_v10, 0.0 }
 0x28b   : > { %v2801_v41 = vmax.f32 %v2545_v11, 0.0  ;;  %v2865_v15 = vmax.f32 %v2609_v12, 0.0 }
 0x28c   : > { %v3184_v17 = vpack.c.bf16 %v2928_v13, %v2928_v13  ;;  %v3248_v18 = vpack.c.bf16 %v2992_v14, %v2992_v14 }
 0x28d   : > { %v3057_v19 = vpack.c.bf16 %v2801_v41, %v2801_v41  ;;  %v3121_v20 = vpack.c.bf16 %v2865_v15, %v2865_v15  ;;  %v2054_v21 = vpop.f32.mrf.mxu2  ;;  %v2214_v22 = vpop.f32.mrf.mxu3 }
 0x28e   : > { %3441 = vst.msk [vmem:[%s4631_s10 + $0x2f4] sm:$0xf] %vm3251_vm3, %v3184_v17  ;;  %v2413_v24 = vmul.f32 %v5750_v49, %v2054_v21  ;;  %v2477_v25 = vmul.f32 %v5750_v49, %v2214_v22  ;;  %v1736_v26 = vpop.f32.mrf.mxu0  ;;  %v1896_v27 = vpop.f32.mrf.mxu1 }
 0x28f   : > { %3505 = vst.msk [vmem:[%s4631_s10 + $0x3f4] sm:$0xf] %vm3251_vm3, %v3248_v18  ;;  %v2286_v28 = vmul.f32 %v5750_v49, %v1736_v26  ;;  %v2350_v29 = vmul.f32 %v5750_v49, %v1896_v27 }
 0x290   : > { %3314 = vst.msk [vmem:[%s4631_s10 + $0xf8] sm:$0xf] %vm3251_vm3, %v3057_v19  ;;  %v2673_v30 = vadd.f32 %v5763_v55, %v2413_v24  ;;  %v2737_v31 = vadd.f32 %v5763_v55, %v2477_v25 }
 0x291   : > { %3378 = vst.msk [vmem:[%s4631_s10 + $0x1f8] sm:$0xf] %vm3251_vm3, %v3121_v20  ;;  %v2546_v32 = vadd.f32 %v5763_v55, %v2286_v28  ;;  %v2610_v33 = vadd.f32 %v5763_v55, %v2350_v29 }
 0x292   : > { %v2929_v34 = vmax.f32 %v2673_v30, 0.0  ;;  %v2993_v35 = vmax.f32 %v2737_v31, 0.0 }
 0x293   : > { %v2802_v36 = vmax.f32 %v2546_v32, 0.0  ;;  %v2866_v37 = vmax.f32 %v2610_v33, 0.0 }
 0x294   : > { %v3185_v38 = vpack.c.bf16 %v2929_v34, %v2929_v34  ;;  %v3249_v39 = vpack.c.bf16 %v2993_v35, %v2993_v35 }
 0x295   : > { %v3058_v42 = vpack.c.bf16 %v2802_v36, %v2802_v36  ;;  %v3122_v43 = vpack.c.bf16 %v2866_v37, %v2866_v37  ;;  %v2056_v23 = vpop.f32.mrf.mxu2  ;;  %v2216_v44 = vpop.f32.mrf.mxu3 }
 0x296   : > { %3442 = vst.msk [vmem:[%s4631_s10 + $0x2f8] sm:$0xf] %vm3251_vm3, %v3185_v38  ;;  %v2414_v45 = vmul.f32 %v5750_v49, %v2056_v23  ;;  %v2478_v46 = vmul.f32 %v5750_v49, %v2216_v44 }
 0x297   : > { %3506 = vst.msk [vmem:[%s4631_s10 + $0x3f8] sm:$0xf] %vm3251_vm3, %v3249_v39 }
 0x298   : > { %3315 = vst.msk [vmem:[%s4631_s10 + $0xfc] sm:$0xf] %vm3251_vm3, %v3058_v42  ;;  %v2674_v47 = vadd.f32 %v5763_v55, %v2414_v45  ;;  %v2738_v48 = vadd.f32 %v5763_v55, %v2478_v46 }
 0x299   : > { %3379 = vst.msk [vmem:[%s4631_s10 + $0x1fc] sm:$0xf] %vm3251_vm3, %v3122_v43 }
 0x29a   : > { %v2930_v9 = vmax.f32 %v2674_v47, 0.0  ;;  %v2994_v50 = vmax.f32 %v2738_v48, 0.0 }
 0x29c   : > { %v3186_v51 = vpack.c.bf16 %v2930_v9, %v2930_v9  ;;  %v3250_v52 = vpack.c.bf16 %v2994_v50, %v2994_v50 }
 0x29e   : > { %3443 = vst.msk [vmem:[%s4631_s10 + $0x2fc] sm:$0xf] %vm3251_vm3, %v3186_v51 }
 0x29f   : > { %3507 = vst.msk [vmem:[%s4631_s10 + $0x3fc] sm:$0xf] %vm3251_vm3, %v3250_v52 }
 0x2a0 PF: > { %s14_s17 = sadd.s32 1, %s4475_s17   ;;  %s5881_s15 = smov %s4471_s16 }
 0x2a1   : > { %p11_p5 = scmp.ge.s32.totalorder %s14_s17, 6   ;;  %s5882_s16 = smov %s5884_s18 }
 0x2a3   :  { %13 = sbr.rel (!%p11_p5) target bundleno = 2 (0x2), region = 75 }

</bundles_post_ra>
